<compile_context>
chip_gen: v7x
topology: tpu7x:2x2x1
jax: 0.10.0
libtpu: 0.0.40
codegen_flags: <defaults>
</compile_context>

<pallas_src>
import jax
import jax.numpy as jnp
from jax.experimental import pallas as pl
from jax.experimental.pallas import tpu as pltpu

EPS = 1e-5
MATMUL_DTYPE = jnp.float32   # set to jnp.bfloat16 in production (see header note)


# --------------------------------- Pallas kernel ---------------------------------
def _make_kernel(N, H, W, C):
    R = N * H            # rows  (sublane axis)
    L = W * C            # lanes (dense; 128 for the test shape)
    inv_cnt = 1.0 / float(N * H * W)
    assert W & (W - 1) == 0, "lane-space BN butterfly assumes W is a power of two"

    def lane_channel_allreduce(v):
        # v: (1, L).  Cyclic butterfly over the W groups of C lanes: after log2(W) roll+add
        # steps each lane holds its channel's total, replicated across all W positions.
        shift = C
        while shift < L:
            v = v + pltpu.roll(v, shift, 1)
            shift *= 2
        return v

    def conv3x3(x0, mask_top, mask_bot, w_ref, layer):
        # Row taps via XLU sublane rotation + hoisted image-boundary masks (no padded scratch).
        xm = pltpu.roll(x0, 1, 0) * mask_top        # xm[r] = x0[r-1]; 0 on top image rows
        xp = pltpu.roll(x0, R - 1, 0) * mask_bot    # xp[r] = x0[r+1]; 0 on bottom image rows
        base = 3 * layer
        # Three (R,L)@(L,L) dots accumulated in f32 (no (R,3L) concat / vector copies).
        acc = jnp.dot(x0.astype(MATMUL_DTYPE), w_ref[base + 1],
                      preferred_element_type=jnp.float32)
        acc = acc + jnp.dot(xm.astype(MATMUL_DTYPE), w_ref[base + 0],
                            preferred_element_type=jnp.float32)
        acc = acc + jnp.dot(xp.astype(MATMUL_DTYPE), w_ref[base + 2],
                            preferred_element_type=jnp.float32)
        return acc                                   # (R, L) f32

    def batchnorm(xv, g_ref, bt_ref, layer):
        # One-pass batch stats (biased variance), reduced entirely in lane space.
        s1 = lane_channel_allreduce(jnp.sum(xv, axis=0, keepdims=True))       # (1, L)
        s2 = lane_channel_allreduce(jnp.sum(xv * xv, axis=0, keepdims=True))  # (1, L)
        mean = s1 * inv_cnt
        var = s2 * inv_cnt - mean * mean
        scale = g_ref[layer] * jax.lax.rsqrt(var + EPS)    # (1, L); gamma pre-tiled across W
        shift = bt_ref[layer] - mean * scale               # (1, L)
        return xv * scale + shift                          # one FMA per element

    def kernel(x_ref, w_ref, g_ref, bt_ref, o_ref):
        x = x_ref[...]                                                   # (R, L) f32
        # Hoisted boundary masks: built once, reused by all 6 convs.
        h_idx = jax.lax.broadcasted_iota(jnp.int32, (R, L), 0) % H
        mask_top = (h_idx > 0).astype(jnp.float32)
        mask_bot = (h_idx < H - 1).astype(jnp.float32)
        z = x
        for blk in range(3):                               # three ResidualMiniBlocks
            inp = z
            t = conv3x3(inp, mask_top, mask_bot, w_ref, 2 * blk)
            t = batchnorm(t, g_ref, bt_ref, 2 * blk)
            t = jnp.maximum(t, 0.0)
            t = conv3x3(t, mask_top, mask_bot, w_ref, 2 * blk + 1)
            t = batchnorm(t, g_ref, bt_ref, 2 * blk + 1)
            z = inp + t                                    # mini-block residual
        o_ref[...] = x + z                                 # maxi-block residual

    return kernel


# ------------------------------ parameter packing ------------------------------
def _pack_conv_weight_taps(w_oihw, W):
    """OIHW (C,C,3,3) -> 3 banded (W*C, W*C) matrices, one per row tap dy in {-1,0,+1}.

    M_dy[win*C+ci, wout*C+co] = K[dy+1, win-wout+1, ci, co] if |win-wout| <= 1 else 0,
    i.e. width zero-padding is absorbed into the banded structure."""
    C = w_oihw.shape[0]
    K = jnp.transpose(w_oihw, (2, 3, 1, 0)).astype(jnp.float32)   # (kh, kw, ci, co)
    taps = []
    for dyi in range(3):
        m = jnp.zeros((W * C, W * C), jnp.float32)
        for dxi in range(3):
            dx = dxi - 1
            m = m + jnp.kron(jnp.eye(W, k=-dx, dtype=jnp.float32), K[dyi, dxi])
        taps.append(m)
    return taps


def pack_params(params, W):
    """Pack 3 mini-blocks (w1,w2 OIHW; g/bt per channel) for the lane-fused (R, W*C) layout.

    Returns:
      w_all  : (18, W*C, W*C) -- banded conv blocks, index = 3*layer + (dy+1)
      g_all  : (6, 1, W*C)    -- BN gamma, pre-tiled across W (lane-resident)
      bt_all : (6, 1, W*C)    -- BN beta, pre-tiled across W
    Conv biases are intentionally NOT packed: batch-stat BN cancels them exactly (the
    reference keeps them)."""
    w_mats, g_list, bt_list = [], [], []
    for p in params:
        for wk, gk, btk in ((p["w1"], p["g1"], p["bt1"]),
                            (p["w2"], p["g2"], p["bt2"])):
            w_mats.extend(_pack_conv_weight_taps(wk, W))
            g_list.append(jnp.tile(gk.astype(jnp.float32), W)[None, :])
            bt_list.append(jnp.tile(btk.astype(jnp.float32), W)[None, :])
    return (jnp.stack(w_mats).astype(MATMUL_DTYPE),
            jnp.stack(g_list), jnp.stack(bt_list))


# ----------------------------------- wrapper -----------------------------------
@jax.jit
def residual_maxi_block(x_nhwc, w_all, g_all, bt_all):
    """x_nhwc: (N, H, W, C) f32.  NHWC end-to-end: the (N*H, W*C) relayout is a free reshape."""
    N, H, W, C = x_nhwc.shape
    R, L = N * H, W * C
    x2 = x_nhwc.reshape(R, L)

    kernel = _make_kernel(N, H, W, C)
    out2 = pl.pallas_call(
        kernel,
        out_shape=jax.ShapeDtypeStruct((R, L), jnp.float32),
        in_specs=[pl.BlockSpec(memory_space=pltpu.MemorySpace.VMEM)] * 4,
        out_specs=pl.BlockSpec(memory_space=pltpu.MemorySpace.VMEM),
        # NOTE(perf): if the caller donates its activation buffer, add
        # input_output_aliases={0: 0} to drop the extra HBM output allocation.
    )(x2, w_all, g_all, bt_all)
    # TODO(synk): for production N*H*W, tile the row axis with an image-aligned (multiple of H)
    # "parallel" grid (>=512 rows/tile, M>=256 per dot for the 256-wide v6e/v7x MXU), keep the
    # weight index_map constant so the banded weights stay resident, set vmem_limit_bytes for
    # v7x's 64 MiB VMEM, and switch BN to a two-pass cross-tile sum/sumsq scheme.
    return out2.reshape(N, H, W, C)


# ---------------- pure-JAX reference (silent correctness check) ----------------
def _conv_ref(x_nhwc, w_oihw, b):
    w_hwio = jnp.transpose(w_oihw, (2, 3, 1, 0))
    y = jax.lax.conv_general_dilated(
        x_nhwc, w_hwio, window_strides=(1, 1), padding=((1, 1), (1, 1)),
        dimension_numbers=("NHWC", "HWIO", "NHWC"))
    return y + b[None, None, None, :]


def _bn_ref(x, g, bt):
    mean = jnp.mean(x, axis=(0, 1, 2), keepdims=True)
    var = jnp.mean((x - mean) ** 2, axis=(0, 1, 2), keepdims=True)
    return g * (x - mean) / jnp.sqrt(var + EPS) + bt


def _mini_ref(x, p):
    z = _conv_ref(x, p["w1"], p["b1"])
    z = _bn_ref(z, p["g1"], p["bt1"])
    z = jnp.maximum(z, 0.0)
    z = _conv_ref(z, p["w2"], p["b2"])
    z = _bn_ref(z, p["g2"], p["bt2"])
    return x + z


def _maxi_ref(x, params):
    z = x
    for p in params:
        z = _mini_ref(z, p)
    return x + z


if __name__ == "__main__":
    N, C, H, W = 2, 8, 16, 16          # W * C = 128 -> fully lane-dense internal layout
    key = jax.random.PRNGKey(0)
    keys = jax.random.split(key, 1 + 6 * 4)

    x = jax.random.normal(keys[0], (N, H, W, C), jnp.float32)   # NHWC end-to-end

    # Deterministic synthetic parameters: 6 convs (OIHW) + biases + 6 BN affine pairs.
    params = []
    ki = 1
    for _ in range(3):
        p = {}
        p["w1"] = 0.2 * jax.random.normal(keys[ki], (C, C, 3, 3), jnp.float32); ki += 1
        p["b1"] = 0.1 * jax.random.normal(keys[ki], (C,), jnp.float32); ki += 1
        p["w2"] = 0.2 * jax.random.normal(keys[ki], (C, C, 3, 3), jnp.float32); ki += 1
        p["b2"] = 0.1 * jax.random.normal(keys[ki], (C,), jnp.float32); ki += 1
        p["g1"] = 1.0 + 0.1 * jax.random.normal(keys[ki], (C,), jnp.float32); ki += 1
        p["bt1"] = 0.1 * jax.random.normal(keys[ki], (C,), jnp.float32); ki += 1
        p["g2"] = 1.0 + 0.1 * jax.random.normal(keys[ki], (C,), jnp.float32); ki += 1
        p["bt2"] = 0.1 * jax.random.normal(keys[ki], (C,), jnp.float32); ki += 1
        params.append(p)

    w_all, g_all, bt_all = pack_params(params, W)

    out = residual_maxi_block(x, w_all, g_all, bt_all)
    out = jax.block_until_ready(out)

    ref = _maxi_ref(x, params)
    if not jnp.allclose(out, ref, rtol=1e-3, atol=1e-3):
        raise AssertionError("Pallas kernel does not match reference")

    print("KERNEL_OK")
</pallas_src>

<mosaic_0001>
module attributes {stable_mosaic.version = 11 : i64} {
  func.func @kernel(%arg0: memref<32x128xf32, #tpu.memory_space<vmem>>, %arg1: memref<18x128x128xf32, #tpu.memory_space<vmem>>, %arg2: memref<6x1x128xf32, #tpu.memory_space<vmem>>, %arg3: memref<6x1x128xf32, #tpu.memory_space<vmem>>, %arg4: memref<32x128xf32, #tpu.memory_space<vmem>>) attributes {dimension_semantics = [], scalar_prefetch = 0 : i64, scratch_operands = 0 : i64, tpu.core_type = #tpu.core_type<tc>} {
    %c0 = arith.constant 0 : index
    %c0_0 = arith.constant 0 : index
    %0 = vector.load %arg0[%c0, %c0_0] : memref<32x128xf32, #tpu.memory_space<vmem>>, vector<32x128xf32>
    %1 = tpu.iota {dimensions = array<i32: 0>} : vector<32x128xi32>
    %c16_i32 = arith.constant 16 : i32
    %c0_i32 = arith.constant 0 : i32
    %2 = arith.cmpi eq, %c16_i32, %c0_i32 : i32
    %c1_i32 = arith.constant 1 : i32
    %3 = arith.select %2, %c1_i32, %c16_i32 : i32
    %4 = vector.broadcast %3 : i32 to vector<32x128xi32>
    %5 = arith.remsi %1, %4 : vector<32x128xi32>
    %c0_i32_1 = arith.constant 0 : i32
    %6 = vector.broadcast %c0_i32_1 : i32 to vector<32x128xi32>
    %7 = arith.cmpi ne, %5, %6 : vector<32x128xi32>
    %c0_i32_2 = arith.constant 0 : i32
    %8 = vector.broadcast %c0_i32_2 : i32 to vector<32x128xi32>
    %9 = arith.cmpi slt, %5, %8 : vector<32x128xi32>
    %c0_i32_3 = arith.constant 0 : i32
    %10 = arith.cmpi slt, %3, %c0_i32_3 : i32
    %11 = vector.broadcast %10 : i1 to vector<32x128xi1>
    %12 = vector.broadcast %11 : vector<32x128xi1> to vector<32x128xi1>
    %13 = arith.xori %9, %12 : vector<32x128xi1>
    %14 = arith.andi %13, %7 : vector<32x128xi1>
    %15 = vector.broadcast %3 : i32 to vector<32x128xi32>
    %16 = arith.addi %5, %15 : vector<32x128xi32>
    %17 = arith.select %14, %16, %5 : vector<32x128xi1>, vector<32x128xi32>
    %c0_i32_4 = arith.constant 0 : i32
    %18 = vector.broadcast %c0_i32_4 : i32 to vector<32x128xi32>
    %19 = arith.cmpi sgt, %17, %18 : vector<32x128xi32>
    %20 = arith.extui %19 : vector<32x128xi1> to vector<32x128xi32>
    %21 = arith.sitofp %20 : vector<32x128xi32> to vector<32x128xf32>
    %c15_i32 = arith.constant 15 : i32
    %22 = vector.broadcast %c15_i32 : i32 to vector<32x128xi32>
    %23 = arith.cmpi slt, %17, %22 : vector<32x128xi32>
    %24 = arith.extui %23 : vector<32x128xi1> to vector<32x128xi32>
    %25 = arith.sitofp %24 : vector<32x128xi32> to vector<32x128xf32>
    %c1_i32_5 = arith.constant 1 : i32
    %26 = tpu.dynamic_rotate %0 by %c1_i32_5 dim 0 : vector<32x128xf32>, i32 -> vector<32x128xf32>
    %27 = arith.mulf %26, %21 : vector<32x128xf32>
    %c31_i32 = arith.constant 31 : i32
    %28 = tpu.dynamic_rotate %0 by %c31_i32 dim 0 : vector<32x128xf32>, i32 -> vector<32x128xf32>
    %29 = arith.mulf %28, %25 : vector<32x128xf32>
    %c1 = arith.constant 1 : index
    %c0_6 = arith.constant 0 : index
    %c0_7 = arith.constant 0 : index
    %30 = vector.load %arg1[%c1, %c0_6, %c0_7] : memref<18x128x128xf32, #tpu.memory_space<vmem>>, vector<1x128x128xf32>
    %31 = vector.shape_cast %30 : vector<1x128x128xf32> to vector<128x128xf32>
    %cst = arith.constant dense<0.000000e+00> : vector<32x128xf32>
    %32 = tpu.matmul %0, %31, %cst {dimension_numbers = #tpu.dot_dimension_numbers<[1], [0], [0], [1], [0, 0, 1, 1], [], []>} : vector<32x128xf32>, vector<128x128xf32>, vector<32x128xf32> -> vector<32x128xf32>
    %c0_8 = arith.constant 0 : index
    %c0_9 = arith.constant 0 : index
    %c0_10 = arith.constant 0 : index
    %33 = vector.load %arg1[%c0_8, %c0_9, %c0_10] : memref<18x128x128xf32, #tpu.memory_space<vmem>>, vector<1x128x128xf32>
    %34 = vector.shape_cast %33 : vector<1x128x128xf32> to vector<128x128xf32>
    %cst_11 = arith.constant dense<0.000000e+00> : vector<32x128xf32>
    %35 = tpu.matmul %27, %34, %cst_11 {dimension_numbers = #tpu.dot_dimension_numbers<[1], [0], [0], [1], [0, 0, 1, 1], [], []>} : vector<32x128xf32>, vector<128x128xf32>, vector<32x128xf32> -> vector<32x128xf32>
    %36 = arith.addf %32, %35 : vector<32x128xf32>
    %c2 = arith.constant 2 : index
    %c0_12 = arith.constant 0 : index
    %c0_13 = arith.constant 0 : index
    %37 = vector.load %arg1[%c2, %c0_12, %c0_13] : memref<18x128x128xf32, #tpu.memory_space<vmem>>, vector<1x128x128xf32>
    %38 = vector.shape_cast %37 : vector<1x128x128xf32> to vector<128x128xf32>
    %cst_14 = arith.constant dense<0.000000e+00> : vector<32x128xf32>
    %39 = tpu.matmul %29, %38, %cst_14 {dimension_numbers = #tpu.dot_dimension_numbers<[1], [0], [0], [1], [0, 0, 1, 1], [], []>} : vector<32x128xf32>, vector<128x128xf32>, vector<32x128xf32> -> vector<32x128xf32>
    %40 = arith.addf %36, %39 : vector<32x128xf32>
    %cst_15 = arith.constant dense<0.000000e+00> : vector<128xf32>
    %41 = vector.multi_reduction <add>, %40, %cst_15 [0] : vector<32x128xf32> to vector<128xf32>
    %42 = vector.shape_cast %41 : vector<128xf32> to vector<1x128xf32>
    %c8_i32 = arith.constant 8 : i32
    %43 = tpu.dynamic_rotate %42 by %c8_i32 dim 1 : vector<1x128xf32>, i32 -> vector<1x128xf32>
    %44 = arith.addf %42, %43 : vector<1x128xf32>
    %c16_i32_16 = arith.constant 16 : i32
    %45 = tpu.dynamic_rotate %44 by %c16_i32_16 dim 1 : vector<1x128xf32>, i32 -> vector<1x128xf32>
    %46 = arith.addf %44, %45 : vector<1x128xf32>
    %c32_i32 = arith.constant 32 : i32
    %47 = tpu.dynamic_rotate %46 by %c32_i32 dim 1 : vector<1x128xf32>, i32 -> vector<1x128xf32>
    %48 = arith.addf %46, %47 : vector<1x128xf32>
    %c64_i32 = arith.constant 64 : i32
    %49 = tpu.dynamic_rotate %48 by %c64_i32 dim 1 : vector<1x128xf32>, i32 -> vector<1x128xf32>
    %50 = arith.addf %48, %49 : vector<1x128xf32>
    %51 = arith.mulf %40, %40 : vector<32x128xf32>
    %cst_17 = arith.constant dense<0.000000e+00> : vector<128xf32>
    %52 = vector.multi_reduction <add>, %51, %cst_17 [0] : vector<32x128xf32> to vector<128xf32>
    %53 = vector.shape_cast %52 : vector<128xf32> to vector<1x128xf32>
    %c8_i32_18 = arith.constant 8 : i32
    %54 = tpu.dynamic_rotate %53 by %c8_i32_18 dim 1 : vector<1x128xf32>, i32 -> vector<1x128xf32>
    %55 = arith.addf %53, %54 : vector<1x128xf32>
    %c16_i32_19 = arith.constant 16 : i32
    %56 = tpu.dynamic_rotate %55 by %c16_i32_19 dim 1 : vector<1x128xf32>, i32 -> vector<1x128xf32>
    %57 = arith.addf %55, %56 : vector<1x128xf32>
    %c32_i32_20 = arith.constant 32 : i32
    %58 = tpu.dynamic_rotate %57 by %c32_i32_20 dim 1 : vector<1x128xf32>, i32 -> vector<1x128xf32>
    %59 = arith.addf %57, %58 : vector<1x128xf32>
    %c64_i32_21 = arith.constant 64 : i32
    %60 = tpu.dynamic_rotate %59 by %c64_i32_21 dim 1 : vector<1x128xf32>, i32 -> vector<1x128xf32>
    %61 = arith.addf %59, %60 : vector<1x128xf32>
    %cst_22 = arith.constant 0.001953125 : f32
    %62 = vector.broadcast %cst_22 : f32 to vector<1x128xf32>
    %63 = arith.mulf %50, %62 : vector<1x128xf32>
    %cst_23 = arith.constant 0.001953125 : f32
    %64 = vector.broadcast %cst_23 : f32 to vector<1x128xf32>
    %65 = arith.mulf %61, %64 : vector<1x128xf32>
    %66 = arith.mulf %63, %63 : vector<1x128xf32>
    %67 = arith.subf %65, %66 : vector<1x128xf32>
    %c0_24 = arith.constant 0 : index
    %c0_25 = arith.constant 0 : index
    %c0_26 = arith.constant 0 : index
    %68 = vector.load %arg2[%c0_24, %c0_25, %c0_26] : memref<6x1x128xf32, #tpu.memory_space<vmem>>, vector<1x1x128xf32>
    %69 = vector.shape_cast %68 : vector<1x1x128xf32> to vector<1x128xf32>
    %cst_27 = arith.constant 9.99999974E-6 : f32
    %70 = vector.broadcast %cst_27 : f32 to vector<1x128xf32>
    %71 = arith.addf %67, %70 : vector<1x128xf32>
    %72 = math.rsqrt %71 : vector<1x128xf32>
    %73 = arith.mulf %69, %72 : vector<1x128xf32>
    %c0_28 = arith.constant 0 : index
    %c0_29 = arith.constant 0 : index
    %c0_30 = arith.constant 0 : index
    %74 = vector.load %arg3[%c0_28, %c0_29, %c0_30] : memref<6x1x128xf32, #tpu.memory_space<vmem>>, vector<1x1x128xf32>
    %75 = vector.shape_cast %74 : vector<1x1x128xf32> to vector<1x128xf32>
    %76 = arith.mulf %63, %73 : vector<1x128xf32>
    %77 = arith.subf %75, %76 : vector<1x128xf32>
    %78 = vector.broadcast %73 : vector<1x128xf32> to vector<32x128xf32>
    %79 = arith.mulf %40, %78 : vector<32x128xf32>
    %80 = vector.broadcast %77 : vector<1x128xf32> to vector<32x128xf32>
    %81 = arith.addf %79, %80 : vector<32x128xf32>
    %cst_31 = arith.constant 0.000000e+00 : f32
    %82 = vector.broadcast %cst_31 : f32 to vector<32x128xf32>
    %83 = arith.maximumf %81, %82 : vector<32x128xf32>
    %c1_i32_32 = arith.constant 1 : i32
    %84 = tpu.dynamic_rotate %83 by %c1_i32_32 dim 0 : vector<32x128xf32>, i32 -> vector<32x128xf32>
    %85 = arith.mulf %84, %21 : vector<32x128xf32>
    %c31_i32_33 = arith.constant 31 : i32
    %86 = tpu.dynamic_rotate %83 by %c31_i32_33 dim 0 : vector<32x128xf32>, i32 -> vector<32x128xf32>
    %87 = arith.mulf %86, %25 : vector<32x128xf32>
    %c4 = arith.constant 4 : index
    %c0_34 = arith.constant 0 : index
    %c0_35 = arith.constant 0 : index
    %88 = vector.load %arg1[%c4, %c0_34, %c0_35] : memref<18x128x128xf32, #tpu.memory_space<vmem>>, vector<1x128x128xf32>
    %89 = vector.shape_cast %88 : vector<1x128x128xf32> to vector<128x128xf32>
    %cst_36 = arith.constant dense<0.000000e+00> : vector<32x128xf32>
    %90 = tpu.matmul %83, %89, %cst_36 {dimension_numbers = #tpu.dot_dimension_numbers<[1], [0], [0], [1], [0, 0, 1, 1], [], []>} : vector<32x128xf32>, vector<128x128xf32>, vector<32x128xf32> -> vector<32x128xf32>
    %c3 = arith.constant 3 : index
    %c0_37 = arith.constant 0 : index
    %c0_38 = arith.constant 0 : index
    %91 = vector.load %arg1[%c3, %c0_37, %c0_38] : memref<18x128x128xf32, #tpu.memory_space<vmem>>, vector<1x128x128xf32>
    %92 = vector.shape_cast %91 : vector<1x128x128xf32> to vector<128x128xf32>
    %cst_39 = arith.constant dense<0.000000e+00> : vector<32x128xf32>
    %93 = tpu.matmul %85, %92, %cst_39 {dimension_numbers = #tpu.dot_dimension_numbers<[1], [0], [0], [1], [0, 0, 1, 1], [], []>} : vector<32x128xf32>, vector<128x128xf32>, vector<32x128xf32> -> vector<32x128xf32>
    %94 = arith.addf %90, %93 : vector<32x128xf32>
    %c5 = arith.constant 5 : index
    %c0_40 = arith.constant 0 : index
    %c0_41 = arith.constant 0 : index
    %95 = vector.load %arg1[%c5, %c0_40, %c0_41] : memref<18x128x128xf32, #tpu.memory_space<vmem>>, vector<1x128x128xf32>
    %96 = vector.shape_cast %95 : vector<1x128x128xf32> to vector<128x128xf32>
    %cst_42 = arith.constant dense<0.000000e+00> : vector<32x128xf32>
    %97 = tpu.matmul %87, %96, %cst_42 {dimension_numbers = #tpu.dot_dimension_numbers<[1], [0], [0], [1], [0, 0, 1, 1], [], []>} : vector<32x128xf32>, vector<128x128xf32>, vector<32x128xf32> -> vector<32x128xf32>
    %98 = arith.addf %94, %97 : vector<32x128xf32>
    %cst_43 = arith.constant dense<0.000000e+00> : vector<128xf32>
    %99 = vector.multi_reduction <add>, %98, %cst_43 [0] : vector<32x128xf32> to vector<128xf32>
    %100 = vector.shape_cast %99 : vector<128xf32> to vector<1x128xf32>
    %c8_i32_44 = arith.constant 8 : i32
    %101 = tpu.dynamic_rotate %100 by %c8_i32_44 dim 1 : vector<1x128xf32>, i32 -> vector<1x128xf32>
    %102 = arith.addf %100, %101 : vector<1x128xf32>
    %c16_i32_45 = arith.constant 16 : i32
    %103 = tpu.dynamic_rotate %102 by %c16_i32_45 dim 1 : vector<1x128xf32>, i32 -> vector<1x128xf32>
    %104 = arith.addf %102, %103 : vector<1x128xf32>
    %c32_i32_46 = arith.constant 32 : i32
    %105 = tpu.dynamic_rotate %104 by %c32_i32_46 dim 1 : vector<1x128xf32>, i32 -> vector<1x128xf32>
    %106 = arith.addf %104, %105 : vector<1x128xf32>
    %c64_i32_47 = arith.constant 64 : i32
    %107 = tpu.dynamic_rotate %106 by %c64_i32_47 dim 1 : vector<1x128xf32>, i32 -> vector<1x128xf32>
    %108 = arith.addf %106, %107 : vector<1x128xf32>
    %109 = arith.mulf %98, %98 : vector<32x128xf32>
    %cst_48 = arith.constant dense<0.000000e+00> : vector<128xf32>
    %110 = vector.multi_reduction <add>, %109, %cst_48 [0] : vector<32x128xf32> to vector<128xf32>
    %111 = vector.shape_cast %110 : vector<128xf32> to vector<1x128xf32>
    %c8_i32_49 = arith.constant 8 : i32
    %112 = tpu.dynamic_rotate %111 by %c8_i32_49 dim 1 : vector<1x128xf32>, i32 -> vector<1x128xf32>
    %113 = arith.addf %111, %112 : vector<1x128xf32>
    %c16_i32_50 = arith.constant 16 : i32
    %114 = tpu.dynamic_rotate %113 by %c16_i32_50 dim 1 : vector<1x128xf32>, i32 -> vector<1x128xf32>
    %115 = arith.addf %113, %114 : vector<1x128xf32>
    %c32_i32_51 = arith.constant 32 : i32
    %116 = tpu.dynamic_rotate %115 by %c32_i32_51 dim 1 : vector<1x128xf32>, i32 -> vector<1x128xf32>
    %117 = arith.addf %115, %116 : vector<1x128xf32>
    %c64_i32_52 = arith.constant 64 : i32
    %118 = tpu.dynamic_rotate %117 by %c64_i32_52 dim 1 : vector<1x128xf32>, i32 -> vector<1x128xf32>
    %119 = arith.addf %117, %118 : vector<1x128xf32>
    %cst_53 = arith.constant 0.001953125 : f32
    %120 = vector.broadcast %cst_53 : f32 to vector<1x128xf32>
    %121 = arith.mulf %108, %120 : vector<1x128xf32>
    %cst_54 = arith.constant 0.001953125 : f32
    %122 = vector.broadcast %cst_54 : f32 to vector<1x128xf32>
    %123 = arith.mulf %119, %122 : vector<1x128xf32>
    %124 = arith.mulf %121, %121 : vector<1x128xf32>
    %125 = arith.subf %123, %124 : vector<1x128xf32>
    %c1_55 = arith.constant 1 : index
    %c0_56 = arith.constant 0 : index
    %c0_57 = arith.constant 0 : index
    %126 = vector.load %arg2[%c1_55, %c0_56, %c0_57] : memref<6x1x128xf32, #tpu.memory_space<vmem>>, vector<1x1x128xf32>
    %127 = vector.shape_cast %126 : vector<1x1x128xf32> to vector<1x128xf32>
    %cst_58 = arith.constant 9.99999974E-6 : f32
    %128 = vector.broadcast %cst_58 : f32 to vector<1x128xf32>
    %129 = arith.addf %125, %128 : vector<1x128xf32>
    %130 = math.rsqrt %129 : vector<1x128xf32>
    %131 = arith.mulf %127, %130 : vector<1x128xf32>
    %c1_59 = arith.constant 1 : index
    %c0_60 = arith.constant 0 : index
    %c0_61 = arith.constant 0 : index
    %132 = vector.load %arg3[%c1_59, %c0_60, %c0_61] : memref<6x1x128xf32, #tpu.memory_space<vmem>>, vector<1x1x128xf32>
    %133 = vector.shape_cast %132 : vector<1x1x128xf32> to vector<1x128xf32>
    %134 = arith.mulf %121, %131 : vector<1x128xf32>
    %135 = arith.subf %133, %134 : vector<1x128xf32>
    %136 = vector.broadcast %131 : vector<1x128xf32> to vector<32x128xf32>
    %137 = arith.mulf %98, %136 : vector<32x128xf32>
    %138 = vector.broadcast %135 : vector<1x128xf32> to vector<32x128xf32>
    %139 = arith.addf %137, %138 : vector<32x128xf32>
    %140 = arith.addf %0, %139 : vector<32x128xf32>
    %c1_i32_62 = arith.constant 1 : i32
    %141 = tpu.dynamic_rotate %140 by %c1_i32_62 dim 0 : vector<32x128xf32>, i32 -> vector<32x128xf32>
    %142 = arith.mulf %141, %21 : vector<32x128xf32>
    %c31_i32_63 = arith.constant 31 : i32
    %143 = tpu.dynamic_rotate %140 by %c31_i32_63 dim 0 : vector<32x128xf32>, i32 -> vector<32x128xf32>
    %144 = arith.mulf %143, %25 : vector<32x128xf32>
    %c7 = arith.constant 7 : index
    %c0_64 = arith.constant 0 : index
    %c0_65 = arith.constant 0 : index
    %145 = vector.load %arg1[%c7, %c0_64, %c0_65] : memref<18x128x128xf32, #tpu.memory_space<vmem>>, vector<1x128x128xf32>
    %146 = vector.shape_cast %145 : vector<1x128x128xf32> to vector<128x128xf32>
    %cst_66 = arith.constant dense<0.000000e+00> : vector<32x128xf32>
    %147 = tpu.matmul %140, %146, %cst_66 {dimension_numbers = #tpu.dot_dimension_numbers<[1], [0], [0], [1], [0, 0, 1, 1], [], []>} : vector<32x128xf32>, vector<128x128xf32>, vector<32x128xf32> -> vector<32x128xf32>
    %c6 = arith.constant 6 : index
    %c0_67 = arith.constant 0 : index
    %c0_68 = arith.constant 0 : index
    %148 = vector.load %arg1[%c6, %c0_67, %c0_68] : memref<18x128x128xf32, #tpu.memory_space<vmem>>, vector<1x128x128xf32>
    %149 = vector.shape_cast %148 : vector<1x128x128xf32> to vector<128x128xf32>
    %cst_69 = arith.constant dense<0.000000e+00> : vector<32x128xf32>
    %150 = tpu.matmul %142, %149, %cst_69 {dimension_numbers = #tpu.dot_dimension_numbers<[1], [0], [0], [1], [0, 0, 1, 1], [], []>} : vector<32x128xf32>, vector<128x128xf32>, vector<32x128xf32> -> vector<32x128xf32>
    %151 = arith.addf %147, %150 : vector<32x128xf32>
    %c8 = arith.constant 8 : index
    %c0_70 = arith.constant 0 : index
    %c0_71 = arith.constant 0 : index
    %152 = vector.load %arg1[%c8, %c0_70, %c0_71] : memref<18x128x128xf32, #tpu.memory_space<vmem>>, vector<1x128x128xf32>
    %153 = vector.shape_cast %152 : vector<1x128x128xf32> to vector<128x128xf32>
    %cst_72 = arith.constant dense<0.000000e+00> : vector<32x128xf32>
    %154 = tpu.matmul %144, %153, %cst_72 {dimension_numbers = #tpu.dot_dimension_numbers<[1], [0], [0], [1], [0, 0, 1, 1], [], []>} : vector<32x128xf32>, vector<128x128xf32>, vector<32x128xf32> -> vector<32x128xf32>
    %155 = arith.addf %151, %154 : vector<32x128xf32>
    %cst_73 = arith.constant dense<0.000000e+00> : vector<128xf32>
    %156 = vector.multi_reduction <add>, %155, %cst_73 [0] : vector<32x128xf32> to vector<128xf32>
    %157 = vector.shape_cast %156 : vector<128xf32> to vector<1x128xf32>
    %c8_i32_74 = arith.constant 8 : i32
    %158 = tpu.dynamic_rotate %157 by %c8_i32_74 dim 1 : vector<1x128xf32>, i32 -> vector<1x128xf32>
    %159 = arith.addf %157, %158 : vector<1x128xf32>
    %c16_i32_75 = arith.constant 16 : i32
    %160 = tpu.dynamic_rotate %159 by %c16_i32_75 dim 1 : vector<1x128xf32>, i32 -> vector<1x128xf32>
    %161 = arith.addf %159, %160 : vector<1x128xf32>
    %c32_i32_76 = arith.constant 32 : i32
    %162 = tpu.dynamic_rotate %161 by %c32_i32_76 dim 1 : vector<1x128xf32>, i32 -> vector<1x128xf32>
    %163 = arith.addf %161, %162 : vector<1x128xf32>
    %c64_i32_77 = arith.constant 64 : i32
    %164 = tpu.dynamic_rotate %163 by %c64_i32_77 dim 1 : vector<1x128xf32>, i32 -> vector<1x128xf32>
    %165 = arith.addf %163, %164 : vector<1x128xf32>
    %166 = arith.mulf %155, %155 : vector<32x128xf32>
    %cst_78 = arith.constant dense<0.000000e+00> : vector<128xf32>
    %167 = vector.multi_reduction <add>, %166, %cst_78 [0] : vector<32x128xf32> to vector<128xf32>
    %168 = vector.shape_cast %167 : vector<128xf32> to vector<1x128xf32>
    %c8_i32_79 = arith.constant 8 : i32
    %169 = tpu.dynamic_rotate %168 by %c8_i32_79 dim 1 : vector<1x128xf32>, i32 -> vector<1x128xf32>
    %170 = arith.addf %168, %169 : vector<1x128xf32>
    %c16_i32_80 = arith.constant 16 : i32
    %171 = tpu.dynamic_rotate %170 by %c16_i32_80 dim 1 : vector<1x128xf32>, i32 -> vector<1x128xf32>
    %172 = arith.addf %170, %171 : vector<1x128xf32>
    %c32_i32_81 = arith.constant 32 : i32
    %173 = tpu.dynamic_rotate %172 by %c32_i32_81 dim 1 : vector<1x128xf32>, i32 -> vector<1x128xf32>
    %174 = arith.addf %172, %173 : vector<1x128xf32>
    %c64_i32_82 = arith.constant 64 : i32
    %175 = tpu.dynamic_rotate %174 by %c64_i32_82 dim 1 : vector<1x128xf32>, i32 -> vector<1x128xf32>
    %176 = arith.addf %174, %175 : vector<1x128xf32>
    %cst_83 = arith.constant 0.001953125 : f32
    %177 = vector.broadcast %cst_83 : f32 to vector<1x128xf32>
    %178 = arith.mulf %165, %177 : vector<1x128xf32>
    %cst_84 = arith.constant 0.001953125 : f32
    %179 = vector.broadcast %cst_84 : f32 to vector<1x128xf32>
    %180 = arith.mulf %176, %179 : vector<1x128xf32>
    %181 = arith.mulf %178, %178 : vector<1x128xf32>
    %182 = arith.subf %180, %181 : vector<1x128xf32>
    %c2_85 = arith.constant 2 : index
    %c0_86 = arith.constant 0 : index
    %c0_87 = arith.constant 0 : index
    %183 = vector.load %arg2[%c2_85, %c0_86, %c0_87] : memref<6x1x128xf32, #tpu.memory_space<vmem>>, vector<1x1x128xf32>
    %184 = vector.shape_cast %183 : vector<1x1x128xf32> to vector<1x128xf32>
    %cst_88 = arith.constant 9.99999974E-6 : f32
    %185 = vector.broadcast %cst_88 : f32 to vector<1x128xf32>
    %186 = arith.addf %182, %185 : vector<1x128xf32>
    %187 = math.rsqrt %186 : vector<1x128xf32>
    %188 = arith.mulf %184, %187 : vector<1x128xf32>
    %c2_89 = arith.constant 2 : index
    %c0_90 = arith.constant 0 : index
    %c0_91 = arith.constant 0 : index
    %189 = vector.load %arg3[%c2_89, %c0_90, %c0_91] : memref<6x1x128xf32, #tpu.memory_space<vmem>>, vector<1x1x128xf32>
    %190 = vector.shape_cast %189 : vector<1x1x128xf32> to vector<1x128xf32>
    %191 = arith.mulf %178, %188 : vector<1x128xf32>
    %192 = arith.subf %190, %191 : vector<1x128xf32>
    %193 = vector.broadcast %188 : vector<1x128xf32> to vector<32x128xf32>
    %194 = arith.mulf %155, %193 : vector<32x128xf32>
    %195 = vector.broadcast %192 : vector<1x128xf32> to vector<32x128xf32>
    %196 = arith.addf %194, %195 : vector<32x128xf32>
    %cst_92 = arith.constant 0.000000e+00 : f32
    %197 = vector.broadcast %cst_92 : f32 to vector<32x128xf32>
    %198 = arith.maximumf %196, %197 : vector<32x128xf32>
    %c1_i32_93 = arith.constant 1 : i32
    %199 = tpu.dynamic_rotate %198 by %c1_i32_93 dim 0 : vector<32x128xf32>, i32 -> vector<32x128xf32>
    %200 = arith.mulf %199, %21 : vector<32x128xf32>
    %c31_i32_94 = arith.constant 31 : i32
    %201 = tpu.dynamic_rotate %198 by %c31_i32_94 dim 0 : vector<32x128xf32>, i32 -> vector<32x128xf32>
    %202 = arith.mulf %201, %25 : vector<32x128xf32>
    %c10 = arith.constant 10 : index
    %c0_95 = arith.constant 0 : index
    %c0_96 = arith.constant 0 : index
    %203 = vector.load %arg1[%c10, %c0_95, %c0_96] : memref<18x128x128xf32, #tpu.memory_space<vmem>>, vector<1x128x128xf32>
    %204 = vector.shape_cast %203 : vector<1x128x128xf32> to vector<128x128xf32>
    %cst_97 = arith.constant dense<0.000000e+00> : vector<32x128xf32>
    %205 = tpu.matmul %198, %204, %cst_97 {dimension_numbers = #tpu.dot_dimension_numbers<[1], [0], [0], [1], [0, 0, 1, 1], [], []>} : vector<32x128xf32>, vector<128x128xf32>, vector<32x128xf32> -> vector<32x128xf32>
    %c9 = arith.constant 9 : index
    %c0_98 = arith.constant 0 : index
    %c0_99 = arith.constant 0 : index
    %206 = vector.load %arg1[%c9, %c0_98, %c0_99] : memref<18x128x128xf32, #tpu.memory_space<vmem>>, vector<1x128x128xf32>
    %207 = vector.shape_cast %206 : vector<1x128x128xf32> to vector<128x128xf32>
    %cst_100 = arith.constant dense<0.000000e+00> : vector<32x128xf32>
    %208 = tpu.matmul %200, %207, %cst_100 {dimension_numbers = #tpu.dot_dimension_numbers<[1], [0], [0], [1], [0, 0, 1, 1], [], []>} : vector<32x128xf32>, vector<128x128xf32>, vector<32x128xf32> -> vector<32x128xf32>
    %209 = arith.addf %205, %208 : vector<32x128xf32>
    %c11 = arith.constant 11 : index
    %c0_101 = arith.constant 0 : index
    %c0_102 = arith.constant 0 : index
    %210 = vector.load %arg1[%c11, %c0_101, %c0_102] : memref<18x128x128xf32, #tpu.memory_space<vmem>>, vector<1x128x128xf32>
    %211 = vector.shape_cast %210 : vector<1x128x128xf32> to vector<128x128xf32>
    %cst_103 = arith.constant dense<0.000000e+00> : vector<32x128xf32>
    %212 = tpu.matmul %202, %211, %cst_103 {dimension_numbers = #tpu.dot_dimension_numbers<[1], [0], [0], [1], [0, 0, 1, 1], [], []>} : vector<32x128xf32>, vector<128x128xf32>, vector<32x128xf32> -> vector<32x128xf32>
    %213 = arith.addf %209, %212 : vector<32x128xf32>
    %cst_104 = arith.constant dense<0.000000e+00> : vector<128xf32>
    %214 = vector.multi_reduction <add>, %213, %cst_104 [0] : vector<32x128xf32> to vector<128xf32>
    %215 = vector.shape_cast %214 : vector<128xf32> to vector<1x128xf32>
    %c8_i32_105 = arith.constant 8 : i32
    %216 = tpu.dynamic_rotate %215 by %c8_i32_105 dim 1 : vector<1x128xf32>, i32 -> vector<1x128xf32>
    %217 = arith.addf %215, %216 : vector<1x128xf32>
    %c16_i32_106 = arith.constant 16 : i32
    %218 = tpu.dynamic_rotate %217 by %c16_i32_106 dim 1 : vector<1x128xf32>, i32 -> vector<1x128xf32>
    %219 = arith.addf %217, %218 : vector<1x128xf32>
    %c32_i32_107 = arith.constant 32 : i32
    %220 = tpu.dynamic_rotate %219 by %c32_i32_107 dim 1 : vector<1x128xf32>, i32 -> vector<1x128xf32>
    %221 = arith.addf %219, %220 : vector<1x128xf32>
    %c64_i32_108 = arith.constant 64 : i32
    %222 = tpu.dynamic_rotate %221 by %c64_i32_108 dim 1 : vector<1x128xf32>, i32 -> vector<1x128xf32>
    %223 = arith.addf %221, %222 : vector<1x128xf32>
    %224 = arith.mulf %213, %213 : vector<32x128xf32>
    %cst_109 = arith.constant dense<0.000000e+00> : vector<128xf32>
    %225 = vector.multi_reduction <add>, %224, %cst_109 [0] : vector<32x128xf32> to vector<128xf32>
    %226 = vector.shape_cast %225 : vector<128xf32> to vector<1x128xf32>
    %c8_i32_110 = arith.constant 8 : i32
    %227 = tpu.dynamic_rotate %226 by %c8_i32_110 dim 1 : vector<1x128xf32>, i32 -> vector<1x128xf32>
    %228 = arith.addf %226, %227 : vector<1x128xf32>
    %c16_i32_111 = arith.constant 16 : i32
    %229 = tpu.dynamic_rotate %228 by %c16_i32_111 dim 1 : vector<1x128xf32>, i32 -> vector<1x128xf32>
    %230 = arith.addf %228, %229 : vector<1x128xf32>
    %c32_i32_112 = arith.constant 32 : i32
    %231 = tpu.dynamic_rotate %230 by %c32_i32_112 dim 1 : vector<1x128xf32>, i32 -> vector<1x128xf32>
    %232 = arith.addf %230, %231 : vector<1x128xf32>
    %c64_i32_113 = arith.constant 64 : i32
    %233 = tpu.dynamic_rotate %232 by %c64_i32_113 dim 1 : vector<1x128xf32>, i32 -> vector<1x128xf32>
    %234 = arith.addf %232, %233 : vector<1x128xf32>
    %cst_114 = arith.constant 0.001953125 : f32
    %235 = vector.broadcast %cst_114 : f32 to vector<1x128xf32>
    %236 = arith.mulf %223, %235 : vector<1x128xf32>
    %cst_115 = arith.constant 0.001953125 : f32
    %237 = vector.broadcast %cst_115 : f32 to vector<1x128xf32>
    %238 = arith.mulf %234, %237 : vector<1x128xf32>
    %239 = arith.mulf %236, %236 : vector<1x128xf32>
    %240 = arith.subf %238, %239 : vector<1x128xf32>
    %c3_116 = arith.constant 3 : index
    %c0_117 = arith.constant 0 : index
    %c0_118 = arith.constant 0 : index
    %241 = vector.load %arg2[%c3_116, %c0_117, %c0_118] : memref<6x1x128xf32, #tpu.memory_space<vmem>>, vector<1x1x128xf32>
    %242 = vector.shape_cast %241 : vector<1x1x128xf32> to vector<1x128xf32>
    %cst_119 = arith.constant 9.99999974E-6 : f32
    %243 = vector.broadcast %cst_119 : f32 to vector<1x128xf32>
    %244 = arith.addf %240, %243 : vector<1x128xf32>
    %245 = math.rsqrt %244 : vector<1x128xf32>
    %246 = arith.mulf %242, %245 : vector<1x128xf32>
    %c3_120 = arith.constant 3 : index
    %c0_121 = arith.constant 0 : index
    %c0_122 = arith.constant 0 : index
    %247 = vector.load %arg3[%c3_120, %c0_121, %c0_122] : memref<6x1x128xf32, #tpu.memory_space<vmem>>, vector<1x1x128xf32>
    %248 = vector.shape_cast %247 : vector<1x1x128xf32> to vector<1x128xf32>
    %249 = arith.mulf %236, %246 : vector<1x128xf32>
    %250 = arith.subf %248, %249 : vector<1x128xf32>
    %251 = vector.broadcast %246 : vector<1x128xf32> to vector<32x128xf32>
    %252 = arith.mulf %213, %251 : vector<32x128xf32>
    %253 = vector.broadcast %250 : vector<1x128xf32> to vector<32x128xf32>
    %254 = arith.addf %252, %253 : vector<32x128xf32>
    %255 = arith.addf %140, %254 : vector<32x128xf32>
    %c1_i32_123 = arith.constant 1 : i32
    %256 = tpu.dynamic_rotate %255 by %c1_i32_123 dim 0 : vector<32x128xf32>, i32 -> vector<32x128xf32>
    %257 = arith.mulf %256, %21 : vector<32x128xf32>
    %c31_i32_124 = arith.constant 31 : i32
    %258 = tpu.dynamic_rotate %255 by %c31_i32_124 dim 0 : vector<32x128xf32>, i32 -> vector<32x128xf32>
    %259 = arith.mulf %258, %25 : vector<32x128xf32>
    %c13 = arith.constant 13 : index
    %c0_125 = arith.constant 0 : index
    %c0_126 = arith.constant 0 : index
    %260 = vector.load %arg1[%c13, %c0_125, %c0_126] : memref<18x128x128xf32, #tpu.memory_space<vmem>>, vector<1x128x128xf32>
    %261 = vector.shape_cast %260 : vector<1x128x128xf32> to vector<128x128xf32>
    %cst_127 = arith.constant dense<0.000000e+00> : vector<32x128xf32>
    %262 = tpu.matmul %255, %261, %cst_127 {dimension_numbers = #tpu.dot_dimension_numbers<[1], [0], [0], [1], [0, 0, 1, 1], [], []>} : vector<32x128xf32>, vector<128x128xf32>, vector<32x128xf32> -> vector<32x128xf32>
    %c12 = arith.constant 12 : index
    %c0_128 = arith.constant 0 : index
    %c0_129 = arith.constant 0 : index
    %263 = vector.load %arg1[%c12, %c0_128, %c0_129] : memref<18x128x128xf32, #tpu.memory_space<vmem>>, vector<1x128x128xf32>
    %264 = vector.shape_cast %263 : vector<1x128x128xf32> to vector<128x128xf32>
    %cst_130 = arith.constant dense<0.000000e+00> : vector<32x128xf32>
    %265 = tpu.matmul %257, %264, %cst_130 {dimension_numbers = #tpu.dot_dimension_numbers<[1], [0], [0], [1], [0, 0, 1, 1], [], []>} : vector<32x128xf32>, vector<128x128xf32>, vector<32x128xf32> -> vector<32x128xf32>
    %266 = arith.addf %262, %265 : vector<32x128xf32>
    %c14 = arith.constant 14 : index
    %c0_131 = arith.constant 0 : index
    %c0_132 = arith.constant 0 : index
    %267 = vector.load %arg1[%c14, %c0_131, %c0_132] : memref<18x128x128xf32, #tpu.memory_space<vmem>>, vector<1x128x128xf32>
    %268 = vector.shape_cast %267 : vector<1x128x128xf32> to vector<128x128xf32>
    %cst_133 = arith.constant dense<0.000000e+00> : vector<32x128xf32>
    %269 = tpu.matmul %259, %268, %cst_133 {dimension_numbers = #tpu.dot_dimension_numbers<[1], [0], [0], [1], [0, 0, 1, 1], [], []>} : vector<32x128xf32>, vector<128x128xf32>, vector<32x128xf32> -> vector<32x128xf32>
    %270 = arith.addf %266, %269 : vector<32x128xf32>
    %cst_134 = arith.constant dense<0.000000e+00> : vector<128xf32>
    %271 = vector.multi_reduction <add>, %270, %cst_134 [0] : vector<32x128xf32> to vector<128xf32>
    %272 = vector.shape_cast %271 : vector<128xf32> to vector<1x128xf32>
    %c8_i32_135 = arith.constant 8 : i32
    %273 = tpu.dynamic_rotate %272 by %c8_i32_135 dim 1 : vector<1x128xf32>, i32 -> vector<1x128xf32>
    %274 = arith.addf %272, %273 : vector<1x128xf32>
    %c16_i32_136 = arith.constant 16 : i32
    %275 = tpu.dynamic_rotate %274 by %c16_i32_136 dim 1 : vector<1x128xf32>, i32 -> vector<1x128xf32>
    %276 = arith.addf %274, %275 : vector<1x128xf32>
    %c32_i32_137 = arith.constant 32 : i32
    %277 = tpu.dynamic_rotate %276 by %c32_i32_137 dim 1 : vector<1x128xf32>, i32 -> vector<1x128xf32>
    %278 = arith.addf %276, %277 : vector<1x128xf32>
    %c64_i32_138 = arith.constant 64 : i32
    %279 = tpu.dynamic_rotate %278 by %c64_i32_138 dim 1 : vector<1x128xf32>, i32 -> vector<1x128xf32>
    %280 = arith.addf %278, %279 : vector<1x128xf32>
    %281 = arith.mulf %270, %270 : vector<32x128xf32>
    %cst_139 = arith.constant dense<0.000000e+00> : vector<128xf32>
    %282 = vector.multi_reduction <add>, %281, %cst_139 [0] : vector<32x128xf32> to vector<128xf32>
    %283 = vector.shape_cast %282 : vector<128xf32> to vector<1x128xf32>
    %c8_i32_140 = arith.constant 8 : i32
    %284 = tpu.dynamic_rotate %283 by %c8_i32_140 dim 1 : vector<1x128xf32>, i32 -> vector<1x128xf32>
    %285 = arith.addf %283, %284 : vector<1x128xf32>
    %c16_i32_141 = arith.constant 16 : i32
    %286 = tpu.dynamic_rotate %285 by %c16_i32_141 dim 1 : vector<1x128xf32>, i32 -> vector<1x128xf32>
    %287 = arith.addf %285, %286 : vector<1x128xf32>
    %c32_i32_142 = arith.constant 32 : i32
    %288 = tpu.dynamic_rotate %287 by %c32_i32_142 dim 1 : vector<1x128xf32>, i32 -> vector<1x128xf32>
    %289 = arith.addf %287, %288 : vector<1x128xf32>
    %c64_i32_143 = arith.constant 64 : i32
    %290 = tpu.dynamic_rotate %289 by %c64_i32_143 dim 1 : vector<1x128xf32>, i32 -> vector<1x128xf32>
    %291 = arith.addf %289, %290 : vector<1x128xf32>
    %cst_144 = arith.constant 0.001953125 : f32
    %292 = vector.broadcast %cst_144 : f32 to vector<1x128xf32>
    %293 = arith.mulf %280, %292 : vector<1x128xf32>
    %cst_145 = arith.constant 0.001953125 : f32
    %294 = vector.broadcast %cst_145 : f32 to vector<1x128xf32>
    %295 = arith.mulf %291, %294 : vector<1x128xf32>
    %296 = arith.mulf %293, %293 : vector<1x128xf32>
    %297 = arith.subf %295, %296 : vector<1x128xf32>
    %c4_146 = arith.constant 4 : index
    %c0_147 = arith.constant 0 : index
    %c0_148 = arith.constant 0 : index
    %298 = vector.load %arg2[%c4_146, %c0_147, %c0_148] : memref<6x1x128xf32, #tpu.memory_space<vmem>>, vector<1x1x128xf32>
    %299 = vector.shape_cast %298 : vector<1x1x128xf32> to vector<1x128xf32>
    %cst_149 = arith.constant 9.99999974E-6 : f32
    %300 = vector.broadcast %cst_149 : f32 to vector<1x128xf32>
    %301 = arith.addf %297, %300 : vector<1x128xf32>
    %302 = math.rsqrt %301 : vector<1x128xf32>
    %303 = arith.mulf %299, %302 : vector<1x128xf32>
    %c4_150 = arith.constant 4 : index
    %c0_151 = arith.constant 0 : index
    %c0_152 = arith.constant 0 : index
    %304 = vector.load %arg3[%c4_150, %c0_151, %c0_152] : memref<6x1x128xf32, #tpu.memory_space<vmem>>, vector<1x1x128xf32>
    %305 = vector.shape_cast %304 : vector<1x1x128xf32> to vector<1x128xf32>
    %306 = arith.mulf %293, %303 : vector<1x128xf32>
    %307 = arith.subf %305, %306 : vector<1x128xf32>
    %308 = vector.broadcast %303 : vector<1x128xf32> to vector<32x128xf32>
    %309 = arith.mulf %270, %308 : vector<32x128xf32>
    %310 = vector.broadcast %307 : vector<1x128xf32> to vector<32x128xf32>
    %311 = arith.addf %309, %310 : vector<32x128xf32>
    %cst_153 = arith.constant 0.000000e+00 : f32
    %312 = vector.broadcast %cst_153 : f32 to vector<32x128xf32>
    %313 = arith.maximumf %311, %312 : vector<32x128xf32>
    %c1_i32_154 = arith.constant 1 : i32
    %314 = tpu.dynamic_rotate %313 by %c1_i32_154 dim 0 : vector<32x128xf32>, i32 -> vector<32x128xf32>
    %315 = arith.mulf %314, %21 : vector<32x128xf32>
    %c31_i32_155 = arith.constant 31 : i32
    %316 = tpu.dynamic_rotate %313 by %c31_i32_155 dim 0 : vector<32x128xf32>, i32 -> vector<32x128xf32>
    %317 = arith.mulf %316, %25 : vector<32x128xf32>
    %c16 = arith.constant 16 : index
    %c0_156 = arith.constant 0 : index
    %c0_157 = arith.constant 0 : index
    %318 = vector.load %arg1[%c16, %c0_156, %c0_157] : memref<18x128x128xf32, #tpu.memory_space<vmem>>, vector<1x128x128xf32>
    %319 = vector.shape_cast %318 : vector<1x128x128xf32> to vector<128x128xf32>
    %cst_158 = arith.constant dense<0.000000e+00> : vector<32x128xf32>
    %320 = tpu.matmul %313, %319, %cst_158 {dimension_numbers = #tpu.dot_dimension_numbers<[1], [0], [0], [1], [0, 0, 1, 1], [], []>} : vector<32x128xf32>, vector<128x128xf32>, vector<32x128xf32> -> vector<32x128xf32>
    %c15 = arith.constant 15 : index
    %c0_159 = arith.constant 0 : index
    %c0_160 = arith.constant 0 : index
    %321 = vector.load %arg1[%c15, %c0_159, %c0_160] : memref<18x128x128xf32, #tpu.memory_space<vmem>>, vector<1x128x128xf32>
    %322 = vector.shape_cast %321 : vector<1x128x128xf32> to vector<128x128xf32>
    %cst_161 = arith.constant dense<0.000000e+00> : vector<32x128xf32>
    %323 = tpu.matmul %315, %322, %cst_161 {dimension_numbers = #tpu.dot_dimension_numbers<[1], [0], [0], [1], [0, 0, 1, 1], [], []>} : vector<32x128xf32>, vector<128x128xf32>, vector<32x128xf32> -> vector<32x128xf32>
    %324 = arith.addf %320, %323 : vector<32x128xf32>
    %c17 = arith.constant 17 : index
    %c0_162 = arith.constant 0 : index
    %c0_163 = arith.constant 0 : index
    %325 = vector.load %arg1[%c17, %c0_162, %c0_163] : memref<18x128x128xf32, #tpu.memory_space<vmem>>, vector<1x128x128xf32>
    %326 = vector.shape_cast %325 : vector<1x128x128xf32> to vector<128x128xf32>
    %cst_164 = arith.constant dense<0.000000e+00> : vector<32x128xf32>
    %327 = tpu.matmul %317, %326, %cst_164 {dimension_numbers = #tpu.dot_dimension_numbers<[1], [0], [0], [1], [0, 0, 1, 1], [], []>} : vector<32x128xf32>, vector<128x128xf32>, vector<32x128xf32> -> vector<32x128xf32>
    %328 = arith.addf %324, %327 : vector<32x128xf32>
    %cst_165 = arith.constant dense<0.000000e+00> : vector<128xf32>
    %329 = vector.multi_reduction <add>, %328, %cst_165 [0] : vector<32x128xf32> to vector<128xf32>
    %330 = vector.shape_cast %329 : vector<128xf32> to vector<1x128xf32>
    %c8_i32_166 = arith.constant 8 : i32
    %331 = tpu.dynamic_rotate %330 by %c8_i32_166 dim 1 : vector<1x128xf32>, i32 -> vector<1x128xf32>
    %332 = arith.addf %330, %331 : vector<1x128xf32>
    %c16_i32_167 = arith.constant 16 : i32
    %333 = tpu.dynamic_rotate %332 by %c16_i32_167 dim 1 : vector<1x128xf32>, i32 -> vector<1x128xf32>
    %334 = arith.addf %332, %333 : vector<1x128xf32>
    %c32_i32_168 = arith.constant 32 : i32
    %335 = tpu.dynamic_rotate %334 by %c32_i32_168 dim 1 : vector<1x128xf32>, i32 -> vector<1x128xf32>
    %336 = arith.addf %334, %335 : vector<1x128xf32>
    %c64_i32_169 = arith.constant 64 : i32
    %337 = tpu.dynamic_rotate %336 by %c64_i32_169 dim 1 : vector<1x128xf32>, i32 -> vector<1x128xf32>
    %338 = arith.addf %336, %337 : vector<1x128xf32>
    %339 = arith.mulf %328, %328 : vector<32x128xf32>
    %cst_170 = arith.constant dense<0.000000e+00> : vector<128xf32>
    %340 = vector.multi_reduction <add>, %339, %cst_170 [0] : vector<32x128xf32> to vector<128xf32>
    %341 = vector.shape_cast %340 : vector<128xf32> to vector<1x128xf32>
    %c8_i32_171 = arith.constant 8 : i32
    %342 = tpu.dynamic_rotate %341 by %c8_i32_171 dim 1 : vector<1x128xf32>, i32 -> vector<1x128xf32>
    %343 = arith.addf %341, %342 : vector<1x128xf32>
    %c16_i32_172 = arith.constant 16 : i32
    %344 = tpu.dynamic_rotate %343 by %c16_i32_172 dim 1 : vector<1x128xf32>, i32 -> vector<1x128xf32>
    %345 = arith.addf %343, %344 : vector<1x128xf32>
    %c32_i32_173 = arith.constant 32 : i32
    %346 = tpu.dynamic_rotate %345 by %c32_i32_173 dim 1 : vector<1x128xf32>, i32 -> vector<1x128xf32>
    %347 = arith.addf %345, %346 : vector<1x128xf32>
    %c64_i32_174 = arith.constant 64 : i32
    %348 = tpu.dynamic_rotate %347 by %c64_i32_174 dim 1 : vector<1x128xf32>, i32 -> vector<1x128xf32>
    %349 = arith.addf %347, %348 : vector<1x128xf32>
    %cst_175 = arith.constant 0.001953125 : f32
    %350 = vector.broadcast %cst_175 : f32 to vector<1x128xf32>
    %351 = arith.mulf %338, %350 : vector<1x128xf32>
    %cst_176 = arith.constant 0.001953125 : f32
    %352 = vector.broadcast %cst_176 : f32 to vector<1x128xf32>
    %353 = arith.mulf %349, %352 : vector<1x128xf32>
    %354 = arith.mulf %351, %351 : vector<1x128xf32>
    %355 = arith.subf %353, %354 : vector<1x128xf32>
    %c5_177 = arith.constant 5 : index
    %c0_178 = arith.constant 0 : index
    %c0_179 = arith.constant 0 : index
    %356 = vector.load %arg2[%c5_177, %c0_178, %c0_179] : memref<6x1x128xf32, #tpu.memory_space<vmem>>, vector<1x1x128xf32>
    %357 = vector.shape_cast %356 : vector<1x1x128xf32> to vector<1x128xf32>
    %cst_180 = arith.constant 9.99999974E-6 : f32
    %358 = vector.broadcast %cst_180 : f32 to vector<1x128xf32>
    %359 = arith.addf %355, %358 : vector<1x128xf32>
    %360 = math.rsqrt %359 : vector<1x128xf32>
    %361 = arith.mulf %357, %360 : vector<1x128xf32>
    %c5_181 = arith.constant 5 : index
    %c0_182 = arith.constant 0 : index
    %c0_183 = arith.constant 0 : index
    %362 = vector.load %arg3[%c5_181, %c0_182, %c0_183] : memref<6x1x128xf32, #tpu.memory_space<vmem>>, vector<1x1x128xf32>
    %363 = vector.shape_cast %362 : vector<1x1x128xf32> to vector<1x128xf32>
    %364 = arith.mulf %351, %361 : vector<1x128xf32>
    %365 = arith.subf %363, %364 : vector<1x128xf32>
    %366 = vector.broadcast %361 : vector<1x128xf32> to vector<32x128xf32>
    %367 = arith.mulf %328, %366 : vector<32x128xf32>
    %368 = vector.broadcast %365 : vector<1x128xf32> to vector<32x128xf32>
    %369 = arith.addf %367, %368 : vector<32x128xf32>
    %370 = arith.addf %255, %369 : vector<32x128xf32>
    %371 = arith.addf %0, %370 : vector<32x128xf32>
    %c0_184 = arith.constant 0 : index
    %c0_185 = arith.constant 0 : index
    %372 = vector.load %arg4[%c0_184, %c0_185] : memref<32x128xf32, #tpu.memory_space<vmem>>, vector<32x128xf32>
    tpu.vector_store %arg4[%c0_184, %c0_185], %371 {strides = array<i32>} : memref<32x128xf32, #tpu.memory_space<vmem>>, vector<32x128xf32>,
    return
  }
}

</mosaic_0001>

<bundles_post_ra>
// kernel: residual_maxi_block.1
= control target key start
LH: loop header
LB: loop body
LE: loop exit
PB: predicated region body
PF: predicated region fallthrough
CT: control target
= control target key end

     0   :  { %9 = vsyncpa [#allocation3], 0  ;;  %s5005_s0 = inlined_call_operand.vmem [shape: f32[32,128], index: 0, kind: input, shape index: {}]   ;;  %s5006_s1 = inlined_call_operand.hbm [shape: f32[18,128,128], index: 1, kind: input, shape index: {}]   ;;  %s5007_s2 = inlined_call_operand.hbm [shape: f32[6,1,128], index: 2, kind: input, shape index: {}]   ;;  %s5008_s3 = inlined_call_operand.hbm [shape: f32[6,1,128], index: 3, kind: input, shape index: {}]   ;;  %s5009_s4 = inlined_call_operand.vmem [shape: f32[32,128], index: 4, kind: output, shape index: {}]  }
   0x1   :  { %10 = vsyncpa [#allocation5], 0  ;;  %s4422_s15 = smov [#allocation4]   ;;  %s4352_s19 = scalar_lea.hbm %s5007_s2, 96 }
   0x2   :  { %s30_s16 = sshll.u32 %s4422_s15, 4  ;;  %p4353_p0 = scmp.ne.s32.totalorder %s5007_s2, %s4352_s19  ;;  %s31_s16 = int_to_ptr.vmem [resolvable:$true] %s30_s16 }
   0x3   :  { %p4356_p1 = scmp.lt.u32.totalorder %s4352_s19, %s5007_s2 }
   0x5   :  { %p4358_p2 = pnand %p4356_p1, %p4353_p0 }
   0x7   :  { %4361 = shalt.err (!%p4358_p2)
}
   0x8   :  { %s4362_s24 = scalar_lea.vmem %s31_s16, 96  ;;  %p4367_p4 = scmp.lt.s32.totalorder %s31_s16, %s31_s16 }
   0x9   :  { %p4363_p3 = scmp.ne.s32.totalorder %s31_s16, %s4362_s24  ;;  %p4368_p5 = scmp.lt.s32.totalorder %s4362_s24, %s4362_s24 }
   0xb   :  { %p4369_p6 = por %p4368_p5, %p4367_p4 }
   0xd   :  { %p4370_p7 = pnand %p4369_p6, %p4363_p3 }
   0xf   :  { %4373 = shalt.err (!%p4370_p7)
}
  0x10   :  { %s4423_s25 = smov 16   ;;  %s4424_s26 = smov 1  }
  0x11   :  { %36 = dma.hbm_to_vmem [thread:$0]  %s5007_s2, 96, %s31_s16, [#allocation5], %s4423_s25, %s4423_s25, %s4424_s26  }
  0x12   :  { %s4425_s29 = smov [#allocation2]   ;;  %s4374_s7 = scalar_lea.hbm %s5006_s1, 36864 }
  0x13   :  { %s18_s30 = sshll.u32 %s4425_s29, 4  ;;  %p4375_p8 = scmp.ne.s32.totalorder %s5006_s1, %s4374_s7  ;;  %s19_s30 = int_to_ptr.vmem [resolvable:$true] %s18_s30 }
  0x14   :  { %p4378_p9 = scmp.lt.u32.totalorder %s4374_s7, %s5006_s1 }
  0x16   :  { %p4380_p10 = pnand %p4378_p9, %p4375_p8 }
  0x18   :  { %4383 = shalt.err (!%p4380_p10)
}
  0x19   :  { %s4384_s12 = scalar_lea.vmem %s19_s30, 36864  ;;  %p4389_p12 = scmp.lt.s32.totalorder %s19_s30, %s19_s30 }
  0x1a   :  { %p4385_p11 = scmp.ne.s32.totalorder %s19_s30, %s4384_s12  ;;  %p4390_p13 = scmp.lt.s32.totalorder %s4384_s12, %s4384_s12 }
  0x1c   :  { %p4391_p0 = por %p4390_p13, %p4389_p12 }
  0x1e   :  { %p4392_p1 = pnand %p4391_p0, %p4385_p11 }
  0x20   :  { %4395 = shalt.err (!%p4392_p1)
}
  0x21   :  { %s4426_s2 = smov 128   ;;  %s4427_s13 = smov 8  }
  0x22   :  { %24 = dma.hbm_to_vmem [thread:$0]  %s5006_s1, 36864, %s19_s30, [#allocation3], %s4426_s2, %s4426_s2, %s4427_s13  }
  0x23   :  { %s4428_s16 = smov [#allocation6]   ;;  %s4396_s20 = scalar_lea.hbm %s5008_s3, 96 }
  0x24   :  { %s42_s17 = sshll.u32 %s4428_s16, 4  ;;  %p4397_p2 = scmp.ne.s32.totalorder %s5008_s3, %s4396_s20  ;;  %s43_s17 = int_to_ptr.vmem [resolvable:$true] %s42_s17 }
  0x25   :  { %p4400_p3 = scmp.lt.u32.totalorder %s4396_s20, %s5008_s3 }
  0x27   :  { %p4402_p4 = pnand %p4400_p3, %p4397_p2 }
  0x29   :  { %4405 = shalt.err (!%p4402_p4)
}
  0x2a   :  { %s4406_s27 = scalar_lea.vmem %s43_s17, 96  ;;  %p4411_p6 = scmp.lt.s32.totalorder %s43_s17, %s43_s17 }
  0x2b   :  { %p4407_p5 = scmp.ne.s32.totalorder %s43_s17, %s4406_s27  ;;  %p4412_p7 = scmp.lt.s32.totalorder %s4406_s27, %s4406_s27 }
  0x2d   :  { %p4413_p8 = por %p4412_p7, %p4411_p6 }
  0x2f   :  { %p4414_p9 = pnand %p4413_p8, %p4407_p5 }
  0x31   :  { %4417 = shalt.err (!%p4414_p9)
}
  0x32   :  { %48 = dma.hbm_to_vmem [thread:$0]  %s5008_s3, 96, %s43_s17, [#allocation5], %s4423_s25, %s4423_s25, %s4424_s26  }
  0x33   :  { %4418 = dma.done.wait [#allocation3], 36864  }
  0x34   :  { %4419 = vsyncadd [#allocation3], 4294930432 }
  0x35   :  { %4420 = dma.done.wait [#allocation5], 192  }
  0x36   :  { %4421 = vsyncadd [#allocation5], 4294967104  ;;  %v62_v0 = vlaneseq  ;;  %v182_v6 = vld [vmem:[#allocation2] sm:$0xff]  ;;  %v183_v7 = vld [vmem:[#allocation2 + $0x8] sm:$0xff]  ;;  %v4429_v15 = vmov 0.0   ;;  %s4430_s9 = smov 32  }
  0x37   :  { %v184_v8 = vld [vmem:[#allocation2 + $0x10] sm:$0xff]  ;;  %v3702_v10 = vpack.c.bf16 %v183_v7, %v182_v6  ;;  %v185_v11 = vld [vmem:[#allocation2 + $0x18] sm:$0xff]  ;;  %v186_v13 = vld [vmem:[#allocation2 + $0x20] sm:$0xff]  ;;  %s4431_s10 = smov 64  }
  0x38   :  { %v4500_v1 = vshrl.u32 %v62_v0, 7  ;;  %v3706_v12 = vpack.c.bf16 %v185_v11, %v184_v8  ;;  %v187_v14 = vld [vmem:[#allocation2 + $0x28] sm:$0xff]  ;;  %v4512_v19 = vld [vmem:[%s5005_s0] sm:$0xff]  ;;  %v4517_v20 = vld [vmem:[%s5005_s0 + $0x18] sm:$0xff] }
  0x39   :  { %3703 = vmatprep.subr.bf16.mxu0 %v3702_v10  ;;  %v3710_v18 = vpack.c.bf16 %v187_v14, %v186_v13  ;;  %v188_v21 = vld [vmem:[#allocation2 + $0x30] sm:$0xff]  ;;  %v189_v22 = vld [vmem:[#allocation2 + $0x38] sm:$0xff]  ;;  %v139_v24 = vrot.slane %v4512_v19, 7  ;;  %v142_v25 = vrot.slane %v4517_v20, 7  ;;  %v190_v29 = vld [vmem:[#allocation2 + $0x40] sm:$0xff] }
  0x3a   :  { %v64_v2 = vadd.s32 8, %v4500_v1  ;;  %v66_v3 = vadd.s32 24, %v4500_v1  ;;  %v71_v4 = vand.u32 15, %v4500_v1  ;;  %3705 = vmatpush3.bf16.msra.mxu0 %v3702_v10  ;;  %vm143_vm3 = vcmp.lt.s32.totalorder %v4500_v1, 1  ;;  %v191_v30 = vld [vmem:[#allocation2 + $0x48] sm:$0xff]  ;;  %v192_v32 = vld [vmem:[#allocation2 + $0x50] sm:$0xff] }
  0x3b   :  { %3707 = vmatprep.subr.bf16.mxu0 %v3706_v12  ;;  %v147_v26 = vsel %vm143_vm3, %v142_v25, %v139_v24  ;;  %v3714_v27 = vpack.c.bf16 %v189_v22, %v188_v21  ;;  %v3718_v31 = vpack.c.bf16 %v191_v30, %v190_v29  ;;  %v193_v33 = vld [vmem:[#allocation2 + $0x58] sm:$0xff]  ;;  %v194_v35 = vld [vmem:[#allocation2 + $0x60] sm:$0xff]  ;;  %v195_v36 = vld [vmem:[#allocation2 + $0x68] sm:$0xff]  ;;  %v65_v37 = vadd.s32 16, %v4500_v1 }
  0x3c   :  { %v78_v5 = vand.u32 15, %v64_v2  ;;  %v92_v9 = vand.u32 15, %v66_v3  ;;  %vm115_vm1 = vcmp.gt.s32.totalorder %v71_v4, 0  ;;  %v3722_v34 = vpack.c.bf16 %v193_v33, %v192_v32  ;;  %v196_v39 = vld [vmem:[#allocation2 + $0x70] sm:$0xff]  ;;  %v197_v40 = vld [vmem:[#allocation2 + $0x78] sm:$0xff]  ;;  %v4536_v43 = vld [vmem:[%s5005_s0 + $0x8] sm:$0xff] }
  0x3d   :  { %v4520_v23 = vsel %vm115_vm1, 1.0, %v4429_v15  ;;  %v3726_v38 = vpack.c.bf16 %v195_v36, %v194_v35  ;;  %v4531_v41 = vld [vmem:[%s5005_s0 + $0x10] sm:$0xff]  ;;  %v85_v42 = vand.u32 15, %v65_v37  ;;  %v3730_v44 = vpack.c.bf16 %v197_v40, %v196_v39  ;;  %v166_v46 = vld [vmem:[#allocation2 + $0x80] sm:$0xff]  ;;  %v167_v47 = vld [vmem:[#allocation2 + $0x88] sm:$0xff] }
  0x3e   :  { %vm128_vm0 = vcmp.lt.s32.totalorder %v78_v5, 15  ;;  %vm130_vm2 = vcmp.lt.s32.totalorder %v92_v9, 15  ;;  %3709 = vmatpush3.bf16.msra.mxu0 %v3706_v12  ;;  %v148_v28 = vmul.f32 %v4520_v23, %v147_v26  ;;  %v141_v45 = vrot.slane %v4531_v41, 7  ;;  %v168_v52 = vld [vmem:[#allocation2 + $0x90] sm:$0xff]  ;;  %v169_v53 = vld [vmem:[#allocation2 + $0x98] sm:$0xff]  ;;  %v170_v57 = vld [vmem:[#allocation2 + $0xa0] sm:$0xff] }
  0x3f   :  { %v4505_v16 = vsel %vm128_vm0, 1.0, %v4429_v15  ;;  %v4507_v17 = vsel %vm130_vm2, 1.0, %v4429_v15  ;;  %3711 = vmatprep.subr.bf16.mxu0 %v3710_v18  ;;  %vm117_vm4 = vcmp.gt.s32.totalorder %v85_v42, 0  ;;  %v140_v48 = vrot.slane %v4536_v43, 7  ;;  %v171_v58 = vld [vmem:[#allocation2 + $0xa8] sm:$0xff]  ;;  %v172_v61 = vld [vmem:[#allocation2 + $0xb0] sm:$0xff] }
  0x40   :  { %3050 = vmatprep.mubr.f32.mxu0 %v148_v28  ;;  %v3734_v49 = vpack.c.bf16 %v167_v47, %v166_v46  ;;  %v4540_v50 = vsel %vm117_vm4, 1.0, %v4429_v15  ;;  %v3738_v56 = vpack.c.bf16 %v169_v53, %v168_v52  ;;  %v144_v59 = vsel %vm143_vm3, %v141_v45, %v142_v25  ;;  %v173_v62 = vld [vmem:[#allocation2 + $0xb8] sm:$0xff]  ;;  %v174_v0 = vld [vmem:[#allocation2 + $0xc0] sm:$0xff]  ;;  %v175_v2 = vld [vmem:[#allocation2 + $0xc8] sm:$0xff] }
  0x41   :  { %v145_v51 = vsel %vm143_vm3, %v140_v48, %v141_v45  ;;  %v146_v54 = vsel %vm143_vm3, %v139_v24, %v140_v48  ;;  %v3742_v60 = vpack.c.bf16 %v171_v58, %v170_v57  ;;  %v3746_v63 = vpack.c.bf16 %v173_v62, %v172_v61  ;;  %v176_v4 = vld [vmem:[#allocation2 + $0xd0] sm:$0xff]  ;;  %v177_v5 = vld [vmem:[#allocation2 + $0xd8] sm:$0xff]  ;;  %v178_v7 = vld [vmem:[#allocation2 + $0xe0] sm:$0xff] }
  0x42   :  { %3713 = vmatpush3.bf16.msra.mxu0 %v3710_v18  ;;  %v150_v55 = vmul.f32 %v4540_v50, %v145_v51  ;;  %v3750_v3 = vpack.c.bf16 %v175_v2, %v174_v0  ;;  %v3754_v6 = vpack.c.bf16 %v177_v5, %v176_v4  ;;  %v179_v8 = vld [vmem:[#allocation2 + $0xe8] sm:$0xff]  ;;  %v180_v10 = vld [vmem:[#allocation2 + $0xf0] sm:$0xff]  ;;  %v181_v11 = vld [vmem:[#allocation2 + $0xf8] sm:$0xff]  ;;  %v152_v24 = vrot.slane %v4512_v19, 1 }
  0x43   :  { %3715 = vmatprep.subr.bf16.mxu0 %v3714_v27  ;;  %v3758_v9 = vpack.c.bf16 %v179_v8, %v178_v7  ;;  %v3762_v12 = vpack.c.bf16 %v181_v11, %v180_v10  ;;  %v369_v13 = vld [vmem:[#allocation2 + $0x100] sm:$0xff]  ;;  %v370_v14 = vld [vmem:[#allocation2 + $0x108] sm:$0xff]  ;;  %v371_v18 = vld [vmem:[#allocation2 + $0x110] sm:$0xff]  ;;  %v153_v25 = vrot.slane %v4536_v43, 1  ;;  %vm156_vm5 = vcmp.lt.s32.totalorder %v4500_v1, 7 }
  0x44   :  { %v3766_v15 = vpack.c.bf16 %v370_v14, %v369_v13  ;;  %v372_v21 = vld [vmem:[#allocation2 + $0x118] sm:$0xff]  ;;  %v373_v26 = vld [vmem:[#allocation2 + $0x120] sm:$0xff]  ;;  %v375_v30 = vld [vmem:[#allocation2 + $0x130] sm:$0xff]  ;;  %v154_v46 = vrot.slane %v4531_v41, 1 }
  0x45   :  { %v3770_v22 = vpack.c.bf16 %v372_v21, %v371_v18  ;;  %v159_v29 = vsel %vm156_vm5, %v152_v24, %v153_v25  ;;  %v377_v33 = vld [vmem:[#allocation2 + $0x140] sm:$0xff]  ;;  %v379_v36 = vld [vmem:[#allocation2 + $0x150] sm:$0xff]  ;;  %v380_v37 = vld [vmem:[#allocation2 + $0x158] sm:$0xff] }
  0x46   :  { %3717 = vmatpush3.bf16.msra.mxu0 %v3714_v27  ;;  %v374_v27 = vld [vmem:[#allocation2 + $0x128] sm:$0xff]  ;;  %v381_v39 = vld [vmem:[#allocation2 + $0x160] sm:$0xff]  ;;  %v384_v45 = vld [vmem:[#allocation2 + $0x178] sm:$0xff]  ;;  %v158_v48 = vsel %vm156_vm5, %v153_v25, %v154_v46 }
  0x47   :  { %3719 = vmatprep.subr.bf16.mxu0 %v3718_v31  ;;  %v3774_v28 = vpack.c.bf16 %v374_v27, %v373_v26  ;;  %v382_v40 = vld [vmem:[#allocation2 + $0x168] sm:$0xff]  ;;  %v162_v51 = vmul.f32 %v4505_v16, %v158_v48 }
  0x48   :  { %v3790_v42 = vpack.c.bf16 %v382_v40, %v381_v39  ;;  %v601_v39 = vld [vmem:[#allocation2 + $0x1a0] sm:$0xff]  ;;  %v602_v40 = vld [vmem:[#allocation2 + $0x1a8] sm:$0xff] }
  0x4a   :  { %3721 = vmatpush3.bf16.msra.mxu0 %v3718_v31  ;;  %v376_v31 = vld [vmem:[#allocation2 + $0x138] sm:$0xff] }
  0x4b   :  { %3723 = vmatprep.subr.bf16.mxu0 %v3722_v34  ;;  %v3778_v32 = vpack.c.bf16 %v376_v31, %v375_v30  ;;  %v597_v31 = vld [vmem:[#allocation2 + $0x180] sm:$0xff] }
  0x4e   :  { %3725 = vmatpush3.bf16.msra.mxu0 %v3722_v34  ;;  %v378_v34 = vld [vmem:[#allocation2 + $0x148] sm:$0xff] }
  0x4f   :  { %3727 = vmatprep.subr.bf16.mxu0 %v3726_v38  ;;  %v3782_v35 = vpack.c.bf16 %v378_v34, %v377_v33  ;;  %v599_v34 = vld [vmem:[#allocation2 + $0x190] sm:$0xff] }
  0x52   :  { %3729 = vmatpush3.bf16.msra.mxu0 %v3726_v38  ;;  %v3786_v38 = vpack.c.bf16 %v380_v37, %v379_v36 }
  0x53   :  { %3731 = vmatprep.subr.bf16.mxu0 %v3730_v44 }
  0x56   :  { %3733 = vmatpush3.bf16.msra.mxu0 %v3730_v44  ;;  %v383_v44 = vld [vmem:[#allocation2 + $0x170] sm:$0xff] }
  0x57   :  { %3735 = vmatprep.subr.bf16.mxu0 %v3734_v49  ;;  %v3794_v47 = vpack.c.bf16 %v384_v45, %v383_v44  ;;  %v3806_v44 = vpack.c.bf16 %v602_v40, %v601_v39 }
  0x59   :  { %3051 = vmatmul.mubr.f32.vlgmr.msra.gmra.mrb[0].mxu0 %v146_v54 }
  0x5a   :  { %3737 = vmatpush3.bf16.msra.mxu0 %v3734_v49  ;;  %3053 = vmatprep.mubr.f32.mxu0 %v150_v55  ;;  %v155_v49 = vrot.slane %v4517_v20, 1 }
  0x5b   :  { %3739 = vmatprep.subr.bf16.mxu0 %v3738_v56 }
  0x5c   :  { %v160_v52 = vsel %vm156_vm5, %v155_v49, %v152_v24  ;;  %v157_v53 = vsel %vm156_vm5, %v154_v46, %v155_v49  ;;  %v603_v46 = vld [vmem:[#allocation2 + $0x1b0] sm:$0xff]  ;;  %v605_v49 = vld [vmem:[#allocation2 + $0x1c0] sm:$0xff] }
  0x5d   :  { %3054 = vmatmul.mubr.f32.gmra.mrb[2].mxu0 %v144_v59  ;;  %v164_v54 = vmul.f32 %v4507_v17, %v160_v52 }
  0x5e   :  { %3741 = vmatpush3.bf16.msra.mxu0 %v3738_v56  ;;  %3088 = vmatprep.mubr.f32.mxu0 %v4512_v19 }
  0x5f   :  { %3743 = vmatprep.subr.bf16.mxu0 %v3742_v60 }
  0x62   :  { %3745 = vmatpush3.bf16.msra.mxu0 %v3742_v60 }
  0x63   :  { %3747 = vmatprep.subr.bf16.mxu0 %v3746_v63 }
  0x66   :  { %3749 = vmatpush3.bf16.msra.mxu0 %v3746_v63 }
  0x67   :  { %3751 = vmatprep.subr.bf16.mxu0 %v3750_v3 }
  0x6a   :  { %3753 = vmatpush3.bf16.msra.mxu0 %v3750_v3 }
  0x6b   :  { %3755 = vmatprep.subr.bf16.mxu0 %v3754_v6 }
  0x6e   :  { %3757 = vmatpush3.bf16.msra.mxu0 %v3754_v6 }
  0x6f   :  { %3759 = vmatprep.subr.bf16.mxu0 %v3758_v9 }
  0x72   :  { %3761 = vmatpush3.bf16.msra.mxu0 %v3758_v9 }
  0x73   :  { %3763 = vmatprep.subr.bf16.mxu0 %v3762_v12 }
  0x76   :  { %3765 = vmatpush3.bf16.msra.mxu0 %v3762_v12 }
  0x77   :  { %3767 = vmatprep.subr.bf16.mxu0 %v3766_v15 }
  0x79   :  { %3089 = vmatmul.mubr.f32.vlgmr.msra.gmra.mrb[0].mxu0 %v4536_v43 }
  0x7a   :  { %3769 = vmatpush3.bf16.msra.mxu0 %v3766_v15  ;;  %3091 = vmatprep.mubr.f32.mxu0 %v4531_v41 }
  0x7b   :  { %3771 = vmatprep.subr.bf16.mxu0 %v3770_v22 }
  0x7d   :  { %3092 = vmatmul.mubr.f32.gmra.mrb[2].mxu0 %v4517_v20 }
  0x7e   :  { %3773 = vmatpush3.bf16.msra.mxu0 %v3770_v22  ;;  %3126 = vmatprep.mubr.f32.mxu0 %v159_v29 }
  0x7f   :  { %3775 = vmatprep.subr.bf16.mxu0 %v3774_v28 }
  0x82   :  { %3777 = vmatpush3.bf16.msra.mxu0 %v3774_v28 }
  0x83   :  { %3779 = vmatprep.subr.bf16.mxu0 %v3778_v32 }
  0x86   :  { %3781 = vmatpush3.bf16.msra.mxu0 %v3778_v32  ;;  %v598_v32 = vld [vmem:[#allocation2 + $0x188] sm:$0xff] }
  0x87   :  { %3783 = vmatprep.subr.bf16.mxu0 %v3782_v35  ;;  %v3798_v33 = vpack.c.bf16 %v598_v32, %v597_v31 }
  0x89   :  { %3799 = vmatprep.subr.bf16.mxu1 %v3798_v33 }
  0x8a   :  { %3785 = vmatpush3.bf16.msra.mxu0 %v3782_v35  ;;  %3801 = vmatpush3.bf16.msra.mxu1 %v3798_v33  ;;  %v600_v35 = vld [vmem:[#allocation2 + $0x198] sm:$0xff] }
  0x8b   :  { %3787 = vmatprep.subr.bf16.mxu0 %v3786_v38  ;;  %v3802_v37 = vpack.c.bf16 %v600_v35, %v599_v34 }
  0x8d   :  { %3803 = vmatprep.subr.bf16.mxu1 %v3802_v37 }
  0x8e   :  { %3789 = vmatpush3.bf16.msra.mxu0 %v3786_v38  ;;  %3805 = vmatpush3.bf16.msra.mxu1 %v3802_v37 }
  0x8f   :  { %3791 = vmatprep.subr.bf16.mxu0 %v3790_v42  ;;  %3807 = vmatprep.subr.bf16.mxu1 %v3806_v44 }
  0x92   :  { %3793 = vmatpush3.bf16.msra.mxu0 %v3790_v42  ;;  %3809 = vmatpush3.bf16.msra.mxu1 %v3806_v44  ;;  %v582_v44 = vld [vmem:[#allocation2 + $0x210] sm:$0xff] }
  0x93   :  { %3795 = vmatprep.subr.bf16.mxu0 %v3794_v47 }
  0x96   :  { %3797 = vmatpush3.bf16.msra.mxu0 %v3794_v47  ;;  %v604_v47 = vld [vmem:[#allocation2 + $0x1b8] sm:$0xff] }
  0x97   :  { %v3810_v48 = vpack.c.bf16 %v604_v47, %v603_v46 }
  0x99   :  { %3127 = vmatmul.mubr.f32.vlgmr.msra.gmra.mrb[0].mxu0 %v162_v51  ;;  %3811 = vmatprep.subr.bf16.mxu1 %v3810_v48  ;;  %v606_v51 = vld [vmem:[#allocation2 + $0x1c8] sm:$0xff] }
  0x9a   :  { %3129 = vmatprep.mubr.f32.mxu0 %v157_v53  ;;  %3813 = vmatpush3.bf16.msra.mxu1 %v3810_v48  ;;  %v3814_v52 = vpack.c.bf16 %v606_v51, %v605_v49  ;;  %v607_v53 = vld [vmem:[#allocation2 + $0x1d0] sm:$0xff] }
  0x9c   :  { %3815 = vmatprep.subr.bf16.mxu1 %v3814_v52 }
  0x9d   :  { %3130 = vmatmul.mubr.f32.gmra.mrb[2].mxu0 %v164_v54  ;;  %v608_v54 = vld [vmem:[#allocation2 + $0x1d8] sm:$0xff] }
  0x9e   :  { %3817 = vmatpush3.bf16.msra.mxu1 %v3814_v52 }
 0x16c   :  { %v4568_v55 = vpop.f32.mrb[0].mxu0 }
 0x16d   :  { %v496_v56 = vmul.f32 %v4568_v55, %v4568_v55  ;;  %v4572_v57 = vpop.f32.mrb[1].mxu0 }
 0x16e   :  { %v474_v58 = vadd.f32 %v4568_v55, %v4572_v57  ;;  %v495_v59 = vmul.f32 %v4572_v57, %v4572_v57 }
 0x170   :  { %v499_v60 = vadd.f32 %v496_v56, %v495_v59  ;;  %v4578_v61 = vpop.f32.mrb[2].mxu0  ;;  %v3818_v56 = vpack.c.bf16 %v608_v54, %v607_v53  ;;  %v610_v59 = vld [vmem:[#allocation2 + $0x1e8] sm:$0xff] }
 0x171   :  { %v4580_v62 = vpop.f32.mrb[3].mxu0  ;;  %v498_v2 = vmul.f32 %v4578_v61, %v4578_v61 }
 0x172   :  { %v475_v63 = vadd.f32 %v474_v58, %v4580_v62  ;;  %v497_v0 = vmul.f32 %v4580_v62, %v4580_v62  ;;  %v609_v58 = vld [vmem:[#allocation2 + $0x1e0] sm:$0xff]  ;;  %3819 = vmatprep.subr.bf16.mxu1 %v3818_v56 }
 0x173   :  { %3821 = vmatpush3.bf16.msra.mxu1 %v3818_v56 }
 0x174   :  { %v476_v3 = vadd.f32 %v4578_v61, %v475_v63  ;;  %v500_v4 = vadd.f32 %v499_v60, %v497_v0  ;;  %v611_v60 = vld [vmem:[#allocation2 + $0x1f0] sm:$0xff]  ;;  %v3822_v63 = vpack.c.bf16 %v610_v59, %v609_v58  ;;  %v612_v0 = vld [vmem:[#allocation2 + $0x1f8] sm:$0xff] }
 0x176   :  { %v477_v5 = vrot.slane %v476_v3, 4  ;;  %v501_v6 = vadd.f32 %v500_v4, %v498_v2  ;;  %3823 = vmatprep.subr.bf16.mxu1 %v3822_v63  ;;  %v3826_v2 = vpack.c.bf16 %v612_v0, %v611_v60  ;;  %v581_v4 = vld [vmem:[#allocation2 + $0x208] sm:$0xff] }
 0x177   :  { %3825 = vmatpush3.bf16.msra.mxu1 %v3822_v63 }
 0x178   :  { %v478_v7 = vadd.f32 %v477_v5, %v476_v3  ;;  %v502_v8 = vrot.slane %v501_v6, 4  ;;  %3827 = vmatprep.subr.bf16.mxu1 %v3826_v2  ;;  %v580_v3 = vld [vmem:[#allocation2 + $0x200] sm:$0xff] }
 0x179   :  { %v3830_v5 = vpack.c.bf16 %v581_v4, %v580_v3  ;;  %v585_v3 = vld [vmem:[#allocation2 + $0x228] sm:$0xff] }
 0x17a   :  { %v479_v9 = vrot.slane %v478_v7, 2  ;;  %v503_v10 = vadd.f32 %v502_v8, %v501_v6 }
 0x17b   :  { %3829 = vmatpush3.bf16.msra.mxu1 %v3826_v2  ;;  %v584_v2 = vld [vmem:[#allocation2 + $0x220] sm:$0xff] }
 0x17c   :  { %v480_v11 = vadd.f32 %v479_v9, %v478_v7  ;;  %v504_v12 = vrot.slane %v503_v10, 2  ;;  %3831 = vmatprep.subr.bf16.mxu1 %v3830_v5  ;;  %v3838_v4 = vpack.c.bf16 %v585_v3, %v584_v2 }
 0x17e   :  { %v481_v13 = vrot.slane %v480_v11, 1  ;;  %v505_v14 = vadd.f32 %v504_v12, %v503_v10 }
 0x180   :  { %v482_v15 = vadd.f32 %v481_v13, %v480_v11  ;;  %v506_v18 = vrot.slane %v505_v14, 1 }
 0x182   :  { %483 = vrot.lane.b32.xlu0 %v482_v15, %s4427_s13  ;;  %v507_v21 = vadd.f32 %v506_v18, %v505_v14  ;;  %v4597_v18 = vsub.s32 0, %v4500_v1  ;;  %v2256_v1 = vld [vmem:[#allocation2 + $0x840] sm:$0xff] }
 0x186   :  { %508 = vrot.lane.b32.xlu0 %v507_v21, %s4427_s13 }
 0x1f4   :  { %v484_v22 = vpop.permute.xlu0 %483 }
 0x1f5   :  { %v485_v24 = vadd.f32 %v484_v22, %v482_v15  ;;  %v524_v15 = vld [vmem:[#allocation4] sm:$0x1] }
 0x1f7   :  { %486 = vrot.lane.b32.xlu1 %v485_v24, %s4423_s25 }
 0x1f8   :  { %v509_v25 = vpop.permute.xlu0 %508 }
 0x1f9   :  { %v510_v26 = vadd.f32 %v509_v25, %v507_v21 }
 0x1fb   :  { %511 = vrot.lane.b32.xlu1 %v510_v26, %s4423_s25 }
 0x269   :  { %v487_v27 = vpop.permute.xlu1 %486 }
 0x26a   :  { %v488_v28 = vadd.f32 %v487_v27, %v485_v24  ;;  %v528_v24 = vld [vmem:[#allocation6] sm:$0x1] }
 0x26c   :  { %489 = vrot.lane.b32.xlu0 %v488_v28, %s4430_s9 }
 0x26d   :  { %v512_v29 = vpop.permute.xlu1 %511 }
 0x26e   :  { %v513_v30 = vadd.f32 %v512_v29, %v510_v26 }
 0x270   :  { %514 = vrot.lane.b32.xlu1 %v513_v30, %s4430_s9 }
 0x2de   :  { %v490_v36 = vpop.permute.xlu0 %489 }
 0x2df   :  { %v491_v38 = vadd.f32 %v490_v36, %v488_v28 }
 0x2e1   :  { %492 = vrot.lane.b32.xlu0 %v491_v38, %s4431_s10 }
 0x2e2   :  { %v515_v42 = vpop.permute.xlu1 %514 }
 0x2e3   :  { %v516_v45 = vadd.f32 %v515_v42, %v513_v30 }
 0x2e5   :  { %517 = vrot.lane.b32.xlu1 %v516_v45, %s4431_s10 }
 0x353   :  { %v493_v6 = vpop.permute.xlu0 %492 }
 0x354   :  { %v494_v7 = vadd.f32 %v493_v6, %v491_v38  ;;  %v586_v6 = vld [vmem:[#allocation2 + $0x230] sm:$0xff] }
 0x356   :  { %v520_v8 = vmul.f32 0.001953125, %v494_v7  ;;  %v587_v7 = vld [vmem:[#allocation2 + $0x238] sm:$0xff] }
 0x357   :  { %v518_v9 = vpop.permute.xlu1 %517 }
 0x358   :  { %v519_v10 = vadd.f32 %v518_v9, %v516_v45  ;;  %v522_v11 = vmul.f32 %v520_v8, %v520_v8  ;;  %v588_v9 = vld [vmem:[#allocation2 + $0x240] sm:$0xff] }
 0x35a   :  { %v521_v12 = vmul.f32 0.001953125, %v519_v10  ;;  %v589_v10 = vld [vmem:[#allocation2 + $0x248] sm:$0xff] }
 0x35c   :  { %v523_v13 = vsub.f32 %v521_v12, %v522_v11  ;;  %v3846_v11 = vpack.c.bf16 %v589_v10, %v588_v9  ;;  %v590_v12 = vld [vmem:[#allocation2 + $0x250] sm:$0xff] }
 0x35e   :  { %v525_v14 = vadd.f32 1e-05, %v523_v13  ;;  %v591_v13 = vld [vmem:[#allocation2 + $0x258] sm:$0xff] }
 0x360   :  { %4336 = vrsqrt.f32 %v525_v14  ;;  %v592_v14 = vld [vmem:[#allocation2 + $0x260] sm:$0xff] }
 0x36a   :  { %v4337_v21 = vpop.eup %4336 }
 0x36b   :  { %v527_v22 = vmul.f32 %v4337_v21, %v524_v15  ;;  %v593_v15 = vld [vmem:[#allocation2 + $0x268] sm:$0xff] }
 0x36c   :  { %v3854_v21 = vpack.c.bf16 %v593_v15, %v592_v14 }
 0x36d   :  { %v529_v25 = vmul.f32 %v527_v22, %v520_v8  ;;  %v535_v26 = vrot.slane %v527_v22, %v4597_v18  ;;  %v3842_v8 = vpack.c.bf16 %v587_v7, %v586_v6  ;;  %v594_v22 = vld [vmem:[#allocation2 + $0x270] sm:$0xff] }
 0x36f   :  { %v530_v27 = vsub.f32 %v528_v24, %v529_v25  ;;  %v537_v28 = vmul.f32 %v535_v26, %v4572_v57  ;;  %v540_v29 = vmul.f32 %v4578_v61, %v535_v26  ;;  %v538_v31 = vmul.f32 %v4568_v55, %v535_v26  ;;  %v595_v24 = vld [vmem:[#allocation2 + $0x278] sm:$0xff] }
 0x370   :  { %v539_v32 = vmul.f32 %v535_v26, %v4580_v62  ;;  %v583_v62 = vld [vmem:[#allocation2 + $0x218] sm:$0xff]  ;;  %v3858_v25 = vpack.c.bf16 %v595_v24, %v594_v22  ;;  %v784_v26 = vld [vmem:[#allocation2 + $0x280] sm:$0xff] }
 0x371   :  { %v545_v30 = vrot.slane %v530_v27, %v4597_v18  ;;  %v3834_v59 = vpack.c.bf16 %v583_v62, %v582_v44  ;;  %v785_v27 = vld [vmem:[#allocation2 + $0x288] sm:$0xff]  ;;  %v796_v44 = vld [vmem:[#allocation2 + $0x2e0] sm:$0xff] }
 0x372   :  { %v797_v62 = vld [vmem:[#allocation2 + $0x2e8] sm:$0xff] }
 0x373   :  { %v547_v33 = vadd.f32 %v545_v30, %v537_v28  ;;  %v550_v34 = vadd.f32 %v545_v30, %v540_v29  ;;  %v548_v35 = vadd.f32 %v545_v30, %v538_v31  ;;  %v549_v36 = vadd.f32 %v545_v30, %v539_v32  ;;  %v786_v29 = vld [vmem:[#allocation2 + $0x290] sm:$0xff]  ;;  %v787_v30 = vld [vmem:[#allocation2 + $0x298] sm:$0xff]  ;;  %v788_v32 = vld [vmem:[#allocation2 + $0x2a0] sm:$0xff] }
 0x374   :  { %v3862_v28 = vpack.c.bf16 %v785_v27, %v784_v26  ;;  %v3866_v31 = vpack.c.bf16 %v787_v30, %v786_v29 }
 0x375   :  { %v551_v37 = vmax.f32 %v547_v33, 0.0  ;;  %v4605_v38 = vmax.f32 %v550_v34, 0.0  ;;  %v4607_v39 = vmax.f32 %v548_v35, 0.0  ;;  %v4609_v40 = vmax.f32 %v549_v36, 0.0  ;;  %v789_v33 = vld [vmem:[#allocation2 + $0x2a8] sm:$0xff]  ;;  %v790_v35 = vld [vmem:[#allocation2 + $0x2b0] sm:$0xff] }
 0x376   :  { %v3870_v34 = vpack.c.bf16 %v789_v33, %v788_v32  ;;  %v791_v36 = vld [vmem:[#allocation2 + $0x2b8] sm:$0xff]  ;;  %v1014_v32 = vld [vmem:[#allocation2 + $0x300] sm:$0xff]  ;;  %v1015_v33 = vld [vmem:[#allocation2 + $0x308] sm:$0xff] }
 0x377   :  { %v555_v57 = vrot.slane %v551_v37, 7  ;;  %v558_v61 = vrot.slane %v4605_v38, 7  ;;  %v556_v42 = vrot.slane %v4607_v39, 7  ;;  %v557_v55 = vrot.slane %v4609_v40, 7 }
 0x378   :  { %v567_v45 = vrot.slane %v551_v37, 1  ;;  %v568_v46 = vrot.slane %v4607_v39, 1  ;;  %v569_v47 = vrot.slane %v4609_v40, 1  ;;  %v570_v48 = vrot.slane %v4605_v38, 1 }
 0x379   :  { %v562_v49 = vsel %vm143_vm3, %v558_v61, %v555_v57  ;;  %v561_v51 = vsel %vm143_vm3, %v555_v57, %v556_v42  ;;  %v560_v52 = vsel %vm143_vm3, %v556_v42, %v557_v55  ;;  %v559_v53 = vsel %vm143_vm3, %v557_v55, %v558_v61  ;;  %v792_v57 = vld [vmem:[#allocation2 + $0x2c0] sm:$0xff]  ;;  %v793_v61 = vld [vmem:[#allocation2 + $0x2c8] sm:$0xff]  ;;  %v794_v55 = vld [vmem:[#allocation2 + $0x2d0] sm:$0xff] }
 0x37a   :  { %v563_v54 = vmul.f32 %v4520_v23, %v562_v49  ;;  %v4628_v56 = vsel %vm156_vm5, %v568_v46, %v569_v47  ;;  %v573_v58 = vsel %vm156_vm5, %v567_v45, %v568_v46  ;;  %v4634_v60 = vsel %vm156_vm5, %v569_v47, %v570_v48  ;;  %v799_v46 = vld [vmem:[#allocation2 + $0x2f8] sm:$0xff] }
 0x37b   :  { %v4638_v63 = vsel %vm156_vm5, %v570_v48, %v567_v45  ;;  %v565_v0 = vmul.f32 %v4540_v50, %v560_v52  ;;  %v3878_v42 = vpack.c.bf16 %v793_v61, %v792_v57  ;;  %v3886_v45 = vpack.c.bf16 %v797_v62, %v796_v44  ;;  %v1020_v62 = vld [vmem:[#allocation2 + $0x330] sm:$0xff] }
 0x37c   :  { %3164 = vmatprep.mubr.f32.mxu1 %v563_v54  ;;  %v576_v48 = vmul.f32 %v4505_v16, %v4628_v56  ;;  %v578_v49 = vmul.f32 %v4507_v17, %v4638_v63 }
 0x37d   :  { %3165 = vmatmul.mubr.f32.vlgmr.msra.gmra.mrb[0].mxu1 %v561_v51 }
 0x37e   :  { %3833 = vmatpush3.bf16.msra.mxu1 %v3830_v5  ;;  %3167 = vmatprep.mubr.f32.mxu1 %v565_v0  ;;  %v3850_v5 = vpack.c.bf16 %v591_v13, %v590_v12 }
 0x37f   :  { %3835 = vmatprep.subr.bf16.mxu1 %v3834_v59 }
 0x381   :  { %3168 = vmatmul.mubr.f32.gmra.mrb[2].mxu1 %v559_v53 }
 0x382   :  { %3837 = vmatpush3.bf16.msra.mxu1 %v3834_v59  ;;  %3202 = vmatprep.mubr.f32.mxu1 %v551_v37  ;;  %v3874_v37 = vpack.c.bf16 %v791_v36, %v790_v35  ;;  %v1016_v35 = vld [vmem:[#allocation2 + $0x310] sm:$0xff]  ;;  %v1017_v36 = vld [vmem:[#allocation2 + $0x318] sm:$0xff] }
 0x383   :  { %3839 = vmatprep.subr.bf16.mxu1 %v3838_v4 }
 0x386   :  { %3841 = vmatpush3.bf16.msra.mxu1 %v3838_v4 }
 0x387   :  { %3843 = vmatprep.subr.bf16.mxu1 %v3842_v8 }
 0x38a   :  { %3845 = vmatpush3.bf16.msra.mxu1 %v3842_v8 }
 0x38b   :  { %3847 = vmatprep.subr.bf16.mxu1 %v3846_v11 }
 0x38e   :  { %3849 = vmatpush3.bf16.msra.mxu1 %v3846_v11 }
 0x38f   :  { %3851 = vmatprep.subr.bf16.mxu1 %v3850_v5 }
 0x392   :  { %3853 = vmatpush3.bf16.msra.mxu1 %v3850_v5 }
 0x393   :  { %3855 = vmatprep.subr.bf16.mxu1 %v3854_v21 }
 0x396   :  { %3857 = vmatpush3.bf16.msra.mxu1 %v3854_v21 }
 0x397   :  { %3859 = vmatprep.subr.bf16.mxu1 %v3858_v25 }
 0x39a   :  { %3861 = vmatpush3.bf16.msra.mxu1 %v3858_v25 }
 0x39b   :  { %3863 = vmatprep.subr.bf16.mxu1 %v3862_v28 }
 0x39d   :  { %3203 = vmatmul.mubr.f32.vlgmr.msra.gmra.mrb[0].mxu1 %v4607_v39  ;;  %v795_v39 = vld [vmem:[#allocation2 + $0x2d8] sm:$0xff] }
 0x39e   :  { %3205 = vmatprep.mubr.f32.mxu1 %v4609_v40  ;;  %3865 = vmatpush3.bf16.msra.mxu1 %v3862_v28  ;;  %v3882_v40 = vpack.c.bf16 %v795_v39, %v794_v55  ;;  %v1018_v55 = vld [vmem:[#allocation2 + $0x320] sm:$0xff]  ;;  %v1019_v39 = vld [vmem:[#allocation2 + $0x328] sm:$0xff] }
 0x39f   :  { %3867 = vmatprep.subr.bf16.mxu1 %v3866_v31  ;;  %v3902_v44 = vpack.c.bf16 %v1019_v39, %v1018_v55  ;;  %v999_v39 = vld [vmem:[#allocation2 + $0x390] sm:$0xff] }
 0x3a1   :  { %3206 = vmatmul.mubr.f32.gmra.mrb[2].mxu1 %v4605_v38  ;;  %v798_v38 = vld [vmem:[#allocation2 + $0x2f0] sm:$0xff] }
 0x3a2   :  { %3869 = vmatpush3.bf16.msra.mxu1 %v3866_v31  ;;  %3240 = vmatprep.mubr.f32.mxu1 %v573_v58  ;;  %v3890_v47 = vpack.c.bf16 %v799_v46, %v798_v38  ;;  %v1022_v46 = vld [vmem:[#allocation2 + $0x340] sm:$0xff] }
 0x3a3   :  { %3871 = vmatprep.subr.bf16.mxu1 %v3870_v34 }
 0x3a6   :  { %3873 = vmatpush3.bf16.msra.mxu1 %v3870_v34  ;;  %v3894_v34 = vpack.c.bf16 %v1015_v33, %v1014_v32 }
 0x3a7   :  { %3875 = vmatprep.subr.bf16.mxu1 %v3874_v37 }
 0x3a8   :  { %3895 = vmatprep.subr.bf16.mxu0 %v3894_v34 }
 0x3a9   :  { %3897 = vmatpush3.bf16.msra.mxu0 %v3894_v34 }
 0x3aa   :  { %3877 = vmatpush3.bf16.msra.mxu1 %v3874_v37  ;;  %v3898_v37 = vpack.c.bf16 %v1017_v36, %v1016_v35 }
 0x3ab   :  { %3879 = vmatprep.subr.bf16.mxu1 %v3878_v42 }
 0x3ac   :  { %3899 = vmatprep.subr.bf16.mxu0 %v3898_v37 }
 0x3ad   :  { %3901 = vmatpush3.bf16.msra.mxu0 %v3898_v37 }
 0x3ae   :  { %3881 = vmatpush3.bf16.msra.mxu1 %v3878_v42  ;;  %3903 = vmatprep.subr.bf16.mxu0 %v3902_v44 }
 0x3af   :  { %3883 = vmatprep.subr.bf16.mxu1 %v3882_v40 }
 0x3b1   :  { %3905 = vmatpush3.bf16.msra.mxu0 %v3902_v44 }
 0x3b2   :  { %3885 = vmatpush3.bf16.msra.mxu1 %v3882_v40 }
 0x3b3   :  { %3887 = vmatprep.subr.bf16.mxu1 %v3886_v45 }
 0x3b6   :  { %3889 = vmatpush3.bf16.msra.mxu1 %v3886_v45  ;;  %v1021_v45 = vld [vmem:[#allocation2 + $0x338] sm:$0xff] }
 0x3b7   :  { %3891 = vmatprep.subr.bf16.mxu1 %v3890_v47  ;;  %v3906_v38 = vpack.c.bf16 %v1021_v45, %v1020_v62  ;;  %v1001_v45 = vld [vmem:[#allocation2 + $0x3a0] sm:$0xff] }
 0x3b9   :  { %3907 = vmatprep.subr.bf16.mxu0 %v3906_v38 }
 0x3ba   :  { %3893 = vmatpush3.bf16.msra.mxu1 %v3890_v47  ;;  %v1023_v47 = vld [vmem:[#allocation2 + $0x348] sm:$0xff]  ;;  %3909 = vmatpush3.bf16.msra.mxu0 %v3906_v38 }
 0x3bb   :  { %v1002_v38 = vld [vmem:[#allocation2 + $0x3a8] sm:$0xff] }
 0x3bd   :  { %3241 = vmatmul.mubr.f32.vlgmr.msra.gmra.mrb[0].mxu1 %v576_v48  ;;  %v3910_v48 = vpack.c.bf16 %v1023_v47, %v1022_v46  ;;  %v3934_v46 = vpack.c.bf16 %v1002_v38, %v1001_v45 }
 0x3be   :  { %3243 = vmatprep.mubr.f32.mxu1 %v4634_v60 }
 0x3bf   :  { %3911 = vmatprep.subr.bf16.mxu0 %v3910_v48 }
 0x3c0   :  { %3913 = vmatpush3.bf16.msra.mxu0 %v3910_v48  ;;  %v1003_v48 = vld [vmem:[#allocation2 + $0x3b0] sm:$0xff] }
 0x3c1   :  { %3244 = vmatmul.mubr.f32.gmra.mrb[2].mxu1 %v578_v49  ;;  %v1024_v49 = vld [vmem:[#allocation2 + $0x350] sm:$0xff] }
 0x490   :  { %v4649_v51 = vpop.f32.mrb[0].mxu1 }
 0x491   :  { %v911_v52 = vmul.f32 %v4649_v51, %v4649_v51  ;;  %v4653_v53 = vpop.f32.mrb[1].mxu1 }
 0x492   :  { %v889_v54 = vadd.f32 %v4649_v51, %v4653_v53  ;;  %v910_v56 = vmul.f32 %v4653_v53, %v4653_v53 }
 0x494   :  { %v914_v58 = vadd.f32 %v911_v52, %v910_v56  ;;  %v4659_v59 = vpop.f32.mrb[2].mxu1  ;;  %v1025_v52 = vld [vmem:[#allocation2 + $0x358] sm:$0xff]  ;;  %v1026_v56 = vld [vmem:[#allocation2 + $0x360] sm:$0xff] }
 0x495   :  { %v4661_v60 = vpop.f32.mrb[3].mxu1  ;;  %v913_v2 = vmul.f32 %v4659_v59, %v4659_v59 }
 0x496   :  { %v890_v63 = vadd.f32 %v889_v54, %v4661_v60  ;;  %v912_v0 = vmul.f32 %v4661_v60, %v4661_v60  ;;  %v3914_v54 = vpack.c.bf16 %v1025_v52, %v1024_v49  ;;  %v1004_v49 = vld [vmem:[#allocation2 + $0x3b8] sm:$0xff] }
 0x497   :  { %v3938_v52 = vpack.c.bf16 %v1004_v49, %v1003_v48 }
 0x498   :  { %v891_v3 = vadd.f32 %v4659_v59, %v890_v63  ;;  %v915_v4 = vadd.f32 %v914_v58, %v912_v0  ;;  %3915 = vmatprep.subr.bf16.mxu0 %v3914_v54  ;;  %v1027_v58 = vld [vmem:[#allocation2 + $0x368] sm:$0xff]  ;;  %v1028_v63 = vld [vmem:[#allocation2 + $0x370] sm:$0xff] }
 0x499   :  { %v3918_v0 = vpack.c.bf16 %v1027_v58, %v1026_v56  ;;  %3917 = vmatpush3.bf16.msra.mxu0 %v3914_v54  ;;  %v1005_v54 = vld [vmem:[#allocation2 + $0x3c0] sm:$0xff]  ;;  %v1006_v56 = vld [vmem:[#allocation2 + $0x3c8] sm:$0xff] }
 0x49a   :  { %v892_v6 = vrot.slane %v891_v3, 4  ;;  %v916_v7 = vadd.f32 %v915_v4, %v913_v2  ;;  %v1029_v2 = vld [vmem:[#allocation2 + $0x378] sm:$0xff]  ;;  %v997_v4 = vld [vmem:[#allocation2 + $0x380] sm:$0xff]  ;;  %v3942_v58 = vpack.c.bf16 %v1006_v56, %v1005_v54 }
 0x49b   :  { %3919 = vmatprep.subr.bf16.mxu0 %v3918_v0 }
 0x49c   :  { %v893_v8 = vadd.f32 %v892_v6, %v891_v3  ;;  %v917_v9 = vrot.slane %v916_v7, 4  ;;  %v3922_v3 = vpack.c.bf16 %v1029_v2, %v1028_v63  ;;  %v998_v6 = vld [vmem:[#allocation2 + $0x388] sm:$0xff]  ;;  %v1007_v63 = vld [vmem:[#allocation2 + $0x3d0] sm:$0xff] }
 0x49d   :  { %3921 = vmatpush3.bf16.msra.mxu0 %v3918_v0  ;;  %v1008_v0 = vld [vmem:[#allocation2 + $0x3d8] sm:$0xff] }
 0x49e   :  { %v894_v10 = vrot.slane %v893_v8, 2  ;;  %v918_v11 = vadd.f32 %v917_v9, %v916_v7  ;;  %3923 = vmatprep.subr.bf16.mxu0 %v3922_v3  ;;  %v3926_v7 = vpack.c.bf16 %v998_v6, %v997_v4  ;;  %v3946_v2 = vpack.c.bf16 %v1008_v0, %v1007_v63  ;;  %v1010_v4 = vld [vmem:[#allocation2 + $0x3e8] sm:$0xff] }
 0x4a0   :  { %v895_v12 = vadd.f32 %v894_v10, %v893_v8  ;;  %v919_v13 = vrot.slane %v918_v11, 2 }
 0x4a1   :  { %3925 = vmatpush3.bf16.msra.mxu0 %v3922_v3  ;;  %v1009_v3 = vld [vmem:[#allocation2 + $0x3e0] sm:$0xff] }
 0x4a2   :  { %v896_v5 = vrot.slane %v895_v12, 1  ;;  %v920_v14 = vadd.f32 %v919_v13, %v918_v11  ;;  %3927 = vmatprep.subr.bf16.mxu0 %v3926_v7  ;;  %v3950_v6 = vpack.c.bf16 %v1010_v4, %v1009_v3 }
 0x4a4   :  { %v897_v15 = vadd.f32 %v896_v5, %v895_v12  ;;  %v921_v21 = vrot.slane %v920_v14, 1 }
 0x4a6   :  { %898 = vrot.lane.b32.xlu0 %v897_v15, %s4427_s13  ;;  %v922_v22 = vadd.f32 %v921_v21, %v920_v14  ;;  %v940_v21 = vld [vmem:[#allocation4 + $0x1] sm:$0x1] }
 0x4a8   :  { %923 = vrot.lane.b32.xlu1 %v922_v22, %s4427_s13 }
 0x518   :  { %v899_v24 = vpop.permute.xlu0 %898 }
 0x519   :  { %v900_v25 = vadd.f32 %v899_v24, %v897_v15 }
 0x51a   :  { %v924_v26 = vpop.permute.xlu1 %923 }
 0x51b   :  { %v925_v27 = vadd.f32 %v924_v26, %v922_v22  ;;  %901 = vrot.lane.b32.xlu0 %v900_v25, %s4423_s25 }
 0x51d   :  { %926 = vrot.lane.b32.xlu1 %v925_v27, %s4423_s25 }
 0x58d   :  { %v902_v28 = vpop.permute.xlu0 %901 }
 0x58e   :  { %v903_v29 = vadd.f32 %v902_v28, %v900_v25  ;;  %v945_v25 = vld [vmem:[#allocation6 + $0x1] sm:$0x1] }
 0x58f   :  { %v927_v30 = vpop.permute.xlu1 %926 }
 0x590   :  { %v928_v31 = vadd.f32 %v927_v30, %v925_v27  ;;  %904 = vrot.lane.b32.xlu0 %v903_v29, %s4430_s9 }
 0x592   :  { %929 = vrot.lane.b32.xlu1 %v928_v31, %s4430_s9 }
 0x602   :  { %v905_v57 = vpop.permute.xlu0 %904 }
 0x603   :  { %v906_v61 = vadd.f32 %v905_v57, %v903_v29 }
 0x604   :  { %v930_v42 = vpop.permute.xlu1 %929 }
 0x605   :  { %v931_v40 = vadd.f32 %v930_v42, %v928_v31  ;;  %907 = vrot.lane.b32.xlu0 %v906_v61, %s4431_s10 }
 0x607   :  { %932 = vrot.lane.b32.xlu1 %v931_v40, %s4431_s10 }
 0x677   :  { %v908_v8 = vpop.permute.xlu0 %907 }
 0x678   :  { %v909_v9 = vadd.f32 %v908_v8, %v906_v61  ;;  %v1012_v8 = vld [vmem:[#allocation2 + $0x3f8] sm:$0xff] }
 0x679   :  { %v933_v10 = vpop.permute.xlu1 %932 }
 0x67a   :  { %v935_v11 = vmul.f32 0.001953125, %v909_v9  ;;  %v934_v12 = vadd.f32 %v933_v10, %v931_v40  ;;  %v1201_v10 = vld [vmem:[#allocation2 + $0x400] sm:$0xff] }
 0x67c   :  { %v937_v13 = vmul.f32 %v935_v11, %v935_v11  ;;  %v936_v5 = vmul.f32 0.001953125, %v934_v12 }
 0x67e   :  { %v938_v14 = vsub.f32 %v936_v5, %v937_v13  ;;  %v1203_v13 = vld [vmem:[#allocation2 + $0x410] sm:$0xff]  ;;  %v1204_v5 = vld [vmem:[#allocation2 + $0x418] sm:$0xff] }
 0x680   :  { %v941_v15 = vadd.f32 1e-05, %v938_v14  ;;  %v3962_v14 = vpack.c.bf16 %v1204_v5, %v1203_v13 }
 0x682   :  { %4338 = vrsqrt.f32 %v941_v15  ;;  %v1205_v15 = vld [vmem:[#allocation2 + $0x420] sm:$0xff] }
 0x68c   :  { %v4339_v22 = vpop.eup %4338 }
 0x68d   :  { %v943_v24 = vmul.f32 %v4339_v22, %v940_v21  ;;  %v1206_v21 = vld [vmem:[#allocation2 + $0x428] sm:$0xff] }
 0x68f   :  { %v946_v26 = vmul.f32 %v943_v24, %v935_v11  ;;  %v952_v27 = vrot.slane %v943_v24, %v4597_v18  ;;  %v1202_v11 = vld [vmem:[#allocation2 + $0x408] sm:$0xff] }
 0x690   :  { %v3958_v12 = vpack.c.bf16 %v1202_v11, %v1201_v10 }
 0x691   :  { %v947_v28 = vsub.f32 %v945_v25, %v946_v26  ;;  %v954_v29 = vmul.f32 %v952_v27, %v4653_v53  ;;  %v957_v31 = vmul.f32 %v4659_v59, %v952_v27  ;;  %v955_v32 = vmul.f32 %v4649_v51, %v952_v27  ;;  %v1207_v26 = vld [vmem:[#allocation2 + $0x430] sm:$0xff] }
 0x692   :  { %v956_v33 = vmul.f32 %v952_v27, %v4661_v60  ;;  %v3966_v25 = vpack.c.bf16 %v1206_v21, %v1205_v15  ;;  %v1208_v27 = vld [vmem:[#allocation2 + $0x438] sm:$0xff] }
 0x693   :  { %v962_v30 = vrot.slane %v947_v28, %v4597_v18 }
 0x695   :  { %v964_v34 = vadd.f32 %v962_v30, %v954_v29  ;;  %v967_v35 = vadd.f32 %v962_v30, %v957_v31  ;;  %v965_v36 = vadd.f32 %v962_v30, %v955_v32  ;;  %v966_v37 = vadd.f32 %v962_v30, %v956_v33  ;;  %v1209_v30 = vld [vmem:[#allocation2 + $0x440] sm:$0xff]  ;;  %v1210_v31 = vld [vmem:[#allocation2 + $0x448] sm:$0xff]  ;;  %v1211_v33 = vld [vmem:[#allocation2 + $0x450] sm:$0xff] }
 0x696   :  { %v3970_v29 = vpack.c.bf16 %v1208_v27, %v1207_v26  ;;  %v3974_v32 = vpack.c.bf16 %v1210_v31, %v1209_v30  ;;  %v1432_v30 = vld [vmem:[#allocation2 + $0x488] sm:$0xff] }
 0x697   :  { %v4684_v57 = vadd.f32 %v964_v34, %v4512_v19  ;;  %v4687_v61 = vadd.f32 %v967_v35, %v4517_v20  ;;  %v4690_v53 = vadd.f32 %v965_v36, %v4536_v43  ;;  %v4693_v42 = vadd.f32 %v966_v37, %v4531_v41  ;;  %v1000_v19 = vld [vmem:[#allocation2 + $0x398] sm:$0xff]  ;;  %v1213_v36 = vld [vmem:[#allocation2 + $0x460] sm:$0xff]  ;;  %v1214_v37 = vld [vmem:[#allocation2 + $0x468] sm:$0xff] }
 0x698   :  { %v3930_v41 = vpack.c.bf16 %v1000_v19, %v999_v39  ;;  %v1212_v34 = vld [vmem:[#allocation2 + $0x458] sm:$0xff] }
 0x699   :  { %v972_v51 = vrot.slane %v4684_v57, 7  ;;  %v975_v59 = vrot.slane %v4687_v61, 7  ;;  %v973_v60 = vrot.slane %v4690_v53, 7  ;;  %v974_v55 = vrot.slane %v4693_v42, 7 }
 0x69a   :  { %v984_v22 = vrot.slane %v4684_v57, 1  ;;  %v985_v24 = vrot.slane %v4690_v53, 1  ;;  %v3978_v35 = vpack.c.bf16 %v1212_v34, %v1211_v33  ;;  %v986_v39 = vrot.slane %v4693_v42, 1  ;;  %v1434_v33 = vld [vmem:[#allocation2 + $0x498] sm:$0xff] }
 0x69b   :  { %v979_v20 = vsel %vm143_vm3, %v975_v59, %v972_v51  ;;  %v977_v43 = vsel %vm143_vm3, %v973_v60, %v974_v55  ;;  %v978_v44 = vsel %vm143_vm3, %v972_v51, %v973_v60  ;;  %v976_v47 = vsel %vm143_vm3, %v974_v55, %v975_v59  ;;  %v1215_v59 = vld [vmem:[#allocation2 + $0x470] sm:$0xff]  ;;  %v1216_v60 = vld [vmem:[#allocation2 + $0x478] sm:$0xff] }
 0x69c   :  { %v980_v40 = vmul.f32 %v4520_v23, %v979_v20  ;;  %v982_v62 = vmul.f32 %v4540_v50, %v977_v43  ;;  %v990_v28 = vsel %vm156_vm5, %v984_v22, %v985_v24  ;;  %v3982_v51 = vpack.c.bf16 %v1214_v37, %v1213_v36 }
 0x69d   :  { %v3986_v55 = vpack.c.bf16 %v1216_v60, %v1215_v59  ;;  %v989_v19 = vsel %vm156_vm5, %v985_v24, %v986_v39  ;;  %v987_v20 = vrot.slane %v4687_v61, 1  ;;  %v1436_v59 = vld [vmem:[#allocation2 + $0x4a8] sm:$0xff] }
 0x69e   :  { %3278 = vmatprep.mubr.f32.mxu0 %v980_v40  ;;  %v993_v43 = vmul.f32 %v4505_v16, %v989_v19  ;;  %v1438_v19 = vld [vmem:[#allocation2 + $0x4b8] sm:$0xff] }
 0x69f   :  { %3279 = vmatmul.mubr.f32.vlgmr.msra.gmra.mrb[4].mxu0 %v978_v44  ;;  %v991_v40 = vsel %vm156_vm5, %v987_v20, %v984_v22 }
 0x6a0   :  { %3929 = vmatpush3.bf16.msra.mxu0 %v3926_v7  ;;  %3281 = vmatprep.mubr.f32.mxu0 %v982_v62  ;;  %v1011_v7 = vld [vmem:[#allocation2 + $0x3f0] sm:$0xff]  ;;  %v995_v44 = vmul.f32 %v4507_v17, %v991_v40  ;;  %v1440_v40 = vld [vmem:[#allocation2 + $0x4c8] sm:$0xff] }
 0x6a1   :  { %3931 = vmatprep.subr.bf16.mxu0 %v3930_v41  ;;  %v3954_v9 = vpack.c.bf16 %v1012_v8, %v1011_v7 }
 0x6a3   :  { %3282 = vmatmul.mubr.f32.gmra.mrb[6].mxu0 %v976_v47 }
 0x6a4   :  { %3933 = vmatpush3.bf16.msra.mxu0 %v3930_v41  ;;  %3316 = vmatprep.mubr.f32.mxu0 %v4684_v57  ;;  %v988_v41 = vsel %vm156_vm5, %v986_v39, %v987_v20  ;;  %v1437_v39 = vld [vmem:[#allocation2 + $0x4b0] sm:$0xff] }
 0x6a5   :  { %3935 = vmatprep.subr.bf16.mxu0 %v3934_v46  ;;  %v4002_v20 = vpack.c.bf16 %v1438_v19, %v1437_v39 }
 0x6a8   :  { %3937 = vmatpush3.bf16.msra.mxu0 %v3934_v46 }
 0x6a9   :  { %3939 = vmatprep.subr.bf16.mxu0 %v3938_v52 }
 0x6ac   :  { %3941 = vmatpush3.bf16.msra.mxu0 %v3938_v52 }
 0x6ad   :  { %3943 = vmatprep.subr.bf16.mxu0 %v3942_v58 }
 0x6b0   :  { %3945 = vmatpush3.bf16.msra.mxu0 %v3942_v58 }
 0x6b1   :  { %3947 = vmatprep.subr.bf16.mxu0 %v3946_v2 }
 0x6b4   :  { %3949 = vmatpush3.bf16.msra.mxu0 %v3946_v2 }
 0x6b5   :  { %3951 = vmatprep.subr.bf16.mxu0 %v3950_v6 }
 0x6b8   :  { %3953 = vmatpush3.bf16.msra.mxu0 %v3950_v6 }
 0x6b9   :  { %3955 = vmatprep.subr.bf16.mxu0 %v3954_v9 }
 0x6bc   :  { %3957 = vmatpush3.bf16.msra.mxu0 %v3954_v9 }
 0x6bd   :  { %3959 = vmatprep.subr.bf16.mxu0 %v3958_v12 }
 0x6bf   :  { %3317 = vmatmul.mubr.f32.vlgmr.msra.gmra.mrb[4].mxu0 %v4690_v53 }
 0x6c0   :  { %3319 = vmatprep.mubr.f32.mxu0 %v4693_v42  ;;  %3961 = vmatpush3.bf16.msra.mxu0 %v3958_v12 }
 0x6c1   :  { %3963 = vmatprep.subr.bf16.mxu0 %v3962_v14 }
 0x6c3   :  { %3320 = vmatmul.mubr.f32.gmra.mrb[6].mxu0 %v4687_v61 }
 0x6c4   :  { %3965 = vmatpush3.bf16.msra.mxu0 %v3962_v14  ;;  %3354 = vmatprep.mubr.f32.mxu0 %v990_v28 }
 0x6c5   :  { %3967 = vmatprep.subr.bf16.mxu0 %v3966_v25 }
 0x6c8   :  { %3969 = vmatpush3.bf16.msra.mxu0 %v3966_v25 }
 0x6c9   :  { %3971 = vmatprep.subr.bf16.mxu0 %v3970_v29 }
 0x6cc   :  { %3973 = vmatpush3.bf16.msra.mxu0 %v3970_v29  ;;  %v1431_v29 = vld [vmem:[#allocation2 + $0x480] sm:$0xff] }
 0x6cd   :  { %3975 = vmatprep.subr.bf16.mxu0 %v3974_v32  ;;  %v3990_v31 = vpack.c.bf16 %v1432_v30, %v1431_v29 }
 0x6cf   :  { %3991 = vmatprep.subr.bf16.mxu1 %v3990_v31 }
 0x6d0   :  { %3977 = vmatpush3.bf16.msra.mxu0 %v3974_v32  ;;  %v1433_v32 = vld [vmem:[#allocation2 + $0x490] sm:$0xff]  ;;  %3993 = vmatpush3.bf16.msra.mxu1 %v3990_v31 }
 0x6d1   :  { %3979 = vmatprep.subr.bf16.mxu0 %v3978_v35  ;;  %v3994_v34 = vpack.c.bf16 %v1434_v33, %v1433_v32 }
 0x6d3   :  { %3995 = vmatprep.subr.bf16.mxu1 %v3994_v34 }
 0x6d4   :  { %3981 = vmatpush3.bf16.msra.mxu0 %v3978_v35  ;;  %3997 = vmatpush3.bf16.msra.mxu1 %v3994_v34 }
 0x6d5   :  { %3983 = vmatprep.subr.bf16.mxu0 %v3982_v51 }
 0x6d8   :  { %3985 = vmatpush3.bf16.msra.mxu0 %v3982_v51  ;;  %v1435_v51 = vld [vmem:[#allocation2 + $0x4a0] sm:$0xff] }
 0x6d9   :  { %3987 = vmatprep.subr.bf16.mxu0 %v3986_v55 }
 0x6dc   :  { %3989 = vmatpush3.bf16.msra.mxu0 %v3986_v55  ;;  %v3998_v55 = vpack.c.bf16 %v1436_v59, %v1435_v51 }
 0x6de   :  { %3999 = vmatprep.subr.bf16.mxu1 %v3998_v55 }
 0x6df   :  { %3355 = vmatmul.mubr.f32.vlgmr.msra.gmra.mrb[4].mxu0 %v993_v43  ;;  %4001 = vmatpush3.bf16.msra.mxu1 %v3998_v55  ;;  %v1439_v43 = vld [vmem:[#allocation2 + $0x4c0] sm:$0xff] }
 0x6e0   :  { %3357 = vmatprep.mubr.f32.mxu0 %v988_v41  ;;  %4003 = vmatprep.subr.bf16.mxu1 %v4002_v20  ;;  %v4006_v41 = vpack.c.bf16 %v1440_v40, %v1439_v43 }
 0x6e3   :  { %3358 = vmatmul.mubr.f32.gmra.mrb[6].mxu0 %v995_v44  ;;  %4005 = vmatpush3.bf16.msra.mxu1 %v4002_v20  ;;  %v1441_v44 = vld [vmem:[#allocation2 + $0x4d0] sm:$0xff] }
 0x6e4   :  { %4007 = vmatprep.subr.bf16.mxu1 %v4006_v41 }
 0x6e7   :  { %4009 = vmatpush3.bf16.msra.mxu1 %v4006_v41 }
 0x7b2   :  { %v4727_v62 = vpop.f32.mrb[4].mxu0 }
 0x7b3   :  { %v1328_v45 = vmul.f32 %v4727_v62, %v4727_v62  ;;  %v4731_v38 = vpop.f32.mrb[5].mxu0 }
 0x7b4   :  { %v1306_v46 = vadd.f32 %v4727_v62, %v4731_v38  ;;  %v1327_v47 = vmul.f32 %v4731_v38, %v4731_v38 }
 0x7b6   :  { %v1331_v48 = vadd.f32 %v1328_v45, %v1327_v47  ;;  %v4737_v49 = vpop.f32.mrb[6].mxu0  ;;  %v1442_v45 = vld [vmem:[#allocation2 + $0x4d8] sm:$0xff]  ;;  %v1443_v47 = vld [vmem:[#allocation2 + $0x4e0] sm:$0xff] }
 0x7b7   :  { %v4739_v52 = vpop.f32.mrb[7].mxu0  ;;  %v1330_v58 = vmul.f32 %v4737_v49, %v4737_v49 }
 0x7b8   :  { %v1307_v54 = vadd.f32 %v1306_v46, %v4739_v52  ;;  %v1329_v56 = vmul.f32 %v4739_v52, %v4739_v52  ;;  %v4010_v46 = vpack.c.bf16 %v1442_v45, %v1441_v44 }
 0x7ba   :  { %v1308_v63 = vadd.f32 %v4737_v49, %v1307_v54  ;;  %v1332_v0 = vadd.f32 %v1331_v48, %v1329_v56  ;;  %4011 = vmatprep.subr.bf16.mxu1 %v4010_v46  ;;  %v1444_v48 = vld [vmem:[#allocation2 + $0x4e8] sm:$0xff]  ;;  %v1445_v54 = vld [vmem:[#allocation2 + $0x4f0] sm:$0xff] }
 0x7bb   :  { %v4014_v56 = vpack.c.bf16 %v1444_v48, %v1443_v47  ;;  %4013 = vmatpush3.bf16.msra.mxu1 %v4010_v46 }
 0x7bc   :  { %v1309_v2 = vrot.slane %v1308_v63, 4  ;;  %v1333_v3 = vadd.f32 %v1332_v0, %v1330_v58  ;;  %v1446_v58 = vld [vmem:[#allocation2 + $0x4f8] sm:$0xff]  ;;  %v1414_v0 = vld [vmem:[#allocation2 + $0x500] sm:$0xff] }
 0x7bd   :  { %4015 = vmatprep.subr.bf16.mxu1 %v4014_v56 }
 0x7be   :  { %v1310_v4 = vadd.f32 %v1309_v2, %v1308_v63  ;;  %v1334_v6 = vrot.slane %v1333_v3, 4  ;;  %v4018_v63 = vpack.c.bf16 %v1446_v58, %v1445_v54  ;;  %v1415_v2 = vld [vmem:[#allocation2 + $0x508] sm:$0xff] }
 0x7bf   :  { %4017 = vmatpush3.bf16.msra.mxu1 %v4014_v56 }
 0x7c0   :  { %v1311_v7 = vrot.slane %v1310_v4, 2  ;;  %v1335_v8 = vadd.f32 %v1334_v6, %v1333_v3  ;;  %4019 = vmatprep.subr.bf16.mxu1 %v4018_v63  ;;  %v4022_v3 = vpack.c.bf16 %v1415_v2, %v1414_v0  ;;  %v1419_v0 = vld [vmem:[#allocation2 + $0x528] sm:$0xff] }
 0x7c2   :  { %v1312_v9 = vadd.f32 %v1311_v7, %v1310_v4  ;;  %v1336_v10 = vrot.slane %v1335_v8, 2 }
 0x7c3   :  { %4021 = vmatpush3.bf16.msra.mxu1 %v4018_v63  ;;  %v1418_v63 = vld [vmem:[#allocation2 + $0x520] sm:$0xff] }
 0x7c4   :  { %v1313_v11 = vrot.slane %v1312_v9, 1  ;;  %v1337_v12 = vadd.f32 %v1336_v10, %v1335_v8  ;;  %4023 = vmatprep.subr.bf16.mxu1 %v4022_v3  ;;  %v4030_v2 = vpack.c.bf16 %v1419_v0, %v1418_v63 }
 0x7c6   :  { %v1314_v13 = vadd.f32 %v1313_v11, %v1312_v9  ;;  %v1338_v5 = vrot.slane %v1337_v12, 1 }
 0x7c8   :  { %1315 = vrot.lane.b32.xlu0 %v1314_v13, %s4427_s13  ;;  %v1339_v14 = vadd.f32 %v1338_v5, %v1337_v12  ;;  %v1357_v5 = vld [vmem:[#allocation4 + $0x2] sm:$0x1] }
 0x7ca   :  { %1340 = vrot.lane.b32.xlu1 %v1339_v14, %s4427_s13 }
 0x83a   :  { %v1316_v15 = vpop.permute.xlu0 %1315 }
 0x83b   :  { %v1317_v21 = vadd.f32 %v1316_v15, %v1314_v13 }
 0x83c   :  { %v1341_v22 = vpop.permute.xlu1 %1340 }
 0x83d   :  { %v1342_v24 = vadd.f32 %v1341_v22, %v1339_v14  ;;  %1318 = vrot.lane.b32.xlu0 %v1317_v21, %s4423_s25 }
 0x83f   :  { %1343 = vrot.lane.b32.xlu1 %v1342_v24, %s4423_s25 }
 0x8af   :  { %v1319_v25 = vpop.permute.xlu0 %1318 }
 0x8b0   :  { %v1320_v26 = vadd.f32 %v1319_v25, %v1317_v21  ;;  %v1362_v21 = vld [vmem:[#allocation6 + $0x2] sm:$0x1] }
 0x8b1   :  { %v1344_v27 = vpop.permute.xlu1 %1343 }
 0x8b2   :  { %v1345_v28 = vadd.f32 %v1344_v27, %v1342_v24  ;;  %1321 = vrot.lane.b32.xlu0 %v1320_v26, %s4430_s9 }
 0x8b4   :  { %1346 = vrot.lane.b32.xlu1 %v1345_v28, %s4430_s9 }
 0x924   :  { %v1322_v35 = vpop.permute.xlu0 %1321 }
 0x925   :  { %v1323_v36 = vadd.f32 %v1322_v35, %v1320_v26 }
 0x926   :  { %v1347_v37 = vpop.permute.xlu1 %1346 }
 0x927   :  { %v1348_v60 = vadd.f32 %v1347_v37, %v1345_v28  ;;  %1324 = vrot.lane.b32.xlu0 %v1323_v36, %s4431_s10 }
 0x929   :  { %1349 = vrot.lane.b32.xlu1 %v1348_v60, %s4431_s10 }
 0x999   :  { %v1325_v4 = vpop.permute.xlu0 %1324 }
 0x99a   :  { %v1326_v6 = vadd.f32 %v1325_v4, %v1323_v36  ;;  %v1420_v4 = vld [vmem:[#allocation2 + $0x530] sm:$0xff] }
 0x99b   :  { %v1350_v7 = vpop.permute.xlu1 %1349 }
 0x99c   :  { %v1352_v8 = vmul.f32 0.001953125, %v1326_v6  ;;  %v1351_v9 = vadd.f32 %v1350_v7, %v1348_v60  ;;  %v1416_v60 = vld [vmem:[#allocation2 + $0x510] sm:$0xff]  ;;  %v1421_v6 = vld [vmem:[#allocation2 + $0x538] sm:$0xff] }
 0x99d   :  { %v4034_v7 = vpack.c.bf16 %v1421_v6, %v1420_v4 }
 0x99e   :  { %v1354_v10 = vmul.f32 %v1352_v8, %v1352_v8  ;;  %v1353_v11 = vmul.f32 0.001953125, %v1351_v9  ;;  %v1423_v9 = vld [vmem:[#allocation2 + $0x548] sm:$0xff] }
 0x9a0   :  { %v1355_v12 = vsub.f32 %v1353_v11, %v1354_v10  ;;  %v1424_v11 = vld [vmem:[#allocation2 + $0x550] sm:$0xff] }
 0x9a2   :  { %v1358_v13 = vadd.f32 1e-05, %v1355_v12  ;;  %v1425_v12 = vld [vmem:[#allocation2 + $0x558] sm:$0xff] }
 0x9a4   :  { %4340 = vrsqrt.f32 %v1358_v13  ;;  %v1426_v13 = vld [vmem:[#allocation2 + $0x560] sm:$0xff] }
 0x9ae   :  { %v4341_v14 = vpop.eup %4340 }
 0x9af   :  { %v1360_v15 = vmul.f32 %v4341_v14, %v1357_v5  ;;  %v1427_v5 = vld [vmem:[#allocation2 + $0x568] sm:$0xff] }
 0x9b0   :  { %v4046_v14 = vpack.c.bf16 %v1427_v5, %v1426_v13 }
 0x9b1   :  { %v1363_v22 = vmul.f32 %v1360_v15, %v1352_v8  ;;  %v1369_v24 = vrot.slane %v1360_v15, %v4597_v18  ;;  %v1422_v8 = vld [vmem:[#allocation2 + $0x540] sm:$0xff]  ;;  %v1428_v15 = vld [vmem:[#allocation2 + $0x570] sm:$0xff] }
 0x9b2   :  { %v4038_v10 = vpack.c.bf16 %v1423_v9, %v1422_v8 }
 0x9b3   :  { %v1364_v25 = vsub.f32 %v1362_v21, %v1363_v22  ;;  %v1371_v26 = vmul.f32 %v1369_v24, %v4731_v38  ;;  %v1374_v28 = vmul.f32 %v4737_v49, %v1369_v24  ;;  %v1372_v29 = vmul.f32 %v4727_v62, %v1369_v24  ;;  %v1429_v21 = vld [vmem:[#allocation2 + $0x578] sm:$0xff] }
 0x9b4   :  { %v1373_v30 = vmul.f32 %v1369_v24, %v4739_v52  ;;  %v1417_v52 = vld [vmem:[#allocation2 + $0x518] sm:$0xff]  ;;  %v4050_v22 = vpack.c.bf16 %v1429_v21, %v1428_v15  ;;  %v1618_v24 = vld [vmem:[#allocation2 + $0x580] sm:$0xff] }
 0x9b5   :  { %v1379_v27 = vrot.slane %v1364_v25, %v4597_v18  ;;  %v4026_v48 = vpack.c.bf16 %v1417_v52, %v1416_v60  ;;  %v1619_v25 = vld [vmem:[#allocation2 + $0x588] sm:$0xff]  ;;  %v1630_v60 = vld [vmem:[#allocation2 + $0x5e0] sm:$0xff] }
 0x9b6   :  { %v1631_v52 = vld [vmem:[#allocation2 + $0x5e8] sm:$0xff] }
 0x9b7   :  { %v1381_v31 = vadd.f32 %v1379_v27, %v1371_v26  ;;  %v1384_v32 = vadd.f32 %v1379_v27, %v1374_v28  ;;  %v1382_v33 = vadd.f32 %v1379_v27, %v1372_v29  ;;  %v1383_v34 = vadd.f32 %v1379_v27, %v1373_v30  ;;  %v1620_v27 = vld [vmem:[#allocation2 + $0x590] sm:$0xff]  ;;  %v1621_v28 = vld [vmem:[#allocation2 + $0x598] sm:$0xff]  ;;  %v1622_v30 = vld [vmem:[#allocation2 + $0x5a0] sm:$0xff] }
 0x9b8   :  { %v4054_v26 = vpack.c.bf16 %v1619_v25, %v1618_v24  ;;  %v4058_v29 = vpack.c.bf16 %v1621_v28, %v1620_v27 }
 0x9b9   :  { %v1385_v35 = vmax.f32 %v1381_v31, 0.0  ;;  %v4761_v36 = vmax.f32 %v1384_v32, 0.0  ;;  %v4763_v37 = vmax.f32 %v1382_v33, 0.0  ;;  %v4765_v51 = vmax.f32 %v1383_v34, 0.0  ;;  %v1623_v31 = vld [vmem:[#allocation2 + $0x5a8] sm:$0xff]  ;;  %v1624_v33 = vld [vmem:[#allocation2 + $0x5b0] sm:$0xff] }
 0x9ba   :  { %v4062_v32 = vpack.c.bf16 %v1623_v31, %v1622_v30  ;;  %v1625_v34 = vld [vmem:[#allocation2 + $0x5b8] sm:$0xff]  ;;  %v1848_v30 = vld [vmem:[#allocation2 + $0x600] sm:$0xff]  ;;  %v1849_v31 = vld [vmem:[#allocation2 + $0x608] sm:$0xff] }
 0x9bb   :  { %v1389_v38 = vrot.slane %v1385_v35, 7  ;;  %v1392_v59 = vrot.slane %v4761_v36, 7  ;;  %v1390_v49 = vrot.slane %v4763_v37, 7  ;;  %v1391_v62 = vrot.slane %v4765_v51, 7 }
 0x9bc   :  { %v1401_v55 = vrot.slane %v1385_v35, 1  ;;  %v1402_v39 = vrot.slane %v4763_v37, 1  ;;  %v1403_v19 = vrot.slane %v4765_v51, 1  ;;  %v1404_v20 = vrot.slane %v4761_v36, 1 }
 0x9bd   :  { %v1396_v43 = vsel %vm143_vm3, %v1392_v59, %v1389_v38  ;;  %v1395_v40 = vsel %vm143_vm3, %v1389_v38, %v1390_v49  ;;  %v1394_v41 = vsel %vm143_vm3, %v1390_v49, %v1391_v62  ;;  %v1393_v44 = vsel %vm143_vm3, %v1391_v62, %v1392_v59  ;;  %v1626_v38 = vld [vmem:[#allocation2 + $0x5c0] sm:$0xff]  ;;  %v1627_v59 = vld [vmem:[#allocation2 + $0x5c8] sm:$0xff]  ;;  %v1628_v62 = vld [vmem:[#allocation2 + $0x5d0] sm:$0xff] }
 0x9be   :  { %v1397_v45 = vmul.f32 %v4520_v23, %v1396_v43  ;;  %v4784_v46 = vsel %vm156_vm5, %v1402_v39, %v1403_v19  ;;  %v1407_v47 = vsel %vm156_vm5, %v1401_v55, %v1402_v39  ;;  %v4790_v54 = vsel %vm156_vm5, %v1403_v19, %v1404_v20  ;;  %v1633_v39 = vld [vmem:[#allocation2 + $0x5f8] sm:$0xff] }
 0x9bf   :  { %v4794_v56 = vsel %vm156_vm5, %v1404_v20, %v1401_v55  ;;  %v1399_v58 = vmul.f32 %v4540_v50, %v1394_v41  ;;  %v4070_v49 = vpack.c.bf16 %v1627_v59, %v1626_v38  ;;  %v4078_v55 = vpack.c.bf16 %v1631_v52, %v1630_v60  ;;  %v1854_v52 = vld [vmem:[#allocation2 + $0x630] sm:$0xff] }
 0x9c0   :  { %3392 = vmatprep.mubr.f32.mxu1 %v1397_v45  ;;  %v1410_v20 = vmul.f32 %v4505_v16, %v4784_v46  ;;  %v1412_v43 = vmul.f32 %v4507_v17, %v4794_v56 }
 0x9c1   :  { %3393 = vmatmul.mubr.f32.vlgmr.msra.gmra.mrb[4].mxu1 %v1395_v40 }
 0x9c2   :  { %4025 = vmatpush3.bf16.msra.mxu1 %v4022_v3  ;;  %3395 = vmatprep.mubr.f32.mxu1 %v1399_v58  ;;  %v4042_v3 = vpack.c.bf16 %v1425_v12, %v1424_v11 }
 0x9c3   :  { %4027 = vmatprep.subr.bf16.mxu1 %v4026_v48 }
 0x9c5   :  { %3396 = vmatmul.mubr.f32.gmra.mrb[6].mxu1 %v1393_v44 }
 0x9c6   :  { %4029 = vmatpush3.bf16.msra.mxu1 %v4026_v48  ;;  %3430 = vmatprep.mubr.f32.mxu1 %v1385_v35  ;;  %v4066_v35 = vpack.c.bf16 %v1625_v34, %v1624_v33  ;;  %v1850_v33 = vld [vmem:[#allocation2 + $0x610] sm:$0xff]  ;;  %v1851_v34 = vld [vmem:[#allocation2 + $0x618] sm:$0xff] }
 0x9c7   :  { %4031 = vmatprep.subr.bf16.mxu1 %v4030_v2 }
 0x9ca   :  { %4033 = vmatpush3.bf16.msra.mxu1 %v4030_v2 }
 0x9cb   :  { %4035 = vmatprep.subr.bf16.mxu1 %v4034_v7 }
 0x9ce   :  { %4037 = vmatpush3.bf16.msra.mxu1 %v4034_v7 }
 0x9cf   :  { %4039 = vmatprep.subr.bf16.mxu1 %v4038_v10 }
 0x9d2   :  { %4041 = vmatpush3.bf16.msra.mxu1 %v4038_v10 }
 0x9d3   :  { %4043 = vmatprep.subr.bf16.mxu1 %v4042_v3 }
 0x9d6   :  { %4045 = vmatpush3.bf16.msra.mxu1 %v4042_v3 }
 0x9d7   :  { %4047 = vmatprep.subr.bf16.mxu1 %v4046_v14 }
 0x9da   :  { %4049 = vmatpush3.bf16.msra.mxu1 %v4046_v14 }
 0x9db   :  { %4051 = vmatprep.subr.bf16.mxu1 %v4050_v22 }
 0x9de   :  { %4053 = vmatpush3.bf16.msra.mxu1 %v4050_v22 }
 0x9df   :  { %4055 = vmatprep.subr.bf16.mxu1 %v4054_v26 }
 0x9e1   :  { %3431 = vmatmul.mubr.f32.vlgmr.msra.gmra.mrb[4].mxu1 %v4763_v37  ;;  %v1629_v37 = vld [vmem:[#allocation2 + $0x5d8] sm:$0xff] }
 0x9e2   :  { %3433 = vmatprep.mubr.f32.mxu1 %v4765_v51  ;;  %4057 = vmatpush3.bf16.msra.mxu1 %v4054_v26  ;;  %v4074_v51 = vpack.c.bf16 %v1629_v37, %v1628_v62  ;;  %v1852_v62 = vld [vmem:[#allocation2 + $0x620] sm:$0xff]  ;;  %v1853_v37 = vld [vmem:[#allocation2 + $0x628] sm:$0xff] }
 0x9e3   :  { %4059 = vmatprep.subr.bf16.mxu1 %v4058_v29  ;;  %v4094_v60 = vpack.c.bf16 %v1853_v37, %v1852_v62  ;;  %v1833_v37 = vld [vmem:[#allocation2 + $0x690] sm:$0xff] }
 0x9e5   :  { %3434 = vmatmul.mubr.f32.gmra.mrb[6].mxu1 %v4761_v36  ;;  %v1632_v36 = vld [vmem:[#allocation2 + $0x5f0] sm:$0xff] }
 0x9e6   :  { %4061 = vmatpush3.bf16.msra.mxu1 %v4058_v29  ;;  %3468 = vmatprep.mubr.f32.mxu1 %v1407_v47  ;;  %v4082_v19 = vpack.c.bf16 %v1633_v39, %v1632_v36  ;;  %v1856_v39 = vld [vmem:[#allocation2 + $0x640] sm:$0xff] }
 0x9e7   :  { %4063 = vmatprep.subr.bf16.mxu1 %v4062_v32 }
 0x9ea   :  { %4065 = vmatpush3.bf16.msra.mxu1 %v4062_v32  ;;  %v4086_v32 = vpack.c.bf16 %v1849_v31, %v1848_v30 }
 0x9eb   :  { %4067 = vmatprep.subr.bf16.mxu1 %v4066_v35 }
 0x9ec   :  { %4087 = vmatprep.subr.bf16.mxu0 %v4086_v32 }
 0x9ed   :  { %4089 = vmatpush3.bf16.msra.mxu0 %v4086_v32 }
 0x9ee   :  { %4069 = vmatpush3.bf16.msra.mxu1 %v4066_v35  ;;  %v4090_v35 = vpack.c.bf16 %v1851_v34, %v1850_v33 }
 0x9ef   :  { %4071 = vmatprep.subr.bf16.mxu1 %v4070_v49 }
 0x9f0   :  { %4091 = vmatprep.subr.bf16.mxu0 %v4090_v35 }
 0x9f1   :  { %4093 = vmatpush3.bf16.msra.mxu0 %v4090_v35 }
 0x9f2   :  { %4073 = vmatpush3.bf16.msra.mxu1 %v4070_v49  ;;  %4095 = vmatprep.subr.bf16.mxu0 %v4094_v60 }
 0x9f3   :  { %4075 = vmatprep.subr.bf16.mxu1 %v4074_v51 }
 0x9f5   :  { %4097 = vmatpush3.bf16.msra.mxu0 %v4094_v60 }
 0x9f6   :  { %4077 = vmatpush3.bf16.msra.mxu1 %v4074_v51 }
 0x9f7   :  { %4079 = vmatprep.subr.bf16.mxu1 %v4078_v55 }
 0x9fa   :  { %4081 = vmatpush3.bf16.msra.mxu1 %v4078_v55  ;;  %v1855_v55 = vld [vmem:[#allocation2 + $0x638] sm:$0xff] }
 0x9fb   :  { %4083 = vmatprep.subr.bf16.mxu1 %v4082_v19  ;;  %v4098_v36 = vpack.c.bf16 %v1855_v55, %v1854_v52  ;;  %v1835_v55 = vld [vmem:[#allocation2 + $0x6a0] sm:$0xff] }
 0x9fd   :  { %4099 = vmatprep.subr.bf16.mxu0 %v4098_v36 }
 0x9fe   :  { %4085 = vmatpush3.bf16.msra.mxu1 %v4082_v19  ;;  %v1857_v19 = vld [vmem:[#allocation2 + $0x648] sm:$0xff]  ;;  %4101 = vmatpush3.bf16.msra.mxu0 %v4098_v36 }
 0x9ff   :  { %v1836_v36 = vld [vmem:[#allocation2 + $0x6a8] sm:$0xff] }
 0xa01   :  { %3469 = vmatmul.mubr.f32.vlgmr.msra.gmra.mrb[4].mxu1 %v1410_v20  ;;  %v4102_v20 = vpack.c.bf16 %v1857_v19, %v1856_v39  ;;  %v4126_v39 = vpack.c.bf16 %v1836_v36, %v1835_v55 }
 0xa02   :  { %3471 = vmatprep.mubr.f32.mxu1 %v4790_v54 }
 0xa03   :  { %4103 = vmatprep.subr.bf16.mxu0 %v4102_v20 }
 0xa04   :  { %4105 = vmatpush3.bf16.msra.mxu0 %v4102_v20  ;;  %v1837_v20 = vld [vmem:[#allocation2 + $0x6b0] sm:$0xff] }
 0xa05   :  { %3472 = vmatmul.mubr.f32.gmra.mrb[6].mxu1 %v1412_v43  ;;  %v1858_v43 = vld [vmem:[#allocation2 + $0x650] sm:$0xff] }
 0xad4   :  { %v4805_v40 = vpop.f32.mrb[4].mxu1 }
 0xad5   :  { %v1745_v41 = vmul.f32 %v4805_v40, %v4805_v40  ;;  %v4809_v44 = vpop.f32.mrb[5].mxu1 }
 0xad6   :  { %v1723_v45 = vadd.f32 %v4805_v40, %v4809_v44  ;;  %v1744_v46 = vmul.f32 %v4809_v44, %v4809_v44 }
 0xad8   :  { %v1748_v47 = vadd.f32 %v1745_v41, %v1744_v46  ;;  %v4815_v48 = vpop.f32.mrb[6].mxu1  ;;  %v1859_v41 = vld [vmem:[#allocation2 + $0x658] sm:$0xff]  ;;  %v1860_v46 = vld [vmem:[#allocation2 + $0x660] sm:$0xff] }
 0xad9   :  { %v4817_v54 = vpop.f32.mrb[7].mxu1  ;;  %v1747_v63 = vmul.f32 %v4815_v48, %v4815_v48 }
 0xada   :  { %v1724_v56 = vadd.f32 %v1723_v45, %v4817_v54  ;;  %v1746_v58 = vmul.f32 %v4817_v54, %v4817_v54  ;;  %v4106_v45 = vpack.c.bf16 %v1859_v41, %v1858_v43  ;;  %v1838_v43 = vld [vmem:[#allocation2 + $0x6b8] sm:$0xff] }
 0xadb   :  { %v4130_v41 = vpack.c.bf16 %v1838_v43, %v1837_v20 }
 0xadc   :  { %v1725_v0 = vadd.f32 %v4815_v48, %v1724_v56  ;;  %v1749_v2 = vadd.f32 %v1748_v47, %v1746_v58  ;;  %4107 = vmatprep.subr.bf16.mxu0 %v4106_v45  ;;  %v1861_v47 = vld [vmem:[#allocation2 + $0x668] sm:$0xff]  ;;  %v1862_v56 = vld [vmem:[#allocation2 + $0x670] sm:$0xff] }
 0xadd   :  { %v4110_v58 = vpack.c.bf16 %v1861_v47, %v1860_v46  ;;  %4109 = vmatpush3.bf16.msra.mxu0 %v4106_v45  ;;  %v1839_v45 = vld [vmem:[#allocation2 + $0x6c0] sm:$0xff]  ;;  %v1840_v46 = vld [vmem:[#allocation2 + $0x6c8] sm:$0xff] }
 0xade   :  { %v1726_v4 = vrot.slane %v1725_v0, 4  ;;  %v1750_v6 = vadd.f32 %v1749_v2, %v1747_v63  ;;  %v1863_v63 = vld [vmem:[#allocation2 + $0x678] sm:$0xff]  ;;  %v1831_v2 = vld [vmem:[#allocation2 + $0x680] sm:$0xff]  ;;  %v4134_v47 = vpack.c.bf16 %v1840_v46, %v1839_v45 }
 0xadf   :  { %4111 = vmatprep.subr.bf16.mxu0 %v4110_v58 }
 0xae0   :  { %v1727_v7 = vadd.f32 %v1726_v4, %v1725_v0  ;;  %v1751_v8 = vrot.slane %v1750_v6, 4  ;;  %v4114_v0 = vpack.c.bf16 %v1863_v63, %v1862_v56  ;;  %v1832_v4 = vld [vmem:[#allocation2 + $0x688] sm:$0xff]  ;;  %v1841_v56 = vld [vmem:[#allocation2 + $0x6d0] sm:$0xff] }
 0xae1   :  { %4113 = vmatpush3.bf16.msra.mxu0 %v4110_v58  ;;  %v1842_v58 = vld [vmem:[#allocation2 + $0x6d8] sm:$0xff] }
 0xae2   :  { %v1728_v9 = vrot.slane %v1727_v7, 2  ;;  %v1752_v10 = vadd.f32 %v1751_v8, %v1750_v6  ;;  %4115 = vmatprep.subr.bf16.mxu0 %v4114_v0  ;;  %v4118_v6 = vpack.c.bf16 %v1832_v4, %v1831_v2  ;;  %v4138_v63 = vpack.c.bf16 %v1842_v58, %v1841_v56  ;;  %v1844_v2 = vld [vmem:[#allocation2 + $0x6e8] sm:$0xff] }
 0xae4   :  { %v1729_v11 = vadd.f32 %v1728_v9, %v1727_v7  ;;  %v1753_v12 = vrot.slane %v1752_v10, 2 }
 0xae5   :  { %4117 = vmatpush3.bf16.msra.mxu0 %v4114_v0  ;;  %v1843_v0 = vld [vmem:[#allocation2 + $0x6e0] sm:$0xff] }
 0xae6   :  { %v1730_v3 = vrot.slane %v1729_v11, 1  ;;  %v1754_v13 = vadd.f32 %v1753_v12, %v1752_v10  ;;  %4119 = vmatprep.subr.bf16.mxu0 %v4118_v6  ;;  %v4142_v4 = vpack.c.bf16 %v1844_v2, %v1843_v0 }
 0xae8   :  { %v1731_v5 = vadd.f32 %v1730_v3, %v1729_v11  ;;  %v1755_v14 = vrot.slane %v1754_v13, 1 }
 0xaea   :  { %1732 = vrot.lane.b32.xlu0 %v1731_v5, %s4427_s13  ;;  %v1756_v15 = vadd.f32 %v1755_v14, %v1754_v13  ;;  %v1774_v14 = vld [vmem:[#allocation4 + $0x3] sm:$0x1] }
 0xaec   :  { %1757 = vrot.lane.b32.xlu1 %v1756_v15, %s4427_s13 }
 0xb5c   :  { %v1733_v21 = vpop.permute.xlu0 %1732 }
 0xb5d   :  { %v1734_v22 = vadd.f32 %v1733_v21, %v1731_v5 }
 0xb5e   :  { %v1758_v24 = vpop.permute.xlu1 %1757 }
 0xb5f   :  { %v1759_v25 = vadd.f32 %v1758_v24, %v1756_v15  ;;  %1735 = vrot.lane.b32.xlu0 %v1734_v22, %s4423_s25 }
 0xb61   :  { %1760 = vrot.lane.b32.xlu1 %v1759_v25, %s4423_s25 }
 0xbd1   :  { %v1736_v26 = vpop.permute.xlu0 %1735 }
 0xbd2   :  { %v1737_v27 = vadd.f32 %v1736_v26, %v1734_v22  ;;  %v1779_v22 = vld [vmem:[#allocation6 + $0x3] sm:$0x1] }
 0xbd3   :  { %v1761_v28 = vpop.permute.xlu1 %1760 }
 0xbd4   :  { %v1762_v29 = vadd.f32 %v1761_v28, %v1759_v25  ;;  %1738 = vrot.lane.b32.xlu0 %v1737_v27, %s4430_s9 }
 0xbd6   :  { %1763 = vrot.lane.b32.xlu1 %v1762_v29, %s4430_s9 }
 0xc46   :  { %v1739_v38 = vpop.permute.xlu0 %1738 }
 0xc47   :  { %v1740_v59 = vadd.f32 %v1739_v38, %v1737_v27 }
 0xc48   :  { %v1764_v49 = vpop.permute.xlu1 %1763 }
 0xc49   :  { %v1765_v51 = vadd.f32 %v1764_v49, %v1762_v29  ;;  %1741 = vrot.lane.b32.xlu0 %v1740_v59, %s4431_s10 }
 0xc4b   :  { %1766 = vrot.lane.b32.xlu1 %v1765_v51, %s4431_s10 }
 0xcbb   :  { %v1742_v7 = vpop.permute.xlu0 %1741 }
 0xcbc   :  { %v1743_v8 = vadd.f32 %v1742_v7, %v1740_v59  ;;  %v1846_v7 = vld [vmem:[#allocation2 + $0x6f8] sm:$0xff] }
 0xcbd   :  { %v1767_v9 = vpop.permute.xlu1 %1766 }
 0xcbe   :  { %v1769_v10 = vmul.f32 0.001953125, %v1743_v8  ;;  %v1768_v11 = vadd.f32 %v1767_v9, %v1765_v51  ;;  %v2035_v9 = vld [vmem:[#allocation2 + $0x700] sm:$0xff] }
 0xcc0   :  { %v1771_v12 = vmul.f32 %v1769_v10, %v1769_v10  ;;  %v1770_v3 = vmul.f32 0.001953125, %v1768_v11 }
 0xcc2   :  { %v1772_v13 = vsub.f32 %v1770_v3, %v1771_v12  ;;  %v2037_v12 = vld [vmem:[#allocation2 + $0x710] sm:$0xff]  ;;  %v2038_v3 = vld [vmem:[#allocation2 + $0x718] sm:$0xff] }
 0xcc4   :  { %v1775_v5 = vadd.f32 1e-05, %v1772_v13  ;;  %v4154_v13 = vpack.c.bf16 %v2038_v3, %v2037_v12 }
 0xcc6   :  { %4342 = vrsqrt.f32 %v1775_v5  ;;  %v2039_v5 = vld [vmem:[#allocation2 + $0x720] sm:$0xff] }
 0xcd0   :  { %v4343_v15 = vpop.eup %4342 }
 0xcd1   :  { %v1777_v21 = vmul.f32 %v4343_v15, %v1774_v14  ;;  %v2040_v14 = vld [vmem:[#allocation2 + $0x728] sm:$0xff] }
 0xcd3   :  { %v1780_v24 = vmul.f32 %v1777_v21, %v1769_v10  ;;  %v1786_v25 = vrot.slane %v1777_v21, %v4597_v18  ;;  %v2036_v10 = vld [vmem:[#allocation2 + $0x708] sm:$0xff] }
 0xcd4   :  { %v4150_v11 = vpack.c.bf16 %v2036_v10, %v2035_v9 }
 0xcd5   :  { %v1781_v26 = vsub.f32 %v1779_v22, %v1780_v24  ;;  %v1788_v27 = vmul.f32 %v1786_v25, %v4809_v44  ;;  %v1791_v29 = vmul.f32 %v4815_v48, %v1786_v25  ;;  %v1789_v30 = vmul.f32 %v4805_v40, %v1786_v25  ;;  %v2041_v24 = vld [vmem:[#allocation2 + $0x730] sm:$0xff] }
 0xcd6   :  { %v1790_v31 = vmul.f32 %v1786_v25, %v4817_v54  ;;  %v4158_v22 = vpack.c.bf16 %v2040_v14, %v2039_v5  ;;  %v2042_v25 = vld [vmem:[#allocation2 + $0x738] sm:$0xff] }
 0xcd7   :  { %v1796_v28 = vrot.slane %v1781_v26, %v4597_v18 }
 0xcd9   :  { %v1798_v32 = vadd.f32 %v1796_v28, %v1788_v27  ;;  %v1801_v33 = vadd.f32 %v1796_v28, %v1791_v29  ;;  %v1799_v34 = vadd.f32 %v1796_v28, %v1789_v30  ;;  %v1800_v35 = vadd.f32 %v1796_v28, %v1790_v31  ;;  %v2043_v28 = vld [vmem:[#allocation2 + $0x740] sm:$0xff]  ;;  %v2044_v29 = vld [vmem:[#allocation2 + $0x748] sm:$0xff]  ;;  %v2045_v31 = vld [vmem:[#allocation2 + $0x750] sm:$0xff] }
 0xcda   :  { %v4162_v27 = vpack.c.bf16 %v2042_v25, %v2041_v24  ;;  %v4166_v30 = vpack.c.bf16 %v2044_v29, %v2043_v28  ;;  %v2266_v28 = vld [vmem:[#allocation2 + $0x788] sm:$0xff] }
 0xcdb   :  { %v4840_v38 = vadd.f32 %v1798_v32, %v4684_v57  ;;  %v4843_v59 = vadd.f32 %v1801_v33, %v4687_v61  ;;  %v4846_v44 = vadd.f32 %v1799_v34, %v4690_v53  ;;  %v4849_v49 = vadd.f32 %v1800_v35, %v4693_v42  ;;  %v1834_v57 = vld [vmem:[#allocation2 + $0x698] sm:$0xff]  ;;  %v2047_v34 = vld [vmem:[#allocation2 + $0x760] sm:$0xff]  ;;  %v2048_v35 = vld [vmem:[#allocation2 + $0x768] sm:$0xff] }
 0xcdc   :  { %v4122_v42 = vpack.c.bf16 %v1834_v57, %v1833_v37  ;;  %v2046_v32 = vld [vmem:[#allocation2 + $0x758] sm:$0xff] }
 0xcdd   :  { %v1806_v40 = vrot.slane %v4840_v38, 7  ;;  %v1809_v48 = vrot.slane %v4843_v59, 7  ;;  %v1807_v54 = vrot.slane %v4846_v44, 7  ;;  %v1808_v62 = vrot.slane %v4849_v49, 7 }
 0xcde   :  { %v1818_v15 = vrot.slane %v4840_v38, 1  ;;  %v1819_v21 = vrot.slane %v4846_v44, 1  ;;  %v4170_v33 = vpack.c.bf16 %v2046_v32, %v2045_v31  ;;  %v1820_v37 = vrot.slane %v4849_v49, 1  ;;  %v2268_v31 = vld [vmem:[#allocation2 + $0x798] sm:$0xff] }
 0xcdf   :  { %v1813_v61 = vsel %vm143_vm3, %v1809_v48, %v1806_v40  ;;  %v1811_v53 = vsel %vm143_vm3, %v1807_v54, %v1808_v62  ;;  %v1812_v60 = vsel %vm143_vm3, %v1806_v40, %v1807_v54  ;;  %v1810_v19 = vsel %vm143_vm3, %v1808_v62, %v1809_v48  ;;  %v2049_v48 = vld [vmem:[#allocation2 + $0x770] sm:$0xff]  ;;  %v2050_v54 = vld [vmem:[#allocation2 + $0x778] sm:$0xff] }
 0xce0   :  { %v1814_v51 = vmul.f32 %v4520_v23, %v1813_v61  ;;  %v1816_v52 = vmul.f32 %v4540_v50, %v1811_v53  ;;  %v1824_v26 = vsel %vm156_vm5, %v1818_v15, %v1819_v21  ;;  %v4174_v40 = vpack.c.bf16 %v2048_v35, %v2047_v34 }
 0xce1   :  { %v4178_v62 = vpack.c.bf16 %v2050_v54, %v2049_v48  ;;  %v1823_v57 = vsel %vm156_vm5, %v1819_v21, %v1820_v37  ;;  %v1821_v61 = vrot.slane %v4843_v59, 1  ;;  %v2270_v48 = vld [vmem:[#allocation2 + $0x7a8] sm:$0xff] }
 0xce2   :  { %3506 = vmatprep.mubr.f32.mxu0 %v1814_v51  ;;  %v1827_v53 = vmul.f32 %v4505_v16, %v1823_v57  ;;  %v2272_v57 = vld [vmem:[#allocation2 + $0x7b8] sm:$0xff] }
 0xce3   :  { %3507 = vmatmul.mubr.f32.vlgmr.msra.gmra.mrb[8].mxu0 %v1812_v60  ;;  %v1825_v51 = vsel %vm156_vm5, %v1821_v61, %v1818_v15 }
 0xce4   :  { %4121 = vmatpush3.bf16.msra.mxu0 %v4118_v6  ;;  %3509 = vmatprep.mubr.f32.mxu0 %v1816_v52  ;;  %v1845_v6 = vld [vmem:[#allocation2 + $0x6f0] sm:$0xff]  ;;  %v1829_v60 = vmul.f32 %v4507_v17, %v1825_v51  ;;  %v2274_v51 = vld [vmem:[#allocation2 + $0x7c8] sm:$0xff] }
 0xce5   :  { %4123 = vmatprep.subr.bf16.mxu0 %v4122_v42  ;;  %v4146_v8 = vpack.c.bf16 %v1846_v7, %v1845_v6 }
 0xce7   :  { %3510 = vmatmul.mubr.f32.gmra.mrb[10].mxu0 %v1810_v19 }
 0xce8   :  { %4125 = vmatpush3.bf16.msra.mxu0 %v4122_v42  ;;  %3544 = vmatprep.mubr.f32.mxu0 %v4840_v38  ;;  %v1822_v42 = vsel %vm156_vm5, %v1820_v37, %v1821_v61  ;;  %v2271_v37 = vld [vmem:[#allocation2 + $0x7b0] sm:$0xff] }
 0xce9   :  { %4127 = vmatprep.subr.bf16.mxu0 %v4126_v39  ;;  %v4194_v61 = vpack.c.bf16 %v2272_v57, %v2271_v37 }
 0xcec   :  { %4129 = vmatpush3.bf16.msra.mxu0 %v4126_v39 }
 0xced   :  { %4131 = vmatprep.subr.bf16.mxu0 %v4130_v41 }
 0xcf0   :  { %4133 = vmatpush3.bf16.msra.mxu0 %v4130_v41 }
 0xcf1   :  { %4135 = vmatprep.subr.bf16.mxu0 %v4134_v47 }
 0xcf4   :  { %4137 = vmatpush3.bf16.msra.mxu0 %v4134_v47 }
 0xcf5   :  { %4139 = vmatprep.subr.bf16.mxu0 %v4138_v63 }
 0xcf8   :  { %4141 = vmatpush3.bf16.msra.mxu0 %v4138_v63 }
 0xcf9   :  { %4143 = vmatprep.subr.bf16.mxu0 %v4142_v4 }
 0xcfc   :  { %4145 = vmatpush3.bf16.msra.mxu0 %v4142_v4 }
 0xcfd   :  { %4147 = vmatprep.subr.bf16.mxu0 %v4146_v8 }
 0xd00   :  { %4149 = vmatpush3.bf16.msra.mxu0 %v4146_v8 }
 0xd01   :  { %4151 = vmatprep.subr.bf16.mxu0 %v4150_v11 }
 0xd03   :  { %3545 = vmatmul.mubr.f32.vlgmr.msra.gmra.mrb[8].mxu0 %v4846_v44 }
 0xd04   :  { %3547 = vmatprep.mubr.f32.mxu0 %v4849_v49  ;;  %4153 = vmatpush3.bf16.msra.mxu0 %v4150_v11 }
 0xd05   :  { %4155 = vmatprep.subr.bf16.mxu0 %v4154_v13 }
 0xd07   :  { %3548 = vmatmul.mubr.f32.gmra.mrb[10].mxu0 %v4843_v59 }
 0xd08   :  { %4157 = vmatpush3.bf16.msra.mxu0 %v4154_v13  ;;  %3582 = vmatprep.mubr.f32.mxu0 %v1824_v26 }
 0xd09   :  { %4159 = vmatprep.subr.bf16.mxu0 %v4158_v22 }
 0xd0c   :  { %4161 = vmatpush3.bf16.msra.mxu0 %v4158_v22 }
 0xd0d   :  { %4163 = vmatprep.subr.bf16.mxu0 %v4162_v27 }
 0xd10   :  { %4165 = vmatpush3.bf16.msra.mxu0 %v4162_v27  ;;  %v2265_v27 = vld [vmem:[#allocation2 + $0x780] sm:$0xff] }
 0xd11   :  { %4167 = vmatprep.subr.bf16.mxu0 %v4166_v30  ;;  %v4182_v29 = vpack.c.bf16 %v2266_v28, %v2265_v27 }
 0xd13   :  { %4183 = vmatprep.subr.bf16.mxu1 %v4182_v29 }
 0xd14   :  { %4169 = vmatpush3.bf16.msra.mxu0 %v4166_v30  ;;  %v2267_v30 = vld [vmem:[#allocation2 + $0x790] sm:$0xff]  ;;  %4185 = vmatpush3.bf16.msra.mxu1 %v4182_v29 }
 0xd15   :  { %4171 = vmatprep.subr.bf16.mxu0 %v4170_v33  ;;  %v4186_v32 = vpack.c.bf16 %v2268_v31, %v2267_v30 }
 0xd17   :  { %4187 = vmatprep.subr.bf16.mxu1 %v4186_v32 }
 0xd18   :  { %4173 = vmatpush3.bf16.msra.mxu0 %v4170_v33  ;;  %4189 = vmatpush3.bf16.msra.mxu1 %v4186_v32 }
 0xd19   :  { %4175 = vmatprep.subr.bf16.mxu0 %v4174_v40 }
 0xd1c   :  { %4177 = vmatpush3.bf16.msra.mxu0 %v4174_v40  ;;  %v2269_v40 = vld [vmem:[#allocation2 + $0x7a0] sm:$0xff] }
 0xd1d   :  { %4179 = vmatprep.subr.bf16.mxu0 %v4178_v62 }
 0xd20   :  { %4181 = vmatpush3.bf16.msra.mxu0 %v4178_v62  ;;  %v4190_v62 = vpack.c.bf16 %v2270_v48, %v2269_v40 }
 0xd22   :  { %4191 = vmatprep.subr.bf16.mxu1 %v4190_v62 }
 0xd23   :  { %3583 = vmatmul.mubr.f32.vlgmr.msra.gmra.mrb[8].mxu0 %v1827_v53  ;;  %4193 = vmatpush3.bf16.msra.mxu1 %v4190_v62  ;;  %v2273_v53 = vld [vmem:[#allocation2 + $0x7c0] sm:$0xff] }
 0xd24   :  { %3585 = vmatprep.mubr.f32.mxu0 %v1822_v42  ;;  %4195 = vmatprep.subr.bf16.mxu1 %v4194_v61  ;;  %v4198_v42 = vpack.c.bf16 %v2274_v51, %v2273_v53 }
 0xd27   :  { %3586 = vmatmul.mubr.f32.gmra.mrb[10].mxu0 %v1829_v60  ;;  %4197 = vmatpush3.bf16.msra.mxu1 %v4194_v61  ;;  %v2275_v60 = vld [vmem:[#allocation2 + $0x7d0] sm:$0xff] }
 0xd28   :  { %4199 = vmatprep.subr.bf16.mxu1 %v4198_v42 }
 0xd2b   :  { %4201 = vmatpush3.bf16.msra.mxu1 %v4198_v42 }
 0xdf6   :  { %v4883_v52 = vpop.f32.mrb[8].mxu0 }
 0xdf7   :  { %v2162_v55 = vmul.f32 %v4883_v52, %v4883_v52  ;;  %v4887_v36 = vpop.f32.mrb[9].mxu0 }
 0xdf8   :  { %v2140_v39 = vadd.f32 %v4883_v52, %v4887_v36  ;;  %v2161_v19 = vmul.f32 %v4887_v36, %v4887_v36 }
 0xdfa   :  { %v2165_v20 = vadd.f32 %v2162_v55, %v2161_v19  ;;  %v4893_v43 = vpop.f32.mrb[10].mxu0  ;;  %v2276_v55 = vld [vmem:[#allocation2 + $0x7d8] sm:$0xff]  ;;  %v2277_v19 = vld [vmem:[#allocation2 + $0x7e0] sm:$0xff] }
 0xdfb   :  { %v4895_v41 = vpop.f32.mrb[11].mxu0  ;;  %v2164_v47 = vmul.f32 %v4893_v43, %v4893_v43 }
 0xdfc   :  { %v2141_v45 = vadd.f32 %v2140_v39, %v4895_v41  ;;  %v2163_v46 = vmul.f32 %v4895_v41, %v4895_v41  ;;  %v4202_v39 = vpack.c.bf16 %v2276_v55, %v2275_v60 }
 0xdfe   :  { %v2142_v56 = vadd.f32 %v4893_v43, %v2141_v45  ;;  %v2166_v58 = vadd.f32 %v2165_v20, %v2163_v46  ;;  %4203 = vmatprep.subr.bf16.mxu1 %v4202_v39  ;;  %v2278_v20 = vld [vmem:[#allocation2 + $0x7e8] sm:$0xff]  ;;  %v2279_v45 = vld [vmem:[#allocation2 + $0x7f0] sm:$0xff] }
 0xdff   :  { %v4206_v46 = vpack.c.bf16 %v2278_v20, %v2277_v19  ;;  %4205 = vmatpush3.bf16.msra.mxu1 %v4202_v39 }
 0xe00   :  { %v2143_v63 = vrot.slane %v2142_v56, 4  ;;  %v2167_v0 = vadd.f32 %v2166_v58, %v2164_v47  ;;  %v2280_v47 = vld [vmem:[#allocation2 + $0x7f8] sm:$0xff]  ;;  %v2248_v58 = vld [vmem:[#allocation2 + $0x800] sm:$0xff] }
 0xe01   :  { %4207 = vmatprep.subr.bf16.mxu1 %v4206_v46 }
 0xe02   :  { %v2144_v2 = vadd.f32 %v2143_v63, %v2142_v56  ;;  %v2168_v4 = vrot.slane %v2167_v0, 4  ;;  %v4210_v56 = vpack.c.bf16 %v2280_v47, %v2279_v45  ;;  %v2249_v63 = vld [vmem:[#allocation2 + $0x808] sm:$0xff] }
 0xe03   :  { %4209 = vmatpush3.bf16.msra.mxu1 %v4206_v46 }
 0xe04   :  { %v2145_v6 = vrot.slane %v2144_v2, 2  ;;  %v2169_v7 = vadd.f32 %v2168_v4, %v2167_v0  ;;  %4211 = vmatprep.subr.bf16.mxu1 %v4210_v56  ;;  %v4214_v0 = vpack.c.bf16 %v2249_v63, %v2248_v58  ;;  %v2254_v63 = vld [vmem:[#allocation2 + $0x830] sm:$0xff] }
 0xe06   :  { %v2146_v8 = vadd.f32 %v2145_v6, %v2144_v2  ;;  %v2170_v9 = vrot.slane %v2169_v7, 2 }
 0xe07   :  { %4213 = vmatpush3.bf16.msra.mxu1 %v4210_v56  ;;  %v2253_v56 = vld [vmem:[#allocation2 + $0x828] sm:$0xff] }
 0xe08   :  { %v2147_v10 = vrot.slane %v2146_v8, 1  ;;  %v2171_v11 = vadd.f32 %v2170_v9, %v2169_v7  ;;  %4215 = vmatprep.subr.bf16.mxu1 %v4214_v0 }
 0xe0a   :  { %v2148_v12 = vadd.f32 %v2147_v10, %v2146_v8  ;;  %v2172_v3 = vrot.slane %v2171_v11, 1 }
 0xe0c   :  { %2149 = vrot.lane.b32.xlu0 %v2148_v12, %s4427_s13  ;;  %v2173_v13 = vadd.f32 %v2172_v3, %v2171_v11  ;;  %v2191_v3 = vld [vmem:[#allocation4 + $0x4] sm:$0x1] }
 0xe0e   :  { %2174 = vrot.lane.b32.xlu1 %v2173_v13, %s4427_s13 }
 0xe7e   :  { %v2150_v5 = vpop.permute.xlu0 %2149 }
 0xe7f   :  { %v2151_v14 = vadd.f32 %v2150_v5, %v2148_v12 }
 0xe80   :  { %v2175_v15 = vpop.permute.xlu1 %2174 }
 0xe81   :  { %v2176_v21 = vadd.f32 %v2175_v15, %v2173_v13  ;;  %2152 = vrot.lane.b32.xlu0 %v2151_v14, %s4423_s25 }
 0xe83   :  { %2177 = vrot.lane.b32.xlu1 %v2176_v21, %s4423_s25 }
 0xef3   :  { %v2153_v22 = vpop.permute.xlu0 %2152 }
 0xef4   :  { %v2154_v24 = vadd.f32 %v2153_v22, %v2151_v14  ;;  %v2196_v14 = vld [vmem:[#allocation6 + $0x4] sm:$0x1] }
 0xef5   :  { %v2178_v25 = vpop.permute.xlu1 %2177 }
 0xef6   :  { %v2179_v26 = vadd.f32 %v2178_v25, %v2176_v21  ;;  %2155 = vrot.lane.b32.xlu0 %v2154_v24, %s4430_s9 }
 0xef8   :  { %2180 = vrot.lane.b32.xlu1 %v2179_v26, %s4430_s9 }
 0xf68   :  { %v2156_v33 = vpop.permute.xlu0 %2155 }
 0xf69   :  { %v2157_v34 = vadd.f32 %v2156_v33, %v2154_v24 }
 0xf6a   :  { %v2181_v35 = vpop.permute.xlu1 %2180 }
 0xf6b   :  { %v2182_v54 = vadd.f32 %v2181_v35, %v2179_v26  ;;  %2158 = vrot.lane.b32.xlu0 %v2157_v34, %s4431_s10 }
 0xf6d   :  { %2183 = vrot.lane.b32.xlu1 %v2182_v54, %s4431_s10 }
 0xfdd   :  { %v2159_v2 = vpop.permute.xlu0 %2158 }
 0xfde   :  { %v2160_v4 = vadd.f32 %v2159_v2, %v2157_v34  ;;  %v2255_v2 = vld [vmem:[#allocation2 + $0x838] sm:$0xff] }
 0xfdf   :  { %v2184_v6 = vpop.permute.xlu1 %2183 }
 0xfe0   :  { %v2186_v7 = vmul.f32 0.001953125, %v2160_v4  ;;  %v2185_v8 = vadd.f32 %v2184_v6, %v2182_v54  ;;  %v2250_v54 = vld [vmem:[#allocation2 + $0x810] sm:$0xff]  ;;  %v4226_v4 = vpack.c.bf16 %v2255_v2, %v2254_v63  ;;  %v2257_v6 = vld [vmem:[#allocation2 + $0x848] sm:$0xff] }
 0xfe2   :  { %v2188_v9 = vmul.f32 %v2186_v7, %v2186_v7  ;;  %v2187_v10 = vmul.f32 0.001953125, %v2185_v8  ;;  %v2259_v8 = vld [vmem:[#allocation2 + $0x858] sm:$0xff] }
 0xfe4   :  { %v2189_v11 = vsub.f32 %v2187_v10, %v2188_v9  ;;  %v2260_v9 = vld [vmem:[#allocation2 + $0x860] sm:$0xff]  ;;  %v2261_v10 = vld [vmem:[#allocation2 + $0x868] sm:$0xff] }
 0xfe6   :  { %v2192_v12 = vadd.f32 1e-05, %v2189_v11  ;;  %v4238_v11 = vpack.c.bf16 %v2261_v10, %v2260_v9 }
 0xfe8   :  { %4344 = vrsqrt.f32 %v2192_v12  ;;  %v2262_v12 = vld [vmem:[#allocation2 + $0x870] sm:$0xff] }
 0xff2   :  { %v4345_v13 = vpop.eup %4344 }
 0xff3   :  { %v2194_v5 = vmul.f32 %v4345_v13, %v2191_v3  ;;  %v2263_v3 = vld [vmem:[#allocation2 + $0x878] sm:$0xff] }
 0xff4   :  { %v4242_v13 = vpack.c.bf16 %v2263_v3, %v2262_v12 }
 0xff5   :  { %v2197_v15 = vmul.f32 %v2194_v5, %v2186_v7  ;;  %v2203_v21 = vrot.slane %v2194_v5, %v4597_v18  ;;  %v4230_v7 = vpack.c.bf16 %v2257_v6, %v2256_v1  ;;  %v2452_v5 = vld [vmem:[#allocation2 + $0x880] sm:$0xff] }
 0xff7   :  { %v2198_v22 = vsub.f32 %v2196_v14, %v2197_v15  ;;  %v2205_v24 = vmul.f32 %v2203_v21, %v4887_v36  ;;  %v2208_v26 = vmul.f32 %v4893_v43, %v2203_v21  ;;  %v2206_v27 = vmul.f32 %v4883_v52, %v2203_v21  ;;  %v2453_v14 = vld [vmem:[#allocation2 + $0x888] sm:$0xff] }
 0xff8   :  { %v2207_v28 = vmul.f32 %v2203_v21, %v4895_v41  ;;  %v2251_v41 = vld [vmem:[#allocation2 + $0x818] sm:$0xff]  ;;  %v4246_v15 = vpack.c.bf16 %v2453_v14, %v2452_v5  ;;  %v2454_v21 = vld [vmem:[#allocation2 + $0x890] sm:$0xff] }
 0xff9   :  { %v2213_v25 = vrot.slane %v2198_v22, %v4597_v18  ;;  %v4218_v20 = vpack.c.bf16 %v2251_v41, %v2250_v54  ;;  %v2455_v22 = vld [vmem:[#allocation2 + $0x898] sm:$0xff] }
 0xffa   :  { %v2467_v54 = vld [vmem:[#allocation2 + $0x8f8] sm:$0xff] }
 0xffb   :  { %v2215_v29 = vadd.f32 %v2213_v25, %v2205_v24  ;;  %v2218_v30 = vadd.f32 %v2213_v25, %v2208_v26  ;;  %v2216_v31 = vadd.f32 %v2213_v25, %v2206_v27  ;;  %v2217_v32 = vadd.f32 %v2213_v25, %v2207_v28  ;;  %v2456_v25 = vld [vmem:[#allocation2 + $0x8a0] sm:$0xff]  ;;  %v2457_v26 = vld [vmem:[#allocation2 + $0x8a8] sm:$0xff]  ;;  %v2458_v28 = vld [vmem:[#allocation2 + $0x8b0] sm:$0xff] }
 0xffc   :  { %v4250_v24 = vpack.c.bf16 %v2455_v22, %v2454_v21  ;;  %v4254_v27 = vpack.c.bf16 %v2457_v26, %v2456_v25 }
 0xffd   :  { %v2219_v33 = vmax.f32 %v2215_v29, 0.0  ;;  %v4917_v34 = vmax.f32 %v2218_v30, 0.0  ;;  %v4919_v35 = vmax.f32 %v2216_v31, 0.0  ;;  %v4921_v40 = vmax.f32 %v2217_v32, 0.0  ;;  %v2459_v29 = vld [vmem:[#allocation2 + $0x8b8] sm:$0xff]  ;;  %v2460_v31 = vld [vmem:[#allocation2 + $0x8c0] sm:$0xff] }
 0xffe   :  { %v4258_v30 = vpack.c.bf16 %v2459_v29, %v2458_v28  ;;  %v2461_v32 = vld [vmem:[#allocation2 + $0x8c8] sm:$0xff] }
 0xfff   :  { %v2223_v36 = vrot.slane %v2219_v33, 7  ;;  %v2226_v48 = vrot.slane %v4917_v34, 7  ;;  %v2224_v43 = vrot.slane %v4919_v35, 7  ;;  %v2225_v52 = vrot.slane %v4921_v40, 7 }
0x1000   :  { %v2235_v62 = vrot.slane %v2219_v33, 1  ;;  %v2236_v37 = vrot.slane %v4919_v35, 1  ;;  %v2237_v57 = vrot.slane %v4921_v40, 1  ;;  %v2238_v61 = vrot.slane %v4917_v34, 1 }
0x1001   :  { %v2230_v53 = vsel %vm143_vm3, %v2226_v48, %v2223_v36  ;;  %v2229_v51 = vsel %vm143_vm3, %v2223_v36, %v2224_v43  ;;  %v2228_v42 = vsel %vm143_vm3, %v2224_v43, %v2225_v52  ;;  %v2227_v60 = vsel %vm143_vm3, %v2225_v52, %v2226_v48  ;;  %v2462_v36 = vld [vmem:[#allocation2 + $0x8d0] sm:$0xff]  ;;  %v2464_v48 = vld [vmem:[#allocation2 + $0x8e0] sm:$0xff]  ;;  %v2465_v43 = vld [vmem:[#allocation2 + $0x8e8] sm:$0xff] }
0x1002   :  { %v2231_v55 = vmul.f32 %v4520_v23, %v2230_v53  ;;  %v4940_v39 = vsel %vm156_vm5, %v2236_v37, %v2237_v57  ;;  %v2241_v19 = vsel %vm156_vm5, %v2235_v62, %v2236_v37  ;;  %v4946_v45 = vsel %vm156_vm5, %v2237_v57, %v2238_v61  ;;  %v2252_v23 = vld [vmem:[#allocation2 + $0x820] sm:$0xff] }
0x1003   :  { %v4950_v46 = vsel %vm156_vm5, %v2238_v61, %v2235_v62  ;;  %v2233_v47 = vmul.f32 %v4540_v50, %v2228_v42  ;;  %v4222_v58 = vpack.c.bf16 %v2253_v56, %v2252_v23  ;;  %v2258_v50 = vld [vmem:[#allocation2 + $0x850] sm:$0xff]  ;;  %v4270_v52 = vpack.c.bf16 %v2465_v43, %v2464_v48 }
0x1004   :  { %3620 = vmatprep.mubr.f32.mxu1 %v2231_v55  ;;  %v2244_v62 = vmul.f32 %v4505_v16, %v4940_v39  ;;  %v2246_v37 = vmul.f32 %v4507_v17, %v4950_v46 }
0x1005   :  { %3621 = vmatmul.mubr.f32.vlgmr.msra.gmra.mrb[8].mxu1 %v2229_v51 }
0x1006   :  { %4217 = vmatpush3.bf16.msra.mxu1 %v4214_v0  ;;  %3623 = vmatprep.mubr.f32.mxu1 %v2233_v47  ;;  %v4234_v0 = vpack.c.bf16 %v2259_v8, %v2258_v50 }
0x1007   :  { %4219 = vmatprep.subr.bf16.mxu1 %v4218_v20 }
0x1009   :  { %3624 = vmatmul.mubr.f32.gmra.mrb[10].mxu1 %v2227_v60 }
0x100a   :  { %4221 = vmatpush3.bf16.msra.mxu1 %v4218_v20  ;;  %3658 = vmatprep.mubr.f32.mxu1 %v2219_v33  ;;  %v4262_v33 = vpack.c.bf16 %v2461_v32, %v2460_v31 }
0x100b   :  { %4223 = vmatprep.subr.bf16.mxu1 %v4222_v58 }
0x100e   :  { %4225 = vmatpush3.bf16.msra.mxu1 %v4222_v58 }
0x100f   :  { %4227 = vmatprep.subr.bf16.mxu1 %v4226_v4 }
0x1012   :  { %4229 = vmatpush3.bf16.msra.mxu1 %v4226_v4 }
0x1013   :  { %4231 = vmatprep.subr.bf16.mxu1 %v4230_v7 }
0x1016   :  { %4233 = vmatpush3.bf16.msra.mxu1 %v4230_v7 }
0x1017   :  { %4235 = vmatprep.subr.bf16.mxu1 %v4234_v0 }
0x101a   :  { %4237 = vmatpush3.bf16.msra.mxu1 %v4234_v0 }
0x101b   :  { %4239 = vmatprep.subr.bf16.mxu1 %v4238_v11 }
0x101e   :  { %4241 = vmatpush3.bf16.msra.mxu1 %v4238_v11 }
0x101f   :  { %4243 = vmatprep.subr.bf16.mxu1 %v4242_v13 }
0x1022   :  { %4245 = vmatpush3.bf16.msra.mxu1 %v4242_v13 }
0x1023   :  { %4247 = vmatprep.subr.bf16.mxu1 %v4246_v15 }
0x1025   :  { %3659 = vmatmul.mubr.f32.vlgmr.msra.gmra.mrb[8].mxu1 %v4919_v35  ;;  %v2463_v35 = vld [vmem:[#allocation2 + $0x8d8] sm:$0xff] }
0x1026   :  { %3661 = vmatprep.mubr.f32.mxu1 %v4921_v40  ;;  %4249 = vmatpush3.bf16.msra.mxu1 %v4246_v15  ;;  %v4266_v40 = vpack.c.bf16 %v2463_v35, %v2462_v36 }
0x1027   :  { %4251 = vmatprep.subr.bf16.mxu1 %v4250_v24 }
0x1029   :  { %3662 = vmatmul.mubr.f32.gmra.mrb[10].mxu1 %v4917_v34  ;;  %v2466_v34 = vld [vmem:[#allocation2 + $0x8f0] sm:$0xff] }
0x102a   :  { %4253 = vmatpush3.bf16.msra.mxu1 %v4250_v24  ;;  %3696 = vmatprep.mubr.f32.mxu1 %v2241_v19  ;;  %v4274_v41 = vpack.c.bf16 %v2467_v54, %v2466_v34 }
0x102b   :  { %4255 = vmatprep.subr.bf16.mxu1 %v4254_v27 }
0x102e   :  { %4257 = vmatpush3.bf16.msra.mxu1 %v4254_v27 }
0x102f   :  { %4259 = vmatprep.subr.bf16.mxu1 %v4258_v30 }
0x1032   :  { %4261 = vmatpush3.bf16.msra.mxu1 %v4258_v30 }
0x1033   :  { %4263 = vmatprep.subr.bf16.mxu1 %v4262_v33 }
0x1036   :  { %4265 = vmatpush3.bf16.msra.mxu1 %v4262_v33  ;;  %v2608_v33 = vld [vmem:[#allocation4 + $0x5] sm:$0x1] }
0x1037   :  { %4267 = vmatprep.subr.bf16.mxu1 %v4266_v40 }
0x103a   :  { %4269 = vmatpush3.bf16.msra.mxu1 %v4266_v40  ;;  %v2613_v40 = vld [vmem:[#allocation6 + $0x5] sm:$0x1] }
0x103b   :  { %4271 = vmatprep.subr.bf16.mxu1 %v4270_v52 }
0x103e   :  { %4273 = vmatpush3.bf16.msra.mxu1 %v4270_v52 }
0x103f   :  { %4275 = vmatprep.subr.bf16.mxu1 %v4274_v41 }
0x1042   :  { %4277 = vmatpush3.bf16.msra.mxu1 %v4274_v41 }
0x1045   :  { %3697 = vmatmul.mubr.f32.vlgmr.msra.gmra.mrb[8].mxu1 %v2244_v62 }
0x1046   :  { %3699 = vmatprep.mubr.f32.mxu1 %v4946_v45 }
0x1049   :  { %3700 = vmatmul.mubr.f32.gmra.mrb[10].mxu1 %v2246_v37 }
0x1118   :  { %v4961_v57 = vpop.f32.mrb[8].mxu1 }
0x1119   :  { %v2579_v61 = vmul.f32 %v4961_v57, %v4961_v57  ;;  %v2534_v53 = vpop.f32.mrb[9].mxu1 }
0x111a   :  { %v2557_v51 = vadd.f32 %v4961_v57, %v2534_v53  ;;  %v2578_v42 = vmul.f32 %v2534_v53, %v2534_v53 }
0x111c   :  { %v2582_v60 = vadd.f32 %v2579_v61, %v2578_v42  ;;  %v3701_v55 = vpop.f32.mrb[10].mxu1 }
0x111d   :  { %v2544_v19 = vpop.f32.mrb[11].mxu1  ;;  %v2581_v20 = vmul.f32 %v3701_v55, %v3701_v55 }
0x111e   :  { %v2558_v16 = vadd.f32 %v2557_v51, %v2544_v19  ;;  %v2580_v39 = vmul.f32 %v2544_v19, %v2544_v19 }
0x1120   :  { %v2559_v45 = vadd.f32 %v3701_v55, %v2558_v16  ;;  %v2583_v47 = vadd.f32 %v2582_v60, %v2580_v39 }
0x1122   :  { %v2560_v23 = vrot.slane %v2559_v45, 4  ;;  %v2584_v17 = vadd.f32 %v2583_v47, %v2581_v20 }
0x1124   :  { %v2561_v46 = vadd.f32 %v2560_v23, %v2559_v45  ;;  %v2585_v56 = vrot.slane %v2584_v17, 4 }
0x1126   :  { %v2562_v58 = vrot.slane %v2561_v46, 2  ;;  %v2586_v63 = vadd.f32 %v2585_v56, %v2584_v17 }
0x1128   :  { %v2563_v2 = vadd.f32 %v2562_v58, %v2561_v46  ;;  %v2587_v4 = vrot.slane %v2586_v63, 2 }
0x112a   :  { %v2564_v1 = vrot.slane %v2563_v2, 1  ;;  %v2588_v6 = vadd.f32 %v2587_v4, %v2586_v63 }
0x112c   :  { %v2565_v7 = vadd.f32 %v2564_v1, %v2563_v2  ;;  %v2589_v50 = vrot.slane %v2588_v6, 1 }
0x112e   :  { %2566 = vrot.lane.b32.xlu0 %v2565_v7, %s4427_s13  ;;  %v2590_v8 = vadd.f32 %v2589_v50, %v2588_v6 }
0x1130   :  { %2591 = vrot.lane.b32.xlu1 %v2590_v8, %s4427_s13 }
0x11a0   :  { %v2567_v0 = vpop.permute.xlu0 %2566 }
0x11a1   :  { %v2568_v9 = vadd.f32 %v2567_v0, %v2565_v7 }
0x11a2   :  { %v2592_v10 = vpop.permute.xlu1 %2591 }
0x11a3   :  { %v2593_v11 = vadd.f32 %v2592_v10, %v2590_v8  ;;  %2569 = vrot.lane.b32.xlu0 %v2568_v9, %s4423_s25 }
0x11a5   :  { %2594 = vrot.lane.b32.xlu1 %v2593_v11, %s4423_s25 }
0x1215   :  { %v2570_v12 = vpop.permute.xlu0 %2569 }
0x1216   :  { %v2571_v3 = vadd.f32 %v2570_v12, %v2568_v9 }
0x1217   :  { %v2595_v13 = vpop.permute.xlu1 %2594 }
0x1218   :  { %v2596_v5 = vadd.f32 %v2595_v13, %v2593_v11  ;;  %2572 = vrot.lane.b32.xlu0 %v2571_v3, %s4430_s9 }
0x121a   :  { %2597 = vrot.lane.b32.xlu1 %v2596_v5, %s4430_s9 }
0x128a   :  { %v2573_v14 = vpop.permute.xlu0 %2572 }
0x128b   :  { %v2574_v15 = vadd.f32 %v2573_v14, %v2571_v3 }
0x128c   :  { %v2598_v21 = vpop.permute.xlu1 %2597 }
0x128d   :  { %v2599_v22 = vadd.f32 %v2598_v21, %v2596_v5  ;;  %2575 = vrot.lane.b32.xlu0 %v2574_v15, %s4431_s10 }
0x128f   :  { %2600 = vrot.lane.b32.xlu1 %v2599_v22, %s4431_s10 }
0x12ff   :  { %v2576_v24 = vpop.permute.xlu0 %2575 }
0x1300   :  { %v2577_v25 = vadd.f32 %v2576_v24, %v2574_v15 }
0x1301   :  { %v2601_v26 = vpop.permute.xlu1 %2600 }
0x1302   :  { %v2603_v27 = vmul.f32 0.001953125, %v2577_v25  ;;  %v2602_v28 = vadd.f32 %v2601_v26, %v2599_v22 }
0x1304   :  { %v2605_v29 = vmul.f32 %v2603_v27, %v2603_v27  ;;  %v2604_v30 = vmul.f32 0.001953125, %v2602_v28 }
0x1306   :  { %v2606_v31 = vsub.f32 %v2604_v30, %v2605_v29 }
0x1308   :  { %v2609_v32 = vadd.f32 1e-05, %v2606_v31 }
0x130a   :  { %4346 = vrsqrt.f32 %v2609_v32 }
0x1314   :  { %v4347_v36 = vpop.eup %4346 }
0x1315   :  { %v2611_v35 = vmul.f32 %v4347_v36, %v2608_v33 }
0x1317   :  { %v2614_v48 = vmul.f32 %v2611_v35, %v2603_v27  ;;  %v2620_v43 = vrot.slane %v2611_v35, %v4597_v18 }
0x1319   :  { %v2615_v52 = vsub.f32 %v2613_v40, %v2614_v48  ;;  %v2622_v34 = vmul.f32 %v2620_v43, %v2534_v53  ;;  %v2623_v54 = vmul.f32 %v4961_v57, %v2620_v43  ;;  %v2624_v41 = vmul.f32 %v2620_v43, %v2544_v19  ;;  %v4348_v57 = vld [vmem:[%s5005_s0] sm:$0xff] }
0x131a   :  { %v2625_v62 = vmul.f32 %v3701_v55, %v2620_v43 }
0x131b   :  { %v2630_v37 = vrot.slane %v2615_v52, %v4597_v18  ;;  %v4349_v18 = vld [vmem:[%s5005_s0 + $0x8] sm:$0xff] }
0x131d   :  { %v2632_v61 = vadd.f32 %v2630_v37, %v2622_v34  ;;  %v2633_v51 = vadd.f32 %v2630_v37, %v2623_v54  ;;  %v2634_v42 = vadd.f32 %v2630_v37, %v2624_v41  ;;  %v2635_v60 = vadd.f32 %v2630_v37, %v2625_v62 }
0x131f   :  { %v2636_v16 = vadd.f32 %v2632_v61, %v4840_v38  ;;  %v2637_v39 = vadd.f32 %v2633_v51, %v4846_v44  ;;  %v2638_v20 = vadd.f32 %v2634_v42, %v4849_v49  ;;  %v2639_v45 = vadd.f32 %v2635_v60, %v4843_v59  ;;  %v4350_v38 = vld [vmem:[%s5005_s0 + $0x10] sm:$0xff]  ;;  %v4351_v44 = vld [vmem:[%s5005_s0 + $0x18] sm:$0xff] }
0x1321   :  { %v2640_v53 = vadd.f32 %v4348_v57, %v2636_v16  ;;  %v2641_v55 = vadd.f32 %v4349_v18, %v2637_v39  ;;  %v2642_v19 = vadd.f32 %v4350_v38, %v2638_v20  ;;  %v2643_v59 = vadd.f32 %v4351_v44, %v2639_v45 }
0x1323   :  { %2644 = vst [vmem:[%s5009_s4] sm:$0xff] %v2640_v53  ;;  %2645 = vst [vmem:[%s5009_s4 + $0x8] sm:$0xff] %v2641_v55 }
0x1324   :  { %2646 = vst [vmem:[%s5009_s4 + $0x10] sm:$0xff] %v2642_v19  ;;  %2647 = vst [vmem:[%s5009_s4 + $0x18] sm:$0xff] %v2643_v59 }
0x1325   :  { %2652 = vsyncpa [#allocation3], 1 }
0x1326   :  { %2653 = vsyncpa [#allocation5], 1 }

</bundles_post_ra>
